<compile_context>
chip_gen: v7x
topology: tpu7x:2x2x1
jax: 0.10.0
libtpu: 0.0.40
codegen_flags: <defaults>
</compile_context>

<pallas_src>
import jax
import jax.numpy as jnp
from jax.experimental import pallas as pl
from jax.experimental.pallas import tpu as pltpu

BN_EPS = 1e-5
VMEM_LIMIT = 32 * 1024 * 1024       # explicit scoped-VMEM limit (safe on v7x too)
TILE_BUDGET = 10 * 1024 * 1024      # per-buffer-set bytes; x2 double-buffer < limit
K = 4                               # DCGAN kernel size (all layers)


# ----------------------------- Pallas kernels ------------------------------ #

def _mm_kernel(x_ref, w_ref, o_ref):
    """taps = x @ w  (bf16 operands, f32 accumulation)."""
    o_ref[...] = jnp.dot(x_ref[...].astype(jnp.bfloat16), w_ref[...],
                         preferred_element_type=jnp.float32)


def _bn_relu_mm_kernel(x_ref, scale_ref, shift_ref, w_ref, o_ref):
    """taps = relu(x * scale + shift) @ w  (BN affine of the *input* fused in)."""
    xn = jnp.maximum(x_ref[...] * scale_ref[...] + shift_ref[...], 0.0)
    o_ref[...] = jnp.dot(xn.astype(jnp.bfloat16), w_ref[...],
                         preferred_element_type=jnp.float32)


def _stats_kernel(x_ref, s_ref, q_ref):
    """Per-block, sublane-partial sum and sum-of-squares over the row axis."""
    v = x_ref[...]
    pr = s_ref.shape[0]                       # 8 (sublane partials) or 1
    tm, d = v.shape
    v3 = v.reshape(tm // pr, pr, d)
    s_ref[...] = jnp.sum(v3, axis=0)
    q_ref[...] = jnp.sum(v3 * v3, axis=0)


def _tanh_kernel(x_ref, o_ref):
    o_ref[...] = jnp.tanh(x_ref[...])


# ------------------------------ tiling helper ------------------------------ #

def _pick_rows(m, row_bytes, fixed_bytes=0, budget=TILE_BUDGET, cap=4096):
    """Largest row tile that divides m, is a multiple of 8 (or == m), and fits
    the per-buffer VMEM budget after subtracting resident (weight) bytes.
    m not a multiple of 8 -> single full block (only the tiny 1x1 noise layer)."""
    if m % 8 != 0:
        return m
    avail = max(budget - fixed_bytes, 8 * row_bytes)
    start = min(cap, m)
    start -= start % 8
    for tm in range(start, 0, -8):
        if m % tm == 0 and tm * row_bytes <= avail:
            return tm
    return m


# ------------------------------ Pallas wrappers ----------------------------- #

def matmul_taps(x2d, w_mat):
    m, kd = x2d.shape
    nd = w_mat.shape[1]
    tm = _pick_rows(m, (kd + nd) * 4, fixed_bytes=kd * nd * 4)
    grid = m // tm
    return pl.pallas_call(
        _mm_kernel,
        out_shape=jax.ShapeDtypeStruct((m, nd), jnp.float32),
        grid_spec=pltpu.PrefetchScalarGridSpec(
            num_scalar_prefetch=0,
            grid=(grid,),
            in_specs=[pl.BlockSpec((tm, kd), lambda i: (i, 0)),
                      pl.BlockSpec((kd, nd), lambda i: (0, 0))],
            out_specs=pl.BlockSpec((tm, nd), lambda i: (i, 0))),
        compiler_params=pltpu.CompilerParams(
            dimension_semantics=("parallel",), vmem_limit_bytes=VMEM_LIMIT),
    )(x2d, w_mat)


def bn_relu_matmul_taps(x2d, scale, shift, w_mat):
    m, kd = x2d.shape
    nd = w_mat.shape[1]
    tm = _pick_rows(m, (kd + nd) * 4, fixed_bytes=kd * nd * 4 + 4 * kd * 4)
    grid = m // tm
    return pl.pallas_call(
        _bn_relu_mm_kernel,
        out_shape=jax.ShapeDtypeStruct((m, nd), jnp.float32),
        grid_spec=pltpu.PrefetchScalarGridSpec(
            num_scalar_prefetch=0,
            grid=(grid,),
            in_specs=[pl.BlockSpec((tm, kd), lambda i: (i, 0)),
                      pl.BlockSpec((1, kd), lambda i: (0, 0)),
                      pl.BlockSpec((1, kd), lambda i: (0, 0)),
                      pl.BlockSpec((kd, nd), lambda i: (0, 0))],
            out_specs=pl.BlockSpec((tm, nd), lambda i: (i, 0))),
        compiler_params=pltpu.CompilerParams(
            dimension_semantics=("parallel",), vmem_limit_bytes=VMEM_LIMIT),
    )(x2d, scale.reshape(1, kd), shift.reshape(1, kd), w_mat)


def batch_stats_pallas(y_nhwc):
    """Per-channel batch mean / biased variance of a conv output (train-mode BN).
    Reduction reads the natural lane-dense (N*H, W*C) view; per-block sublane
    partials are folded to (C,) on a tiny array in JAX."""
    n, ho, wo, c = y_nhwc.shape
    r, d = n * ho, wo * c
    x2d = y_nhwc.reshape(r, d)
    pr = 8 if r % 8 == 0 else 1
    tm = _pick_rows(r, d * 4) if pr == 8 else r
    grid = r // tm
    s_part, q_part = pl.pallas_call(
        _stats_kernel,
        out_shape=(jax.ShapeDtypeStruct((grid * pr, d), jnp.float32),
                   jax.ShapeDtypeStruct((grid * pr, d), jnp.float32)),
        grid_spec=pltpu.PrefetchScalarGridSpec(
            num_scalar_prefetch=0,
            grid=(grid,),
            in_specs=[pl.BlockSpec((tm, d), lambda i: (i, 0))],
            out_specs=[pl.BlockSpec((pr, d), lambda i: (i, 0)),
                       pl.BlockSpec((pr, d), lambda i: (i, 0))]),
        compiler_params=pltpu.CompilerParams(
            dimension_semantics=("parallel",), vmem_limit_bytes=VMEM_LIMIT),
    )(x2d)
    cnt = n * ho * wo
    s = s_part.sum(axis=0).reshape(wo, c).sum(axis=0)
    q = q_part.sum(axis=0).reshape(wo, c).sum(axis=0)
    mean = s / cnt
    var = jnp.maximum(q / cnt - mean * mean, 0.0)   # clamp f32 cancellation
    return mean, var


def tanh_pallas(y):
    """Elementwise tanh over a lane-dense 2D view of the output image."""
    shp = y.shape
    total = y.size
    if total % 128 == 0 and (total // 128) % 8 == 0:
        x2d = y.reshape(total // 128, 128)
    else:
        x2d = y.reshape(shp[0] * shp[1], -1)
    r, d = x2d.shape
    tm = _pick_rows(r, d * 8)
    grid = r // tm
    out = pl.pallas_call(
        _tanh_kernel,
        out_shape=jax.ShapeDtypeStruct((r, d), jnp.float32),
        grid_spec=pltpu.PrefetchScalarGridSpec(
            num_scalar_prefetch=0,
            grid=(grid,),
            in_specs=[pl.BlockSpec((tm, d), lambda i: (i, 0))],
            out_specs=pl.BlockSpec((tm, d), lambda i: (i, 0))),
        compiler_params=pltpu.CompilerParams(
            dimension_semantics=("parallel",), vmem_limit_bytes=VMEM_LIMIT),
    )(x2d)
    return out.reshape(shp)


# ------------------------------- JAX glue ----------------------------------- #

def convT_weight_to_matrix(w_t):
    """PyTorch ConvTranspose2d weight (Cin, Cout, K, K) -> (Cin, K*K*Cout) with
    the output axis ordered (kh, kw, co), co fastest (matches the tap layout)."""
    cin, cout, k, _ = w_t.shape
    return jnp.transpose(w_t, (0, 2, 3, 1)).reshape(cin, k * k * cout)


def col2im_stride2(taps, n, h, w, k, cout):
    """Sub-pixel scatter-add of per-position taps for K=4, stride=2, pad=1.
    taps: (N*H*W, K*K*Cout) -> conv-transpose output (N, 2H, 2W, Cout)."""
    assert k == 4
    y = taps.reshape(n, h, w, 2, 2, 2, 2, cout)        # (n,h,w,dh,rh,dw,rw,c)
    acc = jnp.zeros((n, h + 1, w + 1, 2, 2, cout), taps.dtype)
    for dh in range(2):
        for dw in range(2):
            contrib = y[:, :, :, dh, :, dw, :, :]       # (n,h,w,rh,rw,c)
            acc = acc + jnp.pad(
                contrib, ((0, 0), (dh, 1 - dh), (dw, 1 - dw),
                          (0, 0), (0, 0), (0, 0)))
    full = acc.transpose(0, 1, 3, 2, 4, 5).reshape(
        n, 2 * (h + 1), 2 * (w + 1), cout)
    return full[:, 1:2 * h + 1, 1:2 * w + 1, :]         # crop padding=1


def init_generator_params(key, channels_noise, channels_img, nf):
    """Deterministic synthetic parameters (shapes match the PyTorch module)."""
    specs = [(channels_noise, nf * 8), (nf * 8, nf * 4), (nf * 4, nf * 2),
             (nf * 2, nf), (nf, channels_img)]
    params = []
    for li, (cin, cout) in enumerate(specs):
        key, kw, kg, kb = jax.random.split(key, 4)
        w = 0.05 * jax.random.normal(kw, (cin, cout, K, K), jnp.float32)
        if li < len(specs) - 1:   # all but the last layer have a BatchNorm2d
            gamma = 1.0 + 0.1 * jax.random.normal(kg, (cout,), jnp.float32)
            beta = 0.1 * jax.random.normal(kb, (cout,), jnp.float32)
        else:
            gamma, beta = None, None
        params.append((w, gamma, beta))
    return params


def prepare_generator_params(params):
    """One-time prep: weight matrices in (Cin, K*K*Cout) bf16 layout."""
    kparams = []
    for w_t, gamma, beta in params:
        kparams.append({"w_mat": convT_weight_to_matrix(w_t).astype(jnp.bfloat16),
                        "gamma": gamma, "beta": beta})
    return kparams


@jax.jit
def generator_forward(x_nchw, kparams):
    x = jnp.transpose(x_nchw, (0, 2, 3, 1)).astype(jnp.float32)   # -> NHWC
    strides = (1, 2, 2, 2, 2)
    n_layers = len(kparams)
    scale = shift = None
    for li, p in enumerate(kparams):
        w_mat, gamma, beta = p["w_mat"], p["gamma"], p["beta"]
        n, h, w, cin = x.shape
        cout = w_mat.shape[1] // (K * K)
        x2d = x.reshape(n * h * w, cin)

        if li == 0:
            taps = matmul_taps(x2d, w_mat)                        # raw noise, no BN
        else:
            taps = bn_relu_matmul_taps(x2d, scale, shift, w_mat)  # fused BN+ReLU

        if strides[li] == 1:
            assert h == 1 and w == 1        # DCGAN first layer: 1x1 -> 4x4
            y = taps.reshape(n, K, K, cout)
        else:
            y = col2im_stride2(taps, n, h, w, K, cout)

        if li < n_layers - 1:
            mean, var = batch_stats_pallas(y)
            inv_std = jax.lax.rsqrt(var + BN_EPS)
            scale = gamma * inv_std
            shift = beta - mean * scale
            # TODO(synk): nn.BatchNorm2d running_mean/running_var buffer updates
            # are stateful bookkeeping with no effect on the train-mode forward
            # output; skipped.
        else:
            y = tanh_pallas(y)
        x = y
    return jnp.transpose(x, (0, 3, 1, 2))                  # back to NCHW


# ------------------------- pure-XLA reference ------------------------------- #

def _convT_ref(x_bf16, w_t, stride, pad):
    """ConvTranspose2d via lhs-dilated correlation with the flipped kernel."""
    k = w_t.shape[2]
    rhs = jnp.transpose(w_t, (2, 3, 0, 1))[::-1, ::-1, :, :].astype(jnp.bfloat16)
    return jax.lax.conv_general_dilated(
        x_bf16, rhs, window_strides=(1, 1),
        padding=[(k - 1 - pad, k - 1 - pad)] * 2,
        lhs_dilation=(stride, stride),
        dimension_numbers=("NHWC", "HWIO", "NHWC"),
        preferred_element_type=jnp.float32)


def generator_reference(x_nchw, params):
    x = jnp.transpose(x_nchw, (0, 2, 3, 1)).astype(jnp.float32)
    strides = (1, 2, 2, 2, 2)
    pads = (0, 1, 1, 1, 1)
    n_layers = len(params)
    for li, (w_t, gamma, beta) in enumerate(params):
        y = _convT_ref(x.astype(jnp.bfloat16), w_t, strides[li], pads[li])
        if li < n_layers - 1:
            mean = jnp.mean(y, axis=(0, 1, 2))
            var = jnp.maximum(jnp.mean(y * y, axis=(0, 1, 2)) - mean * mean, 0.0)
            inv_std = jax.lax.rsqrt(var + BN_EPS)
            x = jnp.maximum((y - mean) * (gamma * inv_std) + beta, 0.0)
        else:
            x = jnp.tanh(y)
    return jnp.transpose(x, (0, 3, 1, 2))


# --------------------------------- main ------------------------------------- #

if __name__ == "__main__":
    key = jax.random.PRNGKey(0)
    k_x, k_p = jax.random.split(key)

    batch, channels_noise, channels_img, num_features = 2, 8, 3, 8
    x = jax.random.normal(k_x, (batch, channels_noise, 1, 1), jnp.float32)
    params = init_generator_params(k_p, channels_noise, channels_img, num_features)
    kparams = prepare_generator_params(params)

    out = generator_forward(x, kparams)
    out = jax.block_until_ready(out)

    assert out.shape == (batch, channels_img, 64, 64), out.shape
    assert bool(jnp.all(jnp.isfinite(out)))
    assert bool(jnp.all(jnp.abs(out) <= 1.0))              # tanh range

    ref = jax.block_until_ready(jax.jit(generator_reference)(x, params))
    max_err = float(jnp.max(jnp.abs(out - ref)))
    assert max_err < 5e-2, f"max |pallas - ref| = {max_err}"

    print("KERNEL_OK")
</pallas_src>

<mosaic_0001>
module attributes {stable_mosaic.version = 11 : i64} {
  func.func @_mm_kernel(%arg0: i32, %arg1: memref<2x8xf32, #tpu.memory_space<vmem>>, %arg2: memref<8x1024xbf16, #tpu.memory_space<vmem>>, %arg3: memref<2x1024xf32, #tpu.memory_space<vmem>>) attributes {dimension_semantics = [#tpu.dimension_semantics<parallel>], iteration_bounds = array<i64: 1>, scalar_prefetch = 0 : i64, scratch_operands = 0 : i64, tpu.core_type = #tpu.core_type<tc>, window_params = [{transform_indices = @transform_0, window_bounds = array<i64: 2, 8>}, {pipeline_mode = #tpu.pipeline_mode<synchronous>, transform_indices = @transform_1, window_bounds = array<i64: 8, 1024>}, {transform_indices = @transform_2, window_bounds = array<i64: 2, 1024>}]} {
    %c0 = arith.constant 0 : index
    %c0_0 = arith.constant 0 : index
    %0 = vector.load %arg1[%c0, %c0_0] : memref<2x8xf32, #tpu.memory_space<vmem>>, vector<2x8xf32>
    %1 = arith.truncf %0 : vector<2x8xf32> to vector<2x8xbf16>
    %c0_1 = arith.constant 0 : index
    %c0_2 = arith.constant 0 : index
    %2 = vector.load %arg2[%c0_1, %c0_2] : memref<8x1024xbf16, #tpu.memory_space<vmem>>, vector<8x1024xbf16>
    %cst = arith.constant dense<0.000000e+00> : vector<2x1024xf32>
    %3 = tpu.matmul %1, %2, %cst {dimension_numbers = #tpu.dot_dimension_numbers<[1], [0], [0], [1], [0, 0, 1, 1], [], []>} : vector<2x8xbf16>, vector<8x1024xbf16>, vector<2x1024xf32> -> vector<2x1024xf32>
    %c0_3 = arith.constant 0 : index
    %c0_4 = arith.constant 0 : index
    %4 = vector.load %arg3[%c0_3, %c0_4] : memref<2x1024xf32, #tpu.memory_space<vmem>>, vector<2x1024xf32>
    tpu.vector_store %arg3[%c0_3, %c0_4], %3 {strides = array<i32>} : memref<2x1024xf32, #tpu.memory_space<vmem>>, vector<2x1024xf32>,
    return
  }
  func.func @transform_0(%arg0: i32) -> (i32, i32) {
    %c0_i32 = arith.constant 0 : i32
    %c0_i32_0 = arith.constant 0 : i32
    return %arg0, %c0_i32 : i32, i32
  }
  func.func @transform_1(%arg0: i32) -> (i32, i32) {
    %c0_i32 = arith.constant 0 : i32
    %c0_i32_0 = arith.constant 0 : i32
    %c0_i32_1 = arith.constant 0 : i32
    return %c0_i32, %c0_i32_0 : i32, i32
  }
  func.func @transform_2(%arg0: i32) -> (i32, i32) {
    %c0_i32 = arith.constant 0 : i32
    %c0_i32_0 = arith.constant 0 : i32
    return %arg0, %c0_i32 : i32, i32
  }
}

module attributes {stable_mosaic.version = 11 : i64} {
  func.func @_stats_kernel(%arg0: i32, %arg1: memref<8x256xf32, #tpu.memory_space<vmem>>, %arg2: memref<8x256xf32, #tpu.memory_space<vmem>>, %arg3: memref<8x256xf32, #tpu.memory_space<vmem>>) attributes {dimension_semantics = [#tpu.dimension_semantics<parallel>], iteration_bounds = array<i64: 1>, scalar_prefetch = 0 : i64, scratch_operands = 0 : i64, tpu.core_type = #tpu.core_type<tc>, window_params = [{transform_indices = @transform_0, window_bounds = array<i64: 8, 256>}, {transform_indices = @transform_1, window_bounds = array<i64: 8, 256>}, {transform_indices = @transform_2, window_bounds = array<i64: 8, 256>}]} {
    %c0 = arith.constant 0 : index
    %c0_0 = arith.constant 0 : index
    %0 = vector.load %arg1[%c0, %c0_0] : memref<8x256xf32, #tpu.memory_space<vmem>>, vector<8x256xf32>
    %1 = vector.shape_cast %0 : vector<8x256xf32> to vector<1x8x256xf32>
    %cst = arith.constant dense<0.000000e+00> : vector<8x256xf32>
    %2 = vector.multi_reduction <add>, %1, %cst [0] : vector<1x8x256xf32> to vector<8x256xf32>
    %c0_1 = arith.constant 0 : index
    %c0_2 = arith.constant 0 : index
    %3 = vector.load %arg2[%c0_1, %c0_2] : memref<8x256xf32, #tpu.memory_space<vmem>>, vector<8x256xf32>
    tpu.vector_store %arg2[%c0_1, %c0_2], %2 {strides = array<i32>} : memref<8x256xf32, #tpu.memory_space<vmem>>, vector<8x256xf32>,
    %4 = arith.mulf %1, %1 : vector<1x8x256xf32>
    %cst_3 = arith.constant dense<0.000000e+00> : vector<8x256xf32>
    %5 = vector.multi_reduction <add>, %4, %cst_3 [0] : vector<1x8x256xf32> to vector<8x256xf32>
    %c0_4 = arith.constant 0 : index
    %c0_5 = arith.constant 0 : index
    %6 = vector.load %arg3[%c0_4, %c0_5] : memref<8x256xf32, #tpu.memory_space<vmem>>, vector<8x256xf32>
    tpu.vector_store %arg3[%c0_4, %c0_5], %5 {strides = array<i32>} : memref<8x256xf32, #tpu.memory_space<vmem>>, vector<8x256xf32>,
    return
  }
  func.func @transform_0(%arg0: i32) -> (i32, i32) {
    %c0_i32 = arith.constant 0 : i32
    %c0_i32_0 = arith.constant 0 : i32
    return %arg0, %c0_i32 : i32, i32
  }
  func.func @transform_1(%arg0: i32) -> (i32, i32) {
    %c0_i32 = arith.constant 0 : i32
    %c0_i32_0 = arith.constant 0 : i32
    return %arg0, %c0_i32 : i32, i32
  }
  func.func @transform_2(%arg0: i32) -> (i32, i32) {
    %c0_i32 = arith.constant 0 : i32
    %c0_i32_0 = arith.constant 0 : i32
    return %arg0, %c0_i32 : i32, i32
  }
}

module attributes {stable_mosaic.version = 11 : i64} {
  func.func @_bn_relu_mm_kernel(%arg0: i32, %arg1: memref<32x64xf32, #tpu.memory_space<vmem>>, %arg2: memref<1x64xf32, #tpu.memory_space<vmem>>, %arg3: memref<1x64xf32, #tpu.memory_space<vmem>>, %arg4: memref<64x512xbf16, #tpu.memory_space<vmem>>, %arg5: memref<32x512xf32, #tpu.memory_space<vmem>>) attributes {dimension_semantics = [#tpu.dimension_semantics<parallel>], iteration_bounds = array<i64: 1>, scalar_prefetch = 0 : i64, scratch_operands = 0 : i64, tpu.core_type = #tpu.core_type<tc>, window_params = [{transform_indices = @transform_0, window_bounds = array<i64: 32, 64>}, {pipeline_mode = #tpu.pipeline_mode<synchronous>, transform_indices = @transform_1, window_bounds = array<i64: 1, 64>}, {pipeline_mode = #tpu.pipeline_mode<synchronous>, transform_indices = @transform_2, window_bounds = array<i64: 1, 64>}, {pipeline_mode = #tpu.pipeline_mode<synchronous>, transform_indices = @transform_3, window_bounds = array<i64: 64, 512>}, {transform_indices = @transform_4, window_bounds = array<i64: 32, 512>}]} {
    %c0 = arith.constant 0 : index
    %c0_0 = arith.constant 0 : index
    %0 = vector.load %arg1[%c0, %c0_0] : memref<32x64xf32, #tpu.memory_space<vmem>>, vector<32x64xf32>
    %c0_1 = arith.constant 0 : index
    %c0_2 = arith.constant 0 : index
    %1 = vector.load %arg2[%c0_1, %c0_2] : memref<1x64xf32, #tpu.memory_space<vmem>>, vector<1x64xf32>
    %2 = vector.broadcast %1 : vector<1x64xf32> to vector<32x64xf32>
    %3 = arith.mulf %0, %2 : vector<32x64xf32>
    %c0_3 = arith.constant 0 : index
    %c0_4 = arith.constant 0 : index
    %4 = vector.load %arg3[%c0_3, %c0_4] : memref<1x64xf32, #tpu.memory_space<vmem>>, vector<1x64xf32>
    %5 = vector.broadcast %4 : vector<1x64xf32> to vector<32x64xf32>
    %6 = arith.addf %3, %5 : vector<32x64xf32>
    %cst = arith.constant 0.000000e+00 : f32
    %7 = vector.broadcast %cst : f32 to vector<32x64xf32>
    %8 = arith.maximumf %6, %7 : vector<32x64xf32>
    %9 = arith.truncf %8 : vector<32x64xf32> to vector<32x64xbf16>
    %c0_5 = arith.constant 0 : index
    %c0_6 = arith.constant 0 : index
    %10 = vector.load %arg4[%c0_5, %c0_6] : memref<64x512xbf16, #tpu.memory_space<vmem>>, vector<64x512xbf16>
    %cst_7 = arith.constant dense<0.000000e+00> : vector<32x512xf32>
    %11 = tpu.matmul %9, %10, %cst_7 {dimension_numbers = #tpu.dot_dimension_numbers<[1], [0], [0], [1], [0, 0, 1, 1], [], []>} : vector<32x64xbf16>, vector<64x512xbf16>, vector<32x512xf32> -> vector<32x512xf32>
    %c0_8 = arith.constant 0 : index
    %c0_9 = arith.constant 0 : index
    %12 = vector.load %arg5[%c0_8, %c0_9] : memref<32x512xf32, #tpu.memory_space<vmem>>, vector<32x512xf32>
    tpu.vector_store %arg5[%c0_8, %c0_9], %11 {strides = array<i32>} : memref<32x512xf32, #tpu.memory_space<vmem>>, vector<32x512xf32>,
    return
  }
  func.func @transform_0(%arg0: i32) -> (i32, i32) {
    %c0_i32 = arith.constant 0 : i32
    %c0_i32_0 = arith.constant 0 : i32
    return %arg0, %c0_i32 : i32, i32
  }
  func.func @transform_1(%arg0: i32) -> (i32, i32) {
    %c0_i32 = arith.constant 0 : i32
    %c0_i32_0 = arith.constant 0 : i32
    %c0_i32_1 = arith.constant 0 : i32
    return %c0_i32, %c0_i32_0 : i32, i32
  }
  func.func @transform_2(%arg0: i32) -> (i32, i32) {
    %c0_i32 = arith.constant 0 : i32
    %c0_i32_0 = arith.constant 0 : i32
    %c0_i32_1 = arith.constant 0 : i32
    return %c0_i32, %c0_i32_0 : i32, i32
  }
  func.func @transform_3(%arg0: i32) -> (i32, i32) {
    %c0_i32 = arith.constant 0 : i32
    %c0_i32_0 = arith.constant 0 : i32
    %c0_i32_1 = arith.constant 0 : i32
    return %c0_i32, %c0_i32_0 : i32, i32
  }
  func.func @transform_4(%arg0: i32) -> (i32, i32) {
    %c0_i32 = arith.constant 0 : i32
    %c0_i32_0 = arith.constant 0 : i32
    return %arg0, %c0_i32 : i32, i32
  }
}

module attributes {stable_mosaic.version = 11 : i64} {
  func.func @_stats_kernel(%arg0: i32, %arg1: memref<16x256xf32, #tpu.memory_space<vmem>>, %arg2: memref<8x256xf32, #tpu.memory_space<vmem>>, %arg3: memref<8x256xf32, #tpu.memory_space<vmem>>) attributes {dimension_semantics = [#tpu.dimension_semantics<parallel>], iteration_bounds = array<i64: 1>, scalar_prefetch = 0 : i64, scratch_operands = 0 : i64, tpu.core_type = #tpu.core_type<tc>, window_params = [{transform_indices = @transform_0, window_bounds = array<i64: 16, 256>}, {transform_indices = @transform_1, window_bounds = array<i64: 8, 256>}, {transform_indices = @transform_2, window_bounds = array<i64: 8, 256>}]} {
    %c0 = arith.constant 0 : index
    %c0_0 = arith.constant 0 : index
    %0 = vector.load %arg1[%c0, %c0_0] : memref<16x256xf32, #tpu.memory_space<vmem>>, vector<16x256xf32>
    %1 = vector.shape_cast %0 : vector<16x256xf32> to vector<2x8x256xf32>
    %cst = arith.constant dense<0.000000e+00> : vector<8x256xf32>
    %2 = vector.multi_reduction <add>, %1, %cst [0] : vector<2x8x256xf32> to vector<8x256xf32>
    %c0_1 = arith.constant 0 : index
    %c0_2 = arith.constant 0 : index
    %3 = vector.load %arg2[%c0_1, %c0_2] : memref<8x256xf32, #tpu.memory_space<vmem>>, vector<8x256xf32>
    tpu.vector_store %arg2[%c0_1, %c0_2], %2 {strides = array<i32>} : memref<8x256xf32, #tpu.memory_space<vmem>>, vector<8x256xf32>,
    %4 = arith.mulf %1, %1 : vector<2x8x256xf32>
    %cst_3 = arith.constant dense<0.000000e+00> : vector<8x256xf32>
    %5 = vector.multi_reduction <add>, %4, %cst_3 [0] : vector<2x8x256xf32> to vector<8x256xf32>
    %c0_4 = arith.constant 0 : index
    %c0_5 = arith.constant 0 : index
    %6 = vector.load %arg3[%c0_4, %c0_5] : memref<8x256xf32, #tpu.memory_space<vmem>>, vector<8x256xf32>
    tpu.vector_store %arg3[%c0_4, %c0_5], %5 {strides = array<i32>} : memref<8x256xf32, #tpu.memory_space<vmem>>, vector<8x256xf32>,
    return
  }
  func.func @transform_0(%arg0: i32) -> (i32, i32) {
    %c0_i32 = arith.constant 0 : i32
    %c0_i32_0 = arith.constant 0 : i32
    return %arg0, %c0_i32 : i32, i32
  }
  func.func @transform_1(%arg0: i32) -> (i32, i32) {
    %c0_i32 = arith.constant 0 : i32
    %c0_i32_0 = arith.constant 0 : i32
    return %arg0, %c0_i32 : i32, i32
  }
  func.func @transform_2(%arg0: i32) -> (i32, i32) {
    %c0_i32 = arith.constant 0 : i32
    %c0_i32_0 = arith.constant 0 : i32
    return %arg0, %c0_i32 : i32, i32
  }
}

module attributes {stable_mosaic.version = 11 : i64} {
  func.func @_bn_relu_mm_kernel(%arg0: i32, %arg1: memref<128x32xf32, #tpu.memory_space<vmem>>, %arg2: memref<1x32xf32, #tpu.memory_space<vmem>>, %arg3: memref<1x32xf32, #tpu.memory_space<vmem>>, %arg4: memref<32x256xbf16, #tpu.memory_space<vmem>>, %arg5: memref<128x256xf32, #tpu.memory_space<vmem>>) attributes {dimension_semantics = [#tpu.dimension_semantics<parallel>], iteration_bounds = array<i64: 1>, scalar_prefetch = 0 : i64, scratch_operands = 0 : i64, tpu.core_type = #tpu.core_type<tc>, window_params = [{transform_indices = @transform_0, window_bounds = array<i64: 128, 32>}, {pipeline_mode = #tpu.pipeline_mode<synchronous>, transform_indices = @transform_1, window_bounds = array<i64: 1, 32>}, {pipeline_mode = #tpu.pipeline_mode<synchronous>, transform_indices = @transform_2, window_bounds = array<i64: 1, 32>}, {pipeline_mode = #tpu.pipeline_mode<synchronous>, transform_indices = @transform_3, window_bounds = array<i64: 32, 256>}, {transform_indices = @transform_4, window_bounds = array<i64: 128, 256>}]} {
    %c0 = arith.constant 0 : index
    %c0_0 = arith.constant 0 : index
    %0 = vector.load %arg1[%c0, %c0_0] : memref<128x32xf32, #tpu.memory_space<vmem>>, vector<128x32xf32>
    %c0_1 = arith.constant 0 : index
    %c0_2 = arith.constant 0 : index
    %1 = vector.load %arg2[%c0_1, %c0_2] : memref<1x32xf32, #tpu.memory_space<vmem>>, vector<1x32xf32>
    %2 = vector.broadcast %1 : vector<1x32xf32> to vector<128x32xf32>
    %3 = arith.mulf %0, %2 : vector<128x32xf32>
    %c0_3 = arith.constant 0 : index
    %c0_4 = arith.constant 0 : index
    %4 = vector.load %arg3[%c0_3, %c0_4] : memref<1x32xf32, #tpu.memory_space<vmem>>, vector<1x32xf32>
    %5 = vector.broadcast %4 : vector<1x32xf32> to vector<128x32xf32>
    %6 = arith.addf %3, %5 : vector<128x32xf32>
    %cst = arith.constant 0.000000e+00 : f32
    %7 = vector.broadcast %cst : f32 to vector<128x32xf32>
    %8 = arith.maximumf %6, %7 : vector<128x32xf32>
    %9 = arith.truncf %8 : vector<128x32xf32> to vector<128x32xbf16>
    %c0_5 = arith.constant 0 : index
    %c0_6 = arith.constant 0 : index
    %10 = vector.load %arg4[%c0_5, %c0_6] : memref<32x256xbf16, #tpu.memory_space<vmem>>, vector<32x256xbf16>
    %cst_7 = arith.constant dense<0.000000e+00> : vector<128x256xf32>
    %11 = tpu.matmul %9, %10, %cst_7 {dimension_numbers = #tpu.dot_dimension_numbers<[1], [0], [0], [1], [0, 0, 1, 1], [], []>} : vector<128x32xbf16>, vector<32x256xbf16>, vector<128x256xf32> -> vector<128x256xf32>
    %c0_8 = arith.constant 0 : index
    %c0_9 = arith.constant 0 : index
    %12 = vector.load %arg5[%c0_8, %c0_9] : memref<128x256xf32, #tpu.memory_space<vmem>>, vector<128x256xf32>
    tpu.vector_store %arg5[%c0_8, %c0_9], %11 {strides = array<i32>} : memref<128x256xf32, #tpu.memory_space<vmem>>, vector<128x256xf32>,
    return
  }
  func.func @transform_0(%arg0: i32) -> (i32, i32) {
    %c0_i32 = arith.constant 0 : i32
    %c0_i32_0 = arith.constant 0 : i32
    return %arg0, %c0_i32 : i32, i32
  }
  func.func @transform_1(%arg0: i32) -> (i32, i32) {
    %c0_i32 = arith.constant 0 : i32
    %c0_i32_0 = arith.constant 0 : i32
    %c0_i32_1 = arith.constant 0 : i32
    return %c0_i32, %c0_i32_0 : i32, i32
  }
  func.func @transform_2(%arg0: i32) -> (i32, i32) {
    %c0_i32 = arith.constant 0 : i32
    %c0_i32_0 = arith.constant 0 : i32
    %c0_i32_1 = arith.constant 0 : i32
    return %c0_i32, %c0_i32_0 : i32, i32
  }
  func.func @transform_3(%arg0: i32) -> (i32, i32) {
    %c0_i32 = arith.constant 0 : i32
    %c0_i32_0 = arith.constant 0 : i32
    %c0_i32_1 = arith.constant 0 : i32
    return %c0_i32, %c0_i32_0 : i32, i32
  }
  func.func @transform_4(%arg0: i32) -> (i32, i32) {
    %c0_i32 = arith.constant 0 : i32
    %c0_i32_0 = arith.constant 0 : i32
    return %arg0, %c0_i32 : i32, i32
  }
}

module attributes {stable_mosaic.version = 11 : i64} {
  func.func @_stats_kernel(%arg0: i32, %arg1: memref<32x256xf32, #tpu.memory_space<vmem>>, %arg2: memref<8x256xf32, #tpu.memory_space<vmem>>, %arg3: memref<8x256xf32, #tpu.memory_space<vmem>>) attributes {dimension_semantics = [#tpu.dimension_semantics<parallel>], iteration_bounds = array<i64: 1>, scalar_prefetch = 0 : i64, scratch_operands = 0 : i64, tpu.core_type = #tpu.core_type<tc>, window_params = [{transform_indices = @transform_0, window_bounds = array<i64: 32, 256>}, {transform_indices = @transform_1, window_bounds = array<i64: 8, 256>}, {transform_indices = @transform_2, window_bounds = array<i64: 8, 256>}]} {
    %c0 = arith.constant 0 : index
    %c0_0 = arith.constant 0 : index
    %0 = vector.load %arg1[%c0, %c0_0] : memref<32x256xf32, #tpu.memory_space<vmem>>, vector<32x256xf32>
    %1 = vector.shape_cast %0 : vector<32x256xf32> to vector<4x8x256xf32>
    %cst = arith.constant dense<0.000000e+00> : vector<8x256xf32>
    %2 = vector.multi_reduction <add>, %1, %cst [0] : vector<4x8x256xf32> to vector<8x256xf32>
    %c0_1 = arith.constant 0 : index
    %c0_2 = arith.constant 0 : index
    %3 = vector.load %arg2[%c0_1, %c0_2] : memref<8x256xf32, #tpu.memory_space<vmem>>, vector<8x256xf32>
    tpu.vector_store %arg2[%c0_1, %c0_2], %2 {strides = array<i32>} : memref<8x256xf32, #tpu.memory_space<vmem>>, vector<8x256xf32>,
    %4 = arith.mulf %1, %1 : vector<4x8x256xf32>
    %cst_3 = arith.constant dense<0.000000e+00> : vector<8x256xf32>
    %5 = vector.multi_reduction <add>, %4, %cst_3 [0] : vector<4x8x256xf32> to vector<8x256xf32>
    %c0_4 = arith.constant 0 : index
    %c0_5 = arith.constant 0 : index
    %6 = vector.load %arg3[%c0_4, %c0_5] : memref<8x256xf32, #tpu.memory_space<vmem>>, vector<8x256xf32>
    tpu.vector_store %arg3[%c0_4, %c0_5], %5 {strides = array<i32>} : memref<8x256xf32, #tpu.memory_space<vmem>>, vector<8x256xf32>,
    return
  }
  func.func @transform_0(%arg0: i32) -> (i32, i32) {
    %c0_i32 = arith.constant 0 : i32
    %c0_i32_0 = arith.constant 0 : i32
    return %arg0, %c0_i32 : i32, i32
  }
  func.func @transform_1(%arg0: i32) -> (i32, i32) {
    %c0_i32 = arith.constant 0 : i32
    %c0_i32_0 = arith.constant 0 : i32
    return %arg0, %c0_i32 : i32, i32
  }
  func.func @transform_2(%arg0: i32) -> (i32, i32) {
    %c0_i32 = arith.constant 0 : i32
    %c0_i32_0 = arith.constant 0 : i32
    return %arg0, %c0_i32 : i32, i32
  }
}

module attributes {stable_mosaic.version = 11 : i64} {
  func.func @_bn_relu_mm_kernel(%arg0: i32, %arg1: memref<512x16xf32, #tpu.memory_space<vmem>>, %arg2: memref<1x16xf32, #tpu.memory_space<vmem>>, %arg3: memref<1x16xf32, #tpu.memory_space<vmem>>, %arg4: memref<16x128xbf16, #tpu.memory_space<vmem>>, %arg5: memref<512x128xf32, #tpu.memory_space<vmem>>) attributes {dimension_semantics = [#tpu.dimension_semantics<parallel>], iteration_bounds = array<i64: 1>, scalar_prefetch = 0 : i64, scratch_operands = 0 : i64, tpu.core_type = #tpu.core_type<tc>, window_params = [{transform_indices = @transform_0, window_bounds = array<i64: 512, 16>}, {pipeline_mode = #tpu.pipeline_mode<synchronous>, transform_indices = @transform_1, window_bounds = array<i64: 1, 16>}, {pipeline_mode = #tpu.pipeline_mode<synchronous>, transform_indices = @transform_2, window_bounds = array<i64: 1, 16>}, {pipeline_mode = #tpu.pipeline_mode<synchronous>, transform_indices = @transform_3, window_bounds = array<i64: 16, 128>}, {transform_indices = @transform_4, window_bounds = array<i64: 512, 128>}]} {
    %c0 = arith.constant 0 : index
    %c0_0 = arith.constant 0 : index
    %0 = vector.load %arg1[%c0, %c0_0] : memref<512x16xf32, #tpu.memory_space<vmem>>, vector<512x16xf32>
    %c0_1 = arith.constant 0 : index
    %c0_2 = arith.constant 0 : index
    %1 = vector.load %arg2[%c0_1, %c0_2] : memref<1x16xf32, #tpu.memory_space<vmem>>, vector<1x16xf32>
    %2 = vector.broadcast %1 : vector<1x16xf32> to vector<512x16xf32>
    %3 = arith.mulf %0, %2 : vector<512x16xf32>
    %c0_3 = arith.constant 0 : index
    %c0_4 = arith.constant 0 : index
    %4 = vector.load %arg3[%c0_3, %c0_4] : memref<1x16xf32, #tpu.memory_space<vmem>>, vector<1x16xf32>
    %5 = vector.broadcast %4 : vector<1x16xf32> to vector<512x16xf32>
    %6 = arith.addf %3, %5 : vector<512x16xf32>
    %cst = arith.constant 0.000000e+00 : f32
    %7 = vector.broadcast %cst : f32 to vector<512x16xf32>
    %8 = arith.maximumf %6, %7 : vector<512x16xf32>
    %9 = arith.truncf %8 : vector<512x16xf32> to vector<512x16xbf16>
    %c0_5 = arith.constant 0 : index
    %c0_6 = arith.constant 0 : index
    %10 = vector.load %arg4[%c0_5, %c0_6] : memref<16x128xbf16, #tpu.memory_space<vmem>>, vector<16x128xbf16>
    %cst_7 = arith.constant dense<0.000000e+00> : vector<512x128xf32>
    %11 = tpu.matmul %9, %10, %cst_7 {dimension_numbers = #tpu.dot_dimension_numbers<[1], [0], [0], [1], [0, 0, 1, 1], [], []>} : vector<512x16xbf16>, vector<16x128xbf16>, vector<512x128xf32> -> vector<512x128xf32>
    %c0_8 = arith.constant 0 : index
    %c0_9 = arith.constant 0 : index
    %12 = vector.load %arg5[%c0_8, %c0_9] : memref<512x128xf32, #tpu.memory_space<vmem>>, vector<512x128xf32>
    tpu.vector_store %arg5[%c0_8, %c0_9], %11 {strides = array<i32>} : memref<512x128xf32, #tpu.memory_space<vmem>>, vector<512x128xf32>,
    return
  }
  func.func @transform_0(%arg0: i32) -> (i32, i32) {
    %c0_i32 = arith.constant 0 : i32
    %c0_i32_0 = arith.constant 0 : i32
    return %arg0, %c0_i32 : i32, i32
  }
  func.func @transform_1(%arg0: i32) -> (i32, i32) {
    %c0_i32 = arith.constant 0 : i32
    %c0_i32_0 = arith.constant 0 : i32
    %c0_i32_1 = arith.constant 0 : i32
    return %c0_i32, %c0_i32_0 : i32, i32
  }
  func.func @transform_2(%arg0: i32) -> (i32, i32) {
    %c0_i32 = arith.constant 0 : i32
    %c0_i32_0 = arith.constant 0 : i32
    %c0_i32_1 = arith.constant 0 : i32
    return %c0_i32, %c0_i32_0 : i32, i32
  }
  func.func @transform_3(%arg0: i32) -> (i32, i32) {
    %c0_i32 = arith.constant 0 : i32
    %c0_i32_0 = arith.constant 0 : i32
    %c0_i32_1 = arith.constant 0 : i32
    return %c0_i32, %c0_i32_0 : i32, i32
  }
  func.func @transform_4(%arg0: i32) -> (i32, i32) {
    %c0_i32 = arith.constant 0 : i32
    %c0_i32_0 = arith.constant 0 : i32
    return %arg0, %c0_i32 : i32, i32
  }
}

module attributes {stable_mosaic.version = 11 : i64} {
  func.func @_stats_kernel(%arg0: i32, %arg1: memref<64x256xf32, #tpu.memory_space<vmem>>, %arg2: memref<8x256xf32, #tpu.memory_space<vmem>>, %arg3: memref<8x256xf32, #tpu.memory_space<vmem>>) attributes {dimension_semantics = [#tpu.dimension_semantics<parallel>], iteration_bounds = array<i64: 1>, scalar_prefetch = 0 : i64, scratch_operands = 0 : i64, tpu.core_type = #tpu.core_type<tc>, window_params = [{transform_indices = @transform_0, window_bounds = array<i64: 64, 256>}, {transform_indices = @transform_1, window_bounds = array<i64: 8, 256>}, {transform_indices = @transform_2, window_bounds = array<i64: 8, 256>}]} {
    %c0 = arith.constant 0 : index
    %c0_0 = arith.constant 0 : index
    %0 = vector.load %arg1[%c0, %c0_0] : memref<64x256xf32, #tpu.memory_space<vmem>>, vector<64x256xf32>
    %1 = vector.shape_cast %0 : vector<64x256xf32> to vector<8x8x256xf32>
    %cst = arith.constant dense<0.000000e+00> : vector<8x256xf32>
    %2 = vector.multi_reduction <add>, %1, %cst [0] : vector<8x8x256xf32> to vector<8x256xf32>
    %c0_1 = arith.constant 0 : index
    %c0_2 = arith.constant 0 : index
    %3 = vector.load %arg2[%c0_1, %c0_2] : memref<8x256xf32, #tpu.memory_space<vmem>>, vector<8x256xf32>
    tpu.vector_store %arg2[%c0_1, %c0_2], %2 {strides = array<i32>} : memref<8x256xf32, #tpu.memory_space<vmem>>, vector<8x256xf32>,
    %4 = arith.mulf %1, %1 : vector<8x8x256xf32>
    %cst_3 = arith.constant dense<0.000000e+00> : vector<8x256xf32>
    %5 = vector.multi_reduction <add>, %4, %cst_3 [0] : vector<8x8x256xf32> to vector<8x256xf32>
    %c0_4 = arith.constant 0 : index
    %c0_5 = arith.constant 0 : index
    %6 = vector.load %arg3[%c0_4, %c0_5] : memref<8x256xf32, #tpu.memory_space<vmem>>, vector<8x256xf32>
    tpu.vector_store %arg3[%c0_4, %c0_5], %5 {strides = array<i32>} : memref<8x256xf32, #tpu.memory_space<vmem>>, vector<8x256xf32>,
    return
  }
  func.func @transform_0(%arg0: i32) -> (i32, i32) {
    %c0_i32 = arith.constant 0 : i32
    %c0_i32_0 = arith.constant 0 : i32
    return %arg0, %c0_i32 : i32, i32
  }
  func.func @transform_1(%arg0: i32) -> (i32, i32) {
    %c0_i32 = arith.constant 0 : i32
    %c0_i32_0 = arith.constant 0 : i32
    return %arg0, %c0_i32 : i32, i32
  }
  func.func @transform_2(%arg0: i32) -> (i32, i32) {
    %c0_i32 = arith.constant 0 : i32
    %c0_i32_0 = arith.constant 0 : i32
    return %arg0, %c0_i32 : i32, i32
  }
}

module attributes {stable_mosaic.version = 11 : i64} {
  func.func @_bn_relu_mm_kernel(%arg0: i32, %arg1: memref<2048x8xf32, #tpu.memory_space<vmem>>, %arg2: memref<1x8xf32, #tpu.memory_space<vmem>>, %arg3: memref<1x8xf32, #tpu.memory_space<vmem>>, %arg4: memref<8x48xbf16, #tpu.memory_space<vmem>>, %arg5: memref<2048x48xf32, #tpu.memory_space<vmem>>) attributes {dimension_semantics = [#tpu.dimension_semantics<parallel>], iteration_bounds = array<i64: 1>, scalar_prefetch = 0 : i64, scratch_operands = 0 : i64, tpu.core_type = #tpu.core_type<tc>, window_params = [{transform_indices = @transform_0, window_bounds = array<i64: 2048, 8>}, {pipeline_mode = #tpu.pipeline_mode<synchronous>, transform_indices = @transform_1, window_bounds = array<i64: 1, 8>}, {pipeline_mode = #tpu.pipeline_mode<synchronous>, transform_indices = @transform_2, window_bounds = array<i64: 1, 8>}, {pipeline_mode = #tpu.pipeline_mode<synchronous>, transform_indices = @transform_3, window_bounds = array<i64: 8, 48>}, {transform_indices = @transform_4, window_bounds = array<i64: 2048, 48>}]} {
    %c0 = arith.constant 0 : index
    %c0_0 = arith.constant 0 : index
    %0 = vector.load %arg1[%c0, %c0_0] : memref<2048x8xf32, #tpu.memory_space<vmem>>, vector<2048x8xf32>
    %c0_1 = arith.constant 0 : index
    %c0_2 = arith.constant 0 : index
    %1 = vector.load %arg2[%c0_1, %c0_2] : memref<1x8xf32, #tpu.memory_space<vmem>>, vector<1x8xf32>
    %2 = vector.broadcast %1 : vector<1x8xf32> to vector<2048x8xf32>
    %3 = arith.mulf %0, %2 : vector<2048x8xf32>
    %c0_3 = arith.constant 0 : index
    %c0_4 = arith.constant 0 : index
    %4 = vector.load %arg3[%c0_3, %c0_4] : memref<1x8xf32, #tpu.memory_space<vmem>>, vector<1x8xf32>
    %5 = vector.broadcast %4 : vector<1x8xf32> to vector<2048x8xf32>
    %6 = arith.addf %3, %5 : vector<2048x8xf32>
    %cst = arith.constant 0.000000e+00 : f32
    %7 = vector.broadcast %cst : f32 to vector<2048x8xf32>
    %8 = arith.maximumf %6, %7 : vector<2048x8xf32>
    %9 = arith.truncf %8 : vector<2048x8xf32> to vector<2048x8xbf16>
    %c0_5 = arith.constant 0 : index
    %c0_6 = arith.constant 0 : index
    %10 = vector.load %arg4[%c0_5, %c0_6] : memref<8x48xbf16, #tpu.memory_space<vmem>>, vector<8x48xbf16>
    %cst_7 = arith.constant dense<0.000000e+00> : vector<2048x48xf32>
    %11 = tpu.matmul %9, %10, %cst_7 {dimension_numbers = #tpu.dot_dimension_numbers<[1], [0], [0], [1], [0, 0, 1, 1], [], []>} : vector<2048x8xbf16>, vector<8x48xbf16>, vector<2048x48xf32> -> vector<2048x48xf32>
    %c0_8 = arith.constant 0 : index
    %c0_9 = arith.constant 0 : index
    %12 = vector.load %arg5[%c0_8, %c0_9] : memref<2048x48xf32, #tpu.memory_space<vmem>>, vector<2048x48xf32>
    tpu.vector_store %arg5[%c0_8, %c0_9], %11 {strides = array<i32>} : memref<2048x48xf32, #tpu.memory_space<vmem>>, vector<2048x48xf32>,
    return
  }
  func.func @transform_0(%arg0: i32) -> (i32, i32) {
    %c0_i32 = arith.constant 0 : i32
    %c0_i32_0 = arith.constant 0 : i32
    return %arg0, %c0_i32 : i32, i32
  }
  func.func @transform_1(%arg0: i32) -> (i32, i32) {
    %c0_i32 = arith.constant 0 : i32
    %c0_i32_0 = arith.constant 0 : i32
    %c0_i32_1 = arith.constant 0 : i32
    return %c0_i32, %c0_i32_0 : i32, i32
  }
  func.func @transform_2(%arg0: i32) -> (i32, i32) {
    %c0_i32 = arith.constant 0 : i32
    %c0_i32_0 = arith.constant 0 : i32
    %c0_i32_1 = arith.constant 0 : i32
    return %c0_i32, %c0_i32_0 : i32, i32
  }
  func.func @transform_3(%arg0: i32) -> (i32, i32) {
    %c0_i32 = arith.constant 0 : i32
    %c0_i32_0 = arith.constant 0 : i32
    %c0_i32_1 = arith.constant 0 : i32
    return %c0_i32, %c0_i32_0 : i32, i32
  }
  func.func @transform_4(%arg0: i32) -> (i32, i32) {
    %c0_i32 = arith.constant 0 : i32
    %c0_i32_0 = arith.constant 0 : i32
    return %arg0, %c0_i32 : i32, i32
  }
}

module attributes {stable_mosaic.version = 11 : i64} {
  func.func @_tanh_kernel(%arg0: i32, %arg1: memref<192x128xf32, #tpu.memory_space<vmem>>, %arg2: memref<192x128xf32, #tpu.memory_space<vmem>>) attributes {dimension_semantics = [#tpu.dimension_semantics<parallel>], iteration_bounds = array<i64: 1>, scalar_prefetch = 0 : i64, scratch_operands = 0 : i64, tpu.core_type = #tpu.core_type<tc>, window_params = [{transform_indices = @transform_0, window_bounds = array<i64: 192, 128>}, {transform_indices = @transform_1, window_bounds = array<i64: 192, 128>}]} {
    %c0 = arith.constant 0 : index
    %c0_0 = arith.constant 0 : index
    %0 = vector.load %arg1[%c0, %c0_0] : memref<192x128xf32, #tpu.memory_space<vmem>>, vector<192x128xf32>
    %1 = math.tanh %0 : vector<192x128xf32>
    %c0_1 = arith.constant 0 : index
    %c0_2 = arith.constant 0 : index
    %2 = vector.load %arg2[%c0_1, %c0_2] : memref<192x128xf32, #tpu.memory_space<vmem>>, vector<192x128xf32>
    tpu.vector_store %arg2[%c0_1, %c0_2], %1 {strides = array<i32>} : memref<192x128xf32, #tpu.memory_space<vmem>>, vector<192x128xf32>,
    return
  }
  func.func @transform_0(%arg0: i32) -> (i32, i32) {
    %c0_i32 = arith.constant 0 : i32
    %c0_i32_0 = arith.constant 0 : i32
    return %arg0, %c0_i32 : i32, i32
  }
  func.func @transform_1(%arg0: i32) -> (i32, i32) {
    %c0_i32 = arith.constant 0 : i32
    %c0_i32_0 = arith.constant 0 : i32
    return %arg0, %c0_i32 : i32, i32
  }
}

</mosaic_0001>

<bundles_post_ra>
// kernel: generator_forward.11
= control target key start
LH: loop header
LB: loop body
LE: loop exit
PB: predicated region body
PF: predicated region fallthrough
CT: control target
= control target key end

     0   :  { %s63_s0 = inlined_call_operand.vmem [shape: f32[8,256], index: 0, kind: input, shape index: {}]   ;;  %s64_s1 = inlined_call_operand.vmem [shape: f32[8,256], index: 1, kind: output, shape index: {0}]   ;;  %s65_s2 = inlined_call_operand.vmem [shape: f32[8,256], index: 2, kind: output, shape index: {1}]  }
   0x1   :  { %v10_v0 = vld [vmem:[%s63_s0] sm:$0xff]  ;;  %v11_v1 = vld [vmem:[%s63_s0 + $0x8] sm:$0xff] }
   0x2   :  { %14 = vst [vmem:[%s64_s1] sm:$0xff] %v10_v0  ;;  %15 = vst [vmem:[%s64_s1 + $0x8] sm:$0xff] %v11_v1  ;;  %v16_v2 = vmul.f32 %v10_v0, %v10_v0  ;;  %v17_v3 = vmul.f32 %v11_v1, %v11_v1 }
   0x4   :  { %20 = vst [vmem:[%s65_s2] sm:$0xff] %v16_v2  ;;  %21 = vst [vmem:[%s65_s2 + $0x8] sm:$0xff] %v17_v3 }

// kernel: generator_forward.10
= control target key start
LH: loop header
LB: loop body
LE: loop exit
PB: predicated region body
PF: predicated region fallthrough
CT: control target
= control target key end

     0   :  { %7 = vsyncpa [#allocation3], 0  ;;  %s440_s0 = inlined_call_operand.hbm [shape: f32[2,8], index: 0, kind: input, shape index: {}]   ;;  %s441_s1 = inlined_call_operand.hbm [shape: bf16[8,1024], index: 1, kind: input, shape index: {}]   ;;  %s442_s2 = inlined_call_operand.vmem [shape: f32[2,1024], index: 2, kind: output, shape index: {}]  }
   0x1   :  { %8 = vsyncpa [#allocation5], 0  ;;  %s383_s9 = smov [#allocation2]   ;;  %s384_s11 = smov [#allocation4]  }
   0x2   :  { %s15_s10 = sshll.u32 %s383_s9, 4  ;;  %s25_s12 = sshll.u32 %s384_s11, 4  ;;  %s16_s10 = int_to_ptr.vmem [resolvable:$true] %s15_s10  ;;  %s26_s12 = int_to_ptr.vmem [resolvable:$true] %s25_s12 }
   0x3   :  { %s335_s15 = scalar_lea.hbm %s440_s0, 32 }
   0x4   :  { %p336_p0 = scmp.ne.s32.totalorder %s440_s0, %s335_s15  ;;  %p339_p1 = scmp.lt.u32.totalorder %s335_s15, %s440_s0 }
   0x6   :  { %p341_p2 = pnand %p339_p1, %p336_p0 }
   0x8   :  { %344 = shalt.err (!%p341_p2)
}
   0x9   :  { %s345_s20 = scalar_lea.vmem %s16_s10, 32  ;;  %p350_p4 = scmp.lt.s32.totalorder %s16_s10, %s16_s10 }
   0xa   :  { %p346_p3 = scmp.ne.s32.totalorder %s16_s10, %s345_s20  ;;  %p351_p5 = scmp.lt.s32.totalorder %s345_s20, %s345_s20 }
   0xc   :  { %p352_p6 = por %p351_p5, %p350_p4 }
   0xe   :  { %p353_p7 = pnand %p352_p6, %p346_p3 }
  0x10   :  { %356 = shalt.err (!%p353_p7)
}
  0x11   :  { %18 = dma.hbm_to_vmem [thread:$0]  %s440_s0, 32, %s16_s10, [#allocation3]  }
  0x12   :  { %s357_s25 = scalar_lea.hbm %s441_s1, 512 }
  0x13   :  { %p358_p8 = scmp.ne.s32.totalorder %s441_s1, %s357_s25  ;;  %p361_p9 = scmp.lt.u32.totalorder %s357_s25, %s441_s1 }
  0x15   :  { %p363_p10 = pnand %p361_p9, %p358_p8 }
  0x17   :  { %366 = shalt.err (!%p363_p10)
}
  0x18   :  { %s367_s30 = scalar_lea.vmem %s26_s12, 512  ;;  %p372_p12 = scmp.lt.s32.totalorder %s26_s12, %s26_s12 }
  0x19   :  { %p368_p11 = scmp.ne.s32.totalorder %s26_s12, %s367_s30  ;;  %p373_p13 = scmp.lt.s32.totalorder %s367_s30, %s367_s30 }
  0x1b   :  { %p374_p0 = por %p373_p13, %p372_p12 }
  0x1d   :  { %p375_p1 = pnand %p374_p0, %p368_p11 }
  0x1f   :  { %378 = shalt.err (!%p375_p1)
}
  0x20   :  { %28 = dma.hbm_to_vmem [thread:$0]  %s441_s1, 512, %s26_s12, [#allocation5]  }
  0x21   :  { %379 = dma.done.wait [#allocation3], 32  }
  0x22   :  { %380 = vsyncadd [#allocation3], 4294967264 }
  0x23   :  { %381 = dma.done.wait [#allocation5], 512  }
  0x24   :  { %382 = vsyncadd [#allocation5], 4294966784  ;;  %v385_v0 = vmov 0   ;;  %v38_v1 = vld [vmem:[#allocation4] sm:$0xff]  ;;  %vm66_vm0 = vcmask 1043456   ;;  %v39_v2 = vld [vmem:[#allocation4 + $0x8] sm:$0xff]  ;;  %v268_v21 = vlaneseq }
  0x25   :  { %123 = vmatprep.mubr.bf16.mxu0 %v385_v0  ;;  %164 = vmatprep.mubr.bf16.mxu1 %v385_v0  ;;  %v36_v3 = vld [vmem:[#allocation2] sm:$0x3]  ;;  %v308_v4 = vcombine.high %v38_v1, %v38_v1  ;;  %v310_v5 = vcombine.high %v39_v2, %v39_v2  ;;  %v307_v6 = vcombine.low %v38_v1, %v38_v1  ;;  %v40_v8 = vld [vmem:[#allocation4 + $0x10] sm:$0xff]  ;;  %vm62_vm1 = vcmask 64512  }
  0x26   :  { %v309_v7 = vcombine.low %v39_v2, %v39_v2  ;;  %v41_v9 = vld [vmem:[#allocation4 + $0x18] sm:$0xff]  ;;  %v312_v10 = vcombine.high %v40_v8, %v40_v8  ;;  %v311_v12 = vcombine.low %v40_v8, %v40_v8  ;;  %v37_v15 = vpack.c.bf16 %v36_v3, %v36_v3 }
  0x27   :  { %v314_v11 = vcombine.high %v41_v9, %v41_v9  ;;  %315 = vmatprep.subr.msk.bf16.mxu0 %vm66_vm0, %v308_v4  ;;  %317 = vmatprep.subr.msk.bf16.mxu1 %vm66_vm0, %v310_v5  ;;  %v68_v13 = vsel %vm66_vm0, %v307_v6, 0  ;;  %v313_v16 = vcombine.low %v41_v9, %v41_v9  ;;  %v386_v19 = vmov 1983009808  }
  0x28   :  { %v74_v14 = vsel %vm66_vm0, %v309_v7, 0  ;;  %92 = vmatpush1.bf16.msra.mxu0 %v68_v13  ;;  %v80_v17 = vsel %vm66_vm0, %v311_v12, 0  ;;  %v266_v20 = vunpack.c.l.s4 %v386_v19  ;;  %v269_v23 = vshrl.u32 %v268_v21, 7 }
  0x29   :  { %133 = vmatpush1.bf16.msra.mxu1 %v74_v14  ;;  %319 = vmatprep.subr.msk.bf16.mxu0 %vm66_vm0, %v312_v10  ;;  %v86_v18 = vsel %vm66_vm0, %v313_v16, 0 }
  0x2a   :  { %321 = vmatprep.subr.msk.bf16.mxu1 %vm66_vm0, %v314_v11  ;;  %v267_v22 = vunpack.c.0.s8 %v266_v20 }
  0x2b   :  { %316 = vmatmul.mubr.msk.bf16.vlgmr.msra.gmra.mrb[0].mxu0 %vm62_vm1, %v37_v15 }
  0x2c   :  { %318 = vmatmul.mubr.msk.bf16.vlgmr.msra.gmra.mrb[0].mxu1 %vm62_vm1, %v37_v15  ;;  %174 = vmatpush1.bf16.msra.mxu0 %v80_v17  ;;  %v270_v26 = vsub.s32 %v267_v22, %v269_v23 }
  0x2d   :  { %215 = vmatpush1.bf16.msra.mxu1 %v86_v18  ;;  %205 = vmatprep.mubr.bf16.mxu0 %v385_v0 }
  0x2e   :  { %246 = vmatprep.mubr.bf16.mxu1 %v385_v0 }
  0x33   :  { %320 = vmatmul.mubr.msk.bf16.vlgmr.msra.gmra.mrb[4].mxu0 %vm62_vm1, %v37_v15 }
  0x34   :  { %322 = vmatmul.mubr.msk.bf16.vlgmr.msra.gmra.mrb[4].mxu1 %vm62_vm1, %v37_v15 }
  0xfe   :  { %v125_v24 = vpop.f32.mrb[0].mxu0 }
  0xff   :  { %v166_v25 = vpop.f32.mrb[0].mxu1  ;;  %v127_v27 = vpop.f32.mrb[1].mxu0 }
 0x100   :  { %v168_v28 = vpop.f32.mrb[1].mxu1  ;;  %v263_v29 = vcombine.low %v125_v24, %v127_v27  ;;  %v129_v31 = vpop.f32.mrb[2].mxu0 }
 0x101   :  { %v264_v30 = vcombine.low %v166_v25, %v168_v28  ;;  %v170_v32 = vpop.f32.mrb[2].mxu1  ;;  %v130_v33 = vpop.f32.mrb[3].mxu0 }
 0x102   :  { %v171_v34 = vpop.f32.mrb[3].mxu1  ;;  %v271_v35 = vrot.slane %v263_v29, %v270_v26 }
 0x103   :  { %v278_v36 = vrot.slane %v264_v30, %v270_v26 }
 0x105   :  { %v279_v37 = vcombine.low %v271_v35, %v278_v36 }
 0x106   :  { %v207_v38 = vpop.f32.mrb[4].mxu0 }
 0x107   :  { %299 = vst [vmem:[%s442_s2] sm:$0xff] %v279_v37  ;;  %v248_v39 = vpop.f32.mrb[4].mxu1  ;;  %v209_v40 = vpop.f32.mrb[5].mxu0 }
 0x108   :  { %v250_v41 = vpop.f32.mrb[5].mxu1  ;;  %v280_v42 = vcombine.low %v207_v38, %v209_v40  ;;  %v211_v44 = vpop.f32.mrb[6].mxu0 }
 0x109   :  { %v281_v43 = vcombine.low %v248_v39, %v250_v41  ;;  %v252_v45 = vpop.f32.mrb[6].mxu1  ;;  %v212_v46 = vpop.f32.mrb[7].mxu0 }
 0x10a   :  { %v253_v47 = vpop.f32.mrb[7].mxu1  ;;  %v288_v48 = vrot.slane %v280_v42, %v270_v26 }
 0x10b   :  { %v295_v49 = vrot.slane %v281_v43, %v270_v26 }
 0x10d   :  { %v296_v50 = vcombine.low %v288_v48, %v295_v49 }
 0x10f   :  { %300 = vst [vmem:[%s442_s2 + $0x8] sm:$0xff] %v296_v50 }
 0x110   :  { %305 = vsyncpa [#allocation3], 1 }
 0x111   :  { %306 = vsyncpa [#allocation5], 1 }

// kernel: generator_forward.12
= control target key start
LH: loop header
LB: loop body
LE: loop exit
PB: predicated region body
PF: predicated region fallthrough
CT: control target
= control target key end

     0   :  { %9 = vsyncpa [#allocation3], 0  ;;  %s368_s15 = smov [#allocation2]   ;;  %s475_s0 = inlined_call_operand.vmem [shape: f32[32,64], index: 0, kind: input, shape index: {}]   ;;  %s476_s1 = inlined_call_operand.vmem [shape: f32[1,64], index: 1, kind: input, shape index: {}]   ;;  %s477_s2 = inlined_call_operand.vmem [shape: f32[1,64], index: 2, kind: input, shape index: {}]   ;;  %s478_s3 = inlined_call_operand.hbm [shape: bf16[64,512], index: 3, kind: input, shape index: {}]   ;;  %s479_s4 = inlined_call_operand.vmem [shape: f32[32,512], index: 4, kind: output, shape index: {}]  }
   0x1   :  { %s21_s16 = sshll.u32 %s368_s15, 4  ;;  %s344_s19 = scalar_lea.hbm %s478_s3, 2048  ;;  %s22_s16 = int_to_ptr.vmem [resolvable:$true] %s21_s16 }
   0x2   :  { %p345_p0 = scmp.ne.s32.totalorder %s478_s3, %s344_s19  ;;  %p348_p1 = scmp.lt.u32.totalorder %s344_s19, %s478_s3 }
   0x4   :  { %p350_p2 = pnand %p348_p1, %p345_p0 }
   0x6   :  { %353 = shalt.err (!%p350_p2)
}
   0x7   :  { %s354_s24 = scalar_lea.vmem %s22_s16, 2048  ;;  %p359_p4 = scmp.lt.s32.totalorder %s22_s16, %s22_s16 }
   0x8   :  { %p355_p3 = scmp.ne.s32.totalorder %s22_s16, %s354_s24  ;;  %p360_p5 = scmp.lt.s32.totalorder %s354_s24, %s354_s24 }
   0xa   :  { %p361_p6 = por %p360_p5, %p359_p4 }
   0xc   :  { %p362_p7 = pnand %p361_p6, %p355_p3 }
   0xe   :  { %365 = shalt.err (!%p362_p7)
}
   0xf   :  { %s369_s25 = smov 256   ;;  %s370_s26 = smov 16  }
  0x10   :  { %27 = dma.hbm_to_vmem [thread:$0]  %s478_s3, 2048, %s22_s16, [#allocation3], %s369_s25, %s369_s25, %s370_s26  }
  0x11   :  { %366 = dma.done.wait [#allocation3], 2048  }
  0x12   :  { %367 = vsyncadd [#allocation3], 4294965248  ;;  %v371_v0 = vmov 0   ;;  %v320_v1 = vld [vmem:[#allocation2 + $0x4] ss:$16 sps:$4 sm:$0xff]   ;;  %v33_v17 = vld [vmem:[%s475_s0 + $0x8] sm:$0xff] }
  0x13   :  { %199 = vmatprep.mubr.bf16.mxu0 %v371_v0  ;;  %252 = vmatprep.mubr.bf16.mxu1 %v371_v0  ;;  %v322_v2 = vld [vmem:[#allocation2 + $0xc] ss:$16 sps:$4 sm:$0xff]   ;;  %v324_v3 = vld [vmem:[#allocation2] ss:$16 sps:$4 sm:$0xff]   ;;  %v325_v4 = vld [vmem:[#allocation2 + $0x8] ss:$16 sps:$4 sm:$0xff]  }
  0x14   :  { %167 = vmatprep.subr.bf16.mxu0 %v320_v1  ;;  %220 = vmatprep.subr.bf16.mxu1 %v322_v2  ;;  %v326_v5 = vld [vmem:[#allocation2 + $0x24] ss:$16 sps:$4 sm:$0xff]   ;;  %v328_v6 = vld [vmem:[#allocation2 + $0x2c] ss:$16 sps:$4 sm:$0xff]   ;;  %v330_v7 = vld [vmem:[#allocation2 + $0x20] ss:$16 sps:$4 sm:$0xff]  }
  0x15   :  { %168 = vmatpush1.bf16.msra.mxu0 %v324_v3  ;;  %221 = vmatpush1.bf16.msra.mxu1 %v325_v4  ;;  %v331_v8 = vld [vmem:[#allocation2 + $0x28] ss:$16 sps:$4 sm:$0xff]   ;;  %v332_v9 = vld [vmem:[#allocation2 + $0x44] ss:$16 sps:$4 sm:$0xff]   ;;  %v334_v10 = vld [vmem:[#allocation2 + $0x4c] ss:$16 sps:$4 sm:$0xff]  }
  0x16   :  { %169 = vmatprep.subr.bf16.mxu0 %v326_v5  ;;  %222 = vmatprep.subr.bf16.mxu1 %v328_v6  ;;  %v336_v11 = vld [vmem:[#allocation2 + $0x40] ss:$16 sps:$4 sm:$0xff]   ;;  %v337_v12 = vld [vmem:[#allocation2 + $0x48] ss:$16 sps:$4 sm:$0xff]   ;;  %v338_v13 = vld [vmem:[#allocation2 + $0x64] ss:$16 sps:$4 sm:$0xff]  }
  0x17   :  { %v340_v14 = vld [vmem:[#allocation2 + $0x6c] ss:$16 sps:$4 sm:$0xff]   ;;  %v342_v15 = vld [vmem:[#allocation2 + $0x60] ss:$16 sps:$4 sm:$0xff]   ;;  %v343_v20 = vld [vmem:[#allocation2 + $0x68] ss:$16 sps:$4 sm:$0xff]  }
  0x18   :  { %v32_v16 = vld [vmem:[%s475_s0] sm:$0xff]  ;;  %v34_v23 = vld [vmem:[%s475_s0 + $0x10] sm:$0xff]  ;;  %v35_v24 = vld [vmem:[%s475_s0 + $0x18] sm:$0xff]  ;;  %vm160_vm0 = vcmask 523264  }
  0x19   :  { %170 = vmatpush1.bf16.msra.mxu0 %v330_v7  ;;  %223 = vmatpush1.bf16.msra.mxu1 %v331_v8  ;;  %v294_v18 = vld [vmem:[%s476_s1] ss:$0 sm:$0xff] }
  0x1a   :  { %171 = vmatprep.subr.bf16.mxu0 %v332_v9  ;;  %224 = vmatprep.subr.bf16.mxu1 %v334_v10  ;;  %v295_v19 = vld [vmem:[%s477_s2] ss:$0 sm:$0xff]  ;;  %v43_v21 = vmul.f32 %v294_v18, %v32_v16  ;;  %v44_v22 = vmul.f32 %v294_v18, %v33_v17  ;;  %v45_v25 = vmul.f32 %v294_v18, %v34_v23 }
  0x1b   :  { %v46_v26 = vmul.f32 %v294_v18, %v35_v24 }
  0x1c   :  { %v54_v27 = vadd.f32 %v295_v19, %v43_v21  ;;  %v55_v28 = vadd.f32 %v295_v19, %v44_v22  ;;  %v56_v31 = vadd.f32 %v295_v19, %v45_v25 }
  0x1d   :  { %172 = vmatpush1.bf16.msra.mxu0 %v336_v11  ;;  %225 = vmatpush1.bf16.msra.mxu1 %v337_v12  ;;  %v57_v32 = vadd.f32 %v295_v19, %v46_v26 }
  0x1e   :  { %173 = vmatprep.subr.bf16.mxu0 %v338_v13  ;;  %226 = vmatprep.subr.bf16.mxu1 %v340_v14  ;;  %v58_v29 = vmax.f32 %v54_v27, 0.0  ;;  %v59_v30 = vmax.f32 %v55_v28, 0.0  ;;  %v60_v34 = vmax.f32 %v56_v31, 0.0 }
  0x1f   :  { %v61_v35 = vmax.f32 %v57_v32, 0.0 }
  0x20   :  { %v62_v33 = vpack.c.bf16 %v59_v30, %v58_v29 }
  0x21   :  { %174 = vmatpush1.bf16.msra.mxu0 %v342_v15  ;;  %227 = vmatpush1.bf16.msra.mxu1 %v343_v20  ;;  %v63_v36 = vpack.c.bf16 %v61_v35, %v60_v34 }
  0x24   :  { %312 = vmatmul.mubr.msk.bf16.vlgmr.msra.gmra.mrb[0].mxu0 %vm160_vm0, %v62_v33  ;;  %314 = vmatmul.mubr.msk.bf16.vlgmr.msra.gmra.mrb[0].mxu1 %vm160_vm0, %v62_v33 }
  0x25   :  { %209 = vmatprep.mubr.bf16.mxu0 %v371_v0  ;;  %262 = vmatprep.mubr.bf16.mxu1 %v371_v0 }
  0x2c   :  { %313 = vmatmul.mubr.msk.bf16.gmra.mrb[4].mxu0 %vm160_vm0, %v63_v36  ;;  %315 = vmatmul.mubr.msk.bf16.gmra.mrb[4].mxu1 %vm160_vm0, %v63_v36 }
  0xf7   :  { %v201_v37 = vpop.f32.mrb[0].mxu0  ;;  %v254_v38 = vpop.f32.mrb[0].mxu1 }
  0xf8   :  { %273 = vst [vmem:[%s479_s4] sm:$0xff] %v201_v37  ;;  %275 = vst [vmem:[%s479_s4 + $0x10] sm:$0xff] %v254_v38  ;;  %v203_v39 = vpop.f32.mrb[1].mxu0  ;;  %v256_v40 = vpop.f32.mrb[1].mxu1 }
  0xf9   :  { %274 = vst [vmem:[%s479_s4 + $0x8] sm:$0xff] %v203_v39  ;;  %276 = vst [vmem:[%s479_s4 + $0x18] sm:$0xff] %v256_v40  ;;  %v205_v41 = vpop.f32.mrb[2].mxu0  ;;  %v258_v42 = vpop.f32.mrb[2].mxu1 }
  0xfa   :  { %277 = vst [vmem:[%s479_s4 + $0x20] sm:$0xff] %v205_v41  ;;  %279 = vst [vmem:[%s479_s4 + $0x30] sm:$0xff] %v258_v42  ;;  %v207_v43 = vpop.f32.mrb[3].mxu0  ;;  %v260_v44 = vpop.f32.mrb[3].mxu1 }
  0xfb   :  { %278 = vst [vmem:[%s479_s4 + $0x28] sm:$0xff] %v207_v43  ;;  %280 = vst [vmem:[%s479_s4 + $0x38] sm:$0xff] %v260_v44 }
  0xff   :  { %v211_v45 = vpop.f32.mrb[4].mxu0  ;;  %v264_v46 = vpop.f32.mrb[4].mxu1 }
 0x100   :  { %281 = vst [vmem:[%s479_s4 + $0x40] sm:$0xff] %v211_v45  ;;  %283 = vst [vmem:[%s479_s4 + $0x50] sm:$0xff] %v264_v46  ;;  %v213_v47 = vpop.f32.mrb[5].mxu0  ;;  %v266_v48 = vpop.f32.mrb[5].mxu1 }
 0x101   :  { %282 = vst [vmem:[%s479_s4 + $0x48] sm:$0xff] %v213_v47  ;;  %284 = vst [vmem:[%s479_s4 + $0x58] sm:$0xff] %v266_v48  ;;  %v215_v49 = vpop.f32.mrb[6].mxu0  ;;  %v268_v50 = vpop.f32.mrb[6].mxu1 }
 0x102   :  { %285 = vst [vmem:[%s479_s4 + $0x60] sm:$0xff] %v215_v49  ;;  %287 = vst [vmem:[%s479_s4 + $0x70] sm:$0xff] %v268_v50  ;;  %v217_v51 = vpop.f32.mrb[7].mxu0  ;;  %v270_v52 = vpop.f32.mrb[7].mxu1 }
 0x103   :  { %286 = vst [vmem:[%s479_s4 + $0x68] sm:$0xff] %v217_v51  ;;  %288 = vst [vmem:[%s479_s4 + $0x78] sm:$0xff] %v270_v52 }
 0x104   :  { %293 = vsyncpa [#allocation3], 1 }

// kernel: generator_forward.13
= control target key start
LH: loop header
LB: loop body
LE: loop exit
PB: predicated region body
PF: predicated region fallthrough
CT: control target
= control target key end

     0   :  { %s73_s0 = inlined_call_operand.vmem [shape: f32[16,256], index: 0, kind: input, shape index: {}]   ;;  %s74_s1 = inlined_call_operand.vmem [shape: f32[8,256], index: 1, kind: output, shape index: {0}]   ;;  %s75_s2 = inlined_call_operand.vmem [shape: f32[8,256], index: 2, kind: output, shape index: {1}]  }
   0x1   :  { %v10_v0 = vld [vmem:[%s73_s0] sm:$0xff]  ;;  %v12_v1 = vld [vmem:[%s73_s0 + $0x10] sm:$0xff]  ;;  %v11_v2 = vld [vmem:[%s73_s0 + $0x8] sm:$0xff] }
   0x2   :  { %v14_v3 = vadd.f32 %v12_v1, %v10_v0  ;;  %v13_v4 = vld [vmem:[%s73_s0 + $0x18] sm:$0xff]  ;;  %v18_v5 = vmul.f32 %v10_v0, %v10_v0  ;;  %v20_v6 = vmul.f32 %v12_v1, %v12_v1  ;;  %v19_v7 = vmul.f32 %v11_v2, %v11_v2 }
   0x3   :  { %v15_v8 = vadd.f32 %v13_v4, %v11_v2  ;;  %v21_v9 = vmul.f32 %v13_v4, %v13_v4 }
   0x4   :  { %16 = vst [vmem:[%s74_s1] sm:$0xff] %v14_v3  ;;  %v22_v10 = vadd.f32 %v20_v6, %v18_v5 }
   0x5   :  { %17 = vst [vmem:[%s74_s1 + $0x8] sm:$0xff] %v15_v8  ;;  %v23_v11 = vadd.f32 %v21_v9, %v19_v7 }
   0x6   :  { %24 = vst [vmem:[%s75_s2] sm:$0xff] %v22_v10 }
   0x7   :  { %25 = vst [vmem:[%s75_s2 + $0x8] sm:$0xff] %v23_v11 }

// kernel: generator_forward.14
= control target key start
LH: loop header
LB: loop body
LE: loop exit
PB: predicated region body
PF: predicated region fallthrough
CT: control target
= control target key end

     0   :  { %v327_v1 = vmov 0   ;;  %vm128_vm0 = vcmask 261120   ;;  %s567_s3 = inlined_call_operand.vmem [shape: bf16[32,256], index: 3, kind: input, shape index: {}]   ;;  %s568_s0 = inlined_call_operand.vmem [shape: f32[128,32], index: 0, kind: input, shape index: {}]   ;;  %s569_s1 = inlined_call_operand.vmem [shape: f32[1,32], index: 1, kind: input, shape index: {}]   ;;  %s570_s2 = inlined_call_operand.vmem [shape: f32[1,32], index: 2, kind: input, shape index: {}]   ;;  %s571_s4 = inlined_call_operand.vmem [shape: f32[128,256], index: 4, kind: output, shape index: {}]  }
   0x1   :  { %v321_v0 = vld [vmem:[%s567_s3 + $0x4] ss:$8 sps:$4 sm:$0xff]   ;;  %185 = vmatprep.mubr.bf16.mxu0 %v327_v1  ;;  %225 = vmatprep.mubr.bf16.mxu1 %v327_v1  ;;  %v323_v2 = vld [vmem:[%s567_s3] ss:$8 sps:$4 sm:$0xff]   ;;  %v324_v3 = vld [vmem:[%s567_s3 + $0x14] ss:$8 sps:$4 sm:$0xff]  }
   0x2   :  { %153 = vmatprep.subr.bf16.mxu0 %v321_v0  ;;  %316 = vmatprep.subr.bf16.mxu1 %v321_v0  ;;  %v326_v4 = vld [vmem:[%s567_s3 + $0x10] ss:$8 sps:$4 sm:$0xff]   ;;  %v18_v5 = vld [vmem:[%s568_s0] sm:$0xff]  ;;  %v19_v6 = vld [vmem:[%s568_s0 + $0x8] sm:$0xff] }
   0x3   :  { %154 = vmatpush1.bf16.msra.mxu0 %v323_v2  ;;  %318 = vmatpush1.bf16.msra.mxu1 %v323_v2  ;;  %v376_v7 = vld [vmem:[%s569_s1] ss:$0 sm:$0xff]  ;;  %v27_v12 = vld [vmem:[%s568_s0 + $0x48] sm:$0xff]  ;;  %v20_v13 = vld [vmem:[%s568_s0 + $0x10] sm:$0xff] }
   0x4   :  { %v381_v8 = vld [vmem:[%s570_s2] ss:$0 sm:$0xff]  ;;  %155 = vmatprep.subr.bf16.mxu0 %v324_v3  ;;  %317 = vmatprep.subr.bf16.mxu1 %v324_v3  ;;  %v41_v9 = vmul.f32 %v376_v7, %v18_v5  ;;  %v42_v10 = vmul.f32 %v376_v7, %v19_v6  ;;  %v50_v15 = vmul.f32 %v376_v7, %v27_v12  ;;  %v21_v16 = vld [vmem:[%s568_s0 + $0x18] sm:$0xff]  ;;  %v28_v18 = vld [vmem:[%s568_s0 + $0x50] sm:$0xff] }
   0x5   :  { %v26_v11 = vld [vmem:[%s568_s0 + $0x40] sm:$0xff]  ;;  %v43_v17 = vmul.f32 %v376_v7, %v20_v13  ;;  %v29_v19 = vld [vmem:[%s568_s0 + $0x58] sm:$0xff]  ;;  %v44_v22 = vmul.f32 %v376_v7, %v21_v16  ;;  %v51_v23 = vmul.f32 %v376_v7, %v28_v18  ;;  %v23_v35 = vld [vmem:[%s568_s0 + $0x28] sm:$0xff] }
   0x6   :  { %v49_v14 = vmul.f32 %v376_v7, %v26_v11  ;;  %v64_v20 = vadd.f32 %v381_v8, %v41_v9  ;;  %v65_v21 = vadd.f32 %v381_v8, %v42_v10  ;;  %v73_v25 = vadd.f32 %v381_v8, %v50_v15  ;;  %v22_v34 = vld [vmem:[%s568_s0 + $0x20] sm:$0xff]  ;;  %v31_v39 = vld [vmem:[%s568_s0 + $0x68] sm:$0xff]  ;;  %v24_v55 = vld [vmem:[%s568_s0 + $0x30] sm:$0xff] }
   0x7   :  { %156 = vmatpush1.bf16.msra.mxu0 %v326_v4  ;;  %319 = vmatpush1.bf16.msra.mxu1 %v326_v4  ;;  %v66_v26 = vadd.f32 %v381_v8, %v43_v17  ;;  %v67_v29 = vadd.f32 %v381_v8, %v44_v22  ;;  %v52_v30 = vmul.f32 %v376_v7, %v29_v19  ;;  %v30_v38 = vld [vmem:[%s568_s0 + $0x60] sm:$0xff]  ;;  %v25_v56 = vld [vmem:[%s568_s0 + $0x38] sm:$0xff]  ;;  %v32_v57 = vld [vmem:[%s568_s0 + $0x70] sm:$0xff] }
   0x8   :  { %v72_v24 = vadd.f32 %v381_v8, %v49_v14  ;;  %v80_v27 = vmax.f32 %v64_v20, 0.0  ;;  %v81_v28 = vmax.f32 %v65_v21, 0.0  ;;  %v89_v32 = vmax.f32 %v73_v25, 0.0  ;;  %v33_v58 = vld [vmem:[%s568_s0 + $0x78] sm:$0xff] }
   0x9   :  { %v74_v33 = vadd.f32 %v381_v8, %v51_v23  ;;  %v75_v37 = vadd.f32 %v381_v8, %v52_v30  ;;  %v82_v41 = vmax.f32 %v66_v26, 0.0  ;;  %v83_v42 = vmax.f32 %v67_v29, 0.0 }
   0xa   :  { %v88_v31 = vmax.f32 %v72_v24, 0.0  ;;  %v96_v36 = vpack.c.bf16 %v81_v28, %v80_v27  ;;  %v45_v43 = vmul.f32 %v376_v7, %v22_v34  ;;  %v46_v44 = vmul.f32 %v376_v7, %v23_v35 }
   0xb   :  { %v90_v45 = vmax.f32 %v74_v33, 0.0  ;;  %v91_v46 = vmax.f32 %v75_v37, 0.0  ;;  %v53_v47 = vmul.f32 %v376_v7, %v30_v38  ;;  %v54_v48 = vmul.f32 %v376_v7, %v31_v39 }
   0xc   :  { %v100_v40 = vpack.c.bf16 %v89_v32, %v88_v31  ;;  %308 = vmatmul.mubr.msk.bf16.vlgmr.msra.gmra.mrb[0].mxu0 %vm128_vm0, %v96_v36  ;;  %v97_v49 = vpack.c.bf16 %v83_v42, %v82_v41  ;;  %v68_v50 = vadd.f32 %v381_v8, %v45_v43  ;;  %v69_v51 = vadd.f32 %v381_v8, %v46_v44 }
   0xd   :  { %195 = vmatprep.mubr.bf16.mxu0 %v327_v1  ;;  %v101_v52 = vpack.c.bf16 %v91_v46, %v90_v45  ;;  %v76_v53 = vadd.f32 %v381_v8, %v53_v47  ;;  %v77_v54 = vadd.f32 %v381_v8, %v54_v48  ;;  %v47_v61 = vmul.f32 %v376_v7, %v24_v55 }
   0xe   :  { %312 = vmatmul.mubr.msk.bf16.vlgmr.msra.gmra.mrb[0].mxu1 %vm128_vm0, %v100_v40  ;;  %v84_v59 = vmax.f32 %v68_v50, 0.0  ;;  %v85_v60 = vmax.f32 %v69_v51, 0.0  ;;  %v48_v62 = vmul.f32 %v376_v7, %v25_v56  ;;  %v55_v2 = vmul.f32 %v376_v7, %v32_v57 }
   0xf   :  { %235 = vmatprep.mubr.bf16.mxu1 %v327_v1  ;;  %v92_v63 = vmax.f32 %v76_v53, 0.0  ;;  %v93_v0 = vmax.f32 %v77_v54, 0.0  ;;  %v56_v3 = vmul.f32 %v376_v7, %v33_v58  ;;  %v70_v5 = vadd.f32 %v381_v8, %v47_v61 }
  0x10   :  { %v98_v4 = vpack.c.bf16 %v85_v60, %v84_v59  ;;  %v71_v6 = vadd.f32 %v381_v8, %v48_v62  ;;  %v78_v10 = vadd.f32 %v381_v8, %v55_v2 }
  0x11   :  { %v102_v9 = vpack.c.bf16 %v93_v0, %v92_v63  ;;  %v79_v11 = vadd.f32 %v381_v8, %v56_v3  ;;  %v86_v12 = vmax.f32 %v70_v5, 0.0 }
  0x12   :  { %v87_v13 = vmax.f32 %v71_v6, 0.0  ;;  %v94_v7 = vmax.f32 %v78_v10, 0.0 }
  0x13   :  { %v95_v14 = vmax.f32 %v79_v11, 0.0 }
  0x14   :  { %309 = vmatmul.mubr.msk.bf16.gmra.mrb[4].mxu0 %vm128_vm0, %v97_v49  ;;  %v99_v15 = vpack.c.bf16 %v87_v13, %v86_v12 }
  0x15   :  { %205 = vmatprep.mubr.bf16.mxu0 %v327_v1  ;;  %v103_v16 = vpack.c.bf16 %v95_v14, %v94_v7 }
  0x16   :  { %313 = vmatmul.mubr.msk.bf16.gmra.mrb[4].mxu1 %vm128_vm0, %v101_v52 }
  0x17   :  { %245 = vmatprep.mubr.bf16.mxu1 %v327_v1 }
  0x1c   :  { %310 = vmatmul.mubr.msk.bf16.gmra.mrb[8].mxu0 %vm128_vm0, %v98_v4 }
  0x1d   :  { %215 = vmatprep.mubr.bf16.mxu0 %v327_v1 }
  0x1e   :  { %314 = vmatmul.mubr.msk.bf16.gmra.mrb[8].mxu1 %vm128_vm0, %v102_v9 }
  0x1f   :  { %255 = vmatprep.mubr.bf16.mxu1 %v327_v1 }
  0x24   :  { %311 = vmatmul.mubr.msk.bf16.gmra.mrb[12].mxu0 %vm128_vm0, %v99_v15 }
  0x26   :  { %315 = vmatmul.mubr.msk.bf16.gmra.mrb[12].mxu1 %vm128_vm0, %v103_v16 }
  0xdf   :  { %v187_v17 = vpop.f32.mrb[0].mxu0 }
  0xe0   :  { %266 = vst [vmem:[%s571_s4] sm:$0xff] %v187_v17  ;;  %v189_v18 = vpop.f32.mrb[1].mxu0 }
  0xe1   :  { %v227_v8 = vpop.f32.mrb[0].mxu1  ;;  %267 = vst [vmem:[%s571_s4 + $0x8] sm:$0xff] %v189_v18  ;;  %v191_v19 = vpop.f32.mrb[2].mxu0 }
  0xe2   :  { %282 = vst [vmem:[%s571_s4 + $0x80] sm:$0xff] %v227_v8  ;;  %v229_v1 = vpop.f32.mrb[1].mxu1  ;;  %268 = vst [vmem:[%s571_s4 + $0x10] sm:$0xff] %v191_v19  ;;  %v193_v21 = vpop.f32.mrb[3].mxu0 }
  0xe3   :  { %283 = vst [vmem:[%s571_s4 + $0x88] sm:$0xff] %v229_v1  ;;  %v231_v20 = vpop.f32.mrb[2].mxu1  ;;  %269 = vst [vmem:[%s571_s4 + $0x18] sm:$0xff] %v193_v21 }
  0xe4   :  { %284 = vst [vmem:[%s571_s4 + $0x90] sm:$0xff] %v231_v20  ;;  %v233_v22 = vpop.f32.mrb[3].mxu1 }
  0xe5   :  { %285 = vst [vmem:[%s571_s4 + $0x98] sm:$0xff] %v233_v22 }
  0xe7   :  { %v197_v23 = vpop.f32.mrb[4].mxu0 }
  0xe8   :  { %270 = vst [vmem:[%s571_s4 + $0x20] sm:$0xff] %v197_v23  ;;  %v199_v25 = vpop.f32.mrb[5].mxu0 }
  0xe9   :  { %v237_v24 = vpop.f32.mrb[4].mxu1  ;;  %271 = vst [vmem:[%s571_s4 + $0x28] sm:$0xff] %v199_v25  ;;  %v201_v27 = vpop.f32.mrb[6].mxu0 }
  0xea   :  { %286 = vst [vmem:[%s571_s4 + $0xa0] sm:$0xff] %v237_v24  ;;  %v239_v26 = vpop.f32.mrb[5].mxu1  ;;  %272 = vst [vmem:[%s571_s4 + $0x30] sm:$0xff] %v201_v27  ;;  %v203_v29 = vpop.f32.mrb[7].mxu0 }
  0xeb   :  { %287 = vst [vmem:[%s571_s4 + $0xa8] sm:$0xff] %v239_v26  ;;  %v241_v28 = vpop.f32.mrb[6].mxu1  ;;  %273 = vst [vmem:[%s571_s4 + $0x38] sm:$0xff] %v203_v29 }
  0xec   :  { %288 = vst [vmem:[%s571_s4 + $0xb0] sm:$0xff] %v241_v28  ;;  %v243_v30 = vpop.f32.mrb[7].mxu1 }
  0xed   :  { %289 = vst [vmem:[%s571_s4 + $0xb8] sm:$0xff] %v243_v30 }
  0xef   :  { %v207_v31 = vpop.f32.mrb[8].mxu0 }
  0xf0   :  { %274 = vst [vmem:[%s571_s4 + $0x40] sm:$0xff] %v207_v31  ;;  %v209_v33 = vpop.f32.mrb[9].mxu0 }
  0xf1   :  { %v247_v32 = vpop.f32.mrb[8].mxu1  ;;  %275 = vst [vmem:[%s571_s4 + $0x48] sm:$0xff] %v209_v33  ;;  %v211_v35 = vpop.f32.mrb[10].mxu0 }
  0xf2   :  { %290 = vst [vmem:[%s571_s4 + $0xc0] sm:$0xff] %v247_v32  ;;  %v249_v34 = vpop.f32.mrb[9].mxu1  ;;  %276 = vst [vmem:[%s571_s4 + $0x50] sm:$0xff] %v211_v35  ;;  %v213_v37 = vpop.f32.mrb[11].mxu0 }
  0xf3   :  { %291 = vst [vmem:[%s571_s4 + $0xc8] sm:$0xff] %v249_v34  ;;  %v251_v36 = vpop.f32.mrb[10].mxu1  ;;  %277 = vst [vmem:[%s571_s4 + $0x58] sm:$0xff] %v213_v37 }
  0xf4   :  { %292 = vst [vmem:[%s571_s4 + $0xd0] sm:$0xff] %v251_v36  ;;  %v253_v38 = vpop.f32.mrb[11].mxu1 }
  0xf5   :  { %293 = vst [vmem:[%s571_s4 + $0xd8] sm:$0xff] %v253_v38 }
  0xf7   :  { %v217_v39 = vpop.f32.mrb[12].mxu0 }
  0xf8   :  { %278 = vst [vmem:[%s571_s4 + $0x60] sm:$0xff] %v217_v39  ;;  %v219_v41 = vpop.f32.mrb[13].mxu0 }
  0xf9   :  { %v257_v40 = vpop.f32.mrb[12].mxu1  ;;  %279 = vst [vmem:[%s571_s4 + $0x68] sm:$0xff] %v219_v41  ;;  %v221_v43 = vpop.f32.mrb[14].mxu0 }
  0xfa   :  { %294 = vst [vmem:[%s571_s4 + $0xe0] sm:$0xff] %v257_v40  ;;  %v259_v42 = vpop.f32.mrb[13].mxu1  ;;  %280 = vst [vmem:[%s571_s4 + $0x70] sm:$0xff] %v221_v43  ;;  %v223_v45 = vpop.f32.mrb[15].mxu0 }
  0xfb   :  { %295 = vst [vmem:[%s571_s4 + $0xe8] sm:$0xff] %v259_v42  ;;  %v261_v44 = vpop.f32.mrb[14].mxu1  ;;  %281 = vst [vmem:[%s571_s4 + $0x78] sm:$0xff] %v223_v45 }
  0xfc   :  { %296 = vst [vmem:[%s571_s4 + $0xf0] sm:$0xff] %v261_v44  ;;  %v263_v46 = vpop.f32.mrb[15].mxu1 }
  0xfd   :  { %297 = vst [vmem:[%s571_s4 + $0xf8] sm:$0xff] %v263_v46 }

// kernel: generator_forward.15
= control target key start
LH: loop header
LB: loop body
LE: loop exit
PB: predicated region body
PF: predicated region fallthrough
CT: control target
= control target key end

     0   :  { %s101_s0 = inlined_call_operand.vmem [shape: f32[32,256], index: 0, kind: input, shape index: {}]   ;;  %s102_s1 = inlined_call_operand.vmem [shape: f32[8,256], index: 1, kind: output, shape index: {0}]   ;;  %s103_s2 = inlined_call_operand.vmem [shape: f32[8,256], index: 2, kind: output, shape index: {1}]  }
   0x1   :  { %v10_v0 = vld [vmem:[%s101_s0] sm:$0xff]  ;;  %v12_v1 = vld [vmem:[%s101_s0 + $0x10] sm:$0xff]  ;;  %v11_v5 = vld [vmem:[%s101_s0 + $0x8] sm:$0xff] }
   0x2   :  { %v14_v2 = vld [vmem:[%s101_s0 + $0x20] sm:$0xff]  ;;  %v16_v3 = vld [vmem:[%s101_s0 + $0x30] sm:$0xff]  ;;  %v18_v4 = vadd.f32 %v12_v1, %v10_v0  ;;  %v13_v6 = vld [vmem:[%s101_s0 + $0x18] sm:$0xff]  ;;  %v26_v7 = vmul.f32 %v10_v0, %v10_v0  ;;  %v28_v8 = vmul.f32 %v12_v1, %v12_v1  ;;  %v27_v13 = vmul.f32 %v11_v5, %v11_v5 }
   0x3   :  { %v30_v9 = vmul.f32 %v14_v2, %v14_v2  ;;  %v15_v10 = vld [vmem:[%s101_s0 + $0x28] sm:$0xff]  ;;  %v17_v11 = vld [vmem:[%s101_s0 + $0x38] sm:$0xff]  ;;  %v21_v12 = vadd.f32 %v13_v6, %v11_v5  ;;  %v29_v14 = vmul.f32 %v13_v6, %v13_v6  ;;  %v32_v16 = vmul.f32 %v16_v3, %v16_v3 }
   0x4   :  { %v19_v15 = vadd.f32 %v18_v4, %v14_v2  ;;  %v34_v17 = vadd.f32 %v28_v8, %v26_v7  ;;  %v31_v18 = vmul.f32 %v15_v10, %v15_v10  ;;  %v33_v20 = vmul.f32 %v17_v11, %v17_v11 }
   0x5   :  { %v22_v19 = vadd.f32 %v21_v12, %v15_v10  ;;  %v37_v21 = vadd.f32 %v29_v14, %v27_v13 }
   0x6   :  { %v20_v22 = vadd.f32 %v19_v15, %v16_v3  ;;  %v35_v23 = vadd.f32 %v34_v17, %v30_v9 }
   0x7   :  { %v23_v24 = vadd.f32 %v22_v19, %v17_v11  ;;  %v38_v25 = vadd.f32 %v37_v21, %v31_v18 }
   0x8   :  { %24 = vst [vmem:[%s102_s1] sm:$0xff] %v20_v22  ;;  %v36_v26 = vadd.f32 %v35_v23, %v32_v16 }
   0x9   :  { %25 = vst [vmem:[%s102_s1 + $0x8] sm:$0xff] %v23_v24  ;;  %v39_v27 = vadd.f32 %v38_v25, %v33_v20 }
   0xa   :  { %40 = vst [vmem:[%s103_s2] sm:$0xff] %v36_v26 }
   0xb   :  { %41 = vst [vmem:[%s103_s2 + $0x8] sm:$0xff] %v39_v27 }

// kernel: generator_forward.16
= control target key start
LH: loop header
LB: loop body
LE: loop exit
PB: predicated region body
PF: predicated region fallthrough
CT: control target
= control target key end

     0   :  { %vm328_vm0 = vcmask 130048   ;;  %s1501_s3 = inlined_call_operand.vmem [shape: bf16[16,128], index: 3, kind: input, shape index: {}]   ;;  %s1502_s0 = inlined_call_operand.vmem [shape: f32[512,16], index: 0, kind: input, shape index: {}]   ;;  %s1503_s1 = inlined_call_operand.vmem [shape: f32[1,16], index: 1, kind: input, shape index: {}]   ;;  %s1504_s2 = inlined_call_operand.vmem [shape: f32[1,16], index: 2, kind: input, shape index: {}]   ;;  %s1505_s4 = inlined_call_operand.vmem [shape: f32[512,128], index: 4, kind: output, shape index: {}]  }
   0x1   :  { %v918_v0 = vld [vmem:[%s1501_s3] sm:$0xff]   ;;  %v19_v2 = vld [vmem:[%s1502_s0 + $0x8] sm:$0xff]  ;;  %v20_v11 = vld [vmem:[%s1502_s0 + $0x10] sm:$0xff] }
   0x2   :  { %v18_v1 = vld [vmem:[%s1502_s0] sm:$0xff]  ;;  %850 = vmatprep.subr.bf16.mxu0 %v918_v0  ;;  %916 = vmatprep.subr.bf16.mxu1 %v918_v0  ;;  %v51_v8 = vld [vmem:[%s1502_s0 + $0x108] sm:$0xff]  ;;  %v21_v12 = vld [vmem:[%s1502_s0 + $0x18] sm:$0xff] }
   0x3   :  { %v956_v3 = vld [vmem:[%s1503_s1] ss:$0 sm:$0xff]  ;;  %851 = vmatpush3.bf16.msra.mxu0 %v918_v0  ;;  %917 = vmatpush3.bf16.msra.mxu1 %v918_v0  ;;  %v52_v13 = vld [vmem:[%s1502_s0 + $0x110] sm:$0xff]  ;;  %v53_v18 = vld [vmem:[%s1502_s0 + $0x118] sm:$0xff] }
   0x4   :  { %v89_v4 = vmul.f32 %v956_v3, %v18_v1  ;;  %v90_v5 = vmul.f32 %v956_v3, %v19_v2  ;;  %v963_v6 = vld [vmem:[%s1504_s2] ss:$0 sm:$0xff]  ;;  %v122_v10 = vmul.f32 %v956_v3, %v51_v8  ;;  %v91_v16 = vmul.f32 %v956_v3, %v20_v11  ;;  %v23_v28 = vld [vmem:[%s1502_s0 + $0x28] sm:$0xff]  ;;  %v24_v39 = vld [vmem:[%s1502_s0 + $0x30] sm:$0xff] }
   0x5   :  { %v50_v7 = vld [vmem:[%s1502_s0 + $0x100] sm:$0xff]  ;;  %v92_v17 = vmul.f32 %v956_v3, %v21_v12  ;;  %v123_v21 = vmul.f32 %v956_v3, %v52_v13  ;;  %v124_v22 = vmul.f32 %v956_v3, %v53_v18  ;;  %v55_v34 = vld [vmem:[%s1502_s0 + $0x128] sm:$0xff]  ;;  %v25_v40 = vld [vmem:[%s1502_s0 + $0x38] sm:$0xff]  ;;  %v94_v44 = vmul.f32 %v956_v3, %v23_v28 }
   0x6   :  { %v121_v9 = vmul.f32 %v956_v3, %v50_v7  ;;  %v160_v14 = vadd.f32 %v963_v6, %v89_v4  ;;  %v161_v15 = vadd.f32 %v963_v6, %v90_v5  ;;  %v193_v20 = vadd.f32 %v963_v6, %v122_v10  ;;  %v22_v23 = vld [vmem:[%s1502_s0 + $0x20] sm:$0xff]  ;;  %v56_v45 = vld [vmem:[%s1502_s0 + $0x130] sm:$0xff]  ;;  %v57_v50 = vld [vmem:[%s1502_s0 + $0x138] sm:$0xff] }
   0x7   :  { %v162_v26 = vadd.f32 %v963_v6, %v91_v16  ;;  %v163_v27 = vadd.f32 %v963_v6, %v92_v17  ;;  %v194_v31 = vadd.f32 %v963_v6, %v123_v21  ;;  %v195_v32 = vadd.f32 %v963_v6, %v124_v22  ;;  %v54_v33 = vld [vmem:[%s1502_s0 + $0x120] sm:$0xff]  ;;  %v27_v0 = vld [vmem:[%s1502_s0 + $0x48] sm:$0xff]  ;;  %v28_v13 = vld [vmem:[%s1502_s0 + $0x50] sm:$0xff] }
   0x8   :  { %v192_v19 = vadd.f32 %v963_v6, %v121_v9  ;;  %v224_v24 = vmax.f32 %v160_v14, 0.0  ;;  %v225_v25 = vmax.f32 %v161_v15, 0.0  ;;  %v257_v30 = vmax.f32 %v193_v20, 0.0  ;;  %v26_v55 = vld [vmem:[%s1502_s0 + $0x40] sm:$0xff]  ;;  %v59_v8 = vld [vmem:[%s1502_s0 + $0x148] sm:$0xff]  ;;  %v29_v14 = vld [vmem:[%s1502_s0 + $0x58] sm:$0xff] }
   0x9   :  { %v226_v36 = vmax.f32 %v162_v26, 0.0  ;;  %v227_v37 = vmax.f32 %v163_v27, 0.0  ;;  %v93_v38 = vmul.f32 %v956_v3, %v22_v23  ;;  %v258_v42 = vmax.f32 %v194_v31, 0.0  ;;  %v58_v7 = vld [vmem:[%s1502_s0 + $0x140] sm:$0xff] }
   0xa   :  { %v256_v29 = vmax.f32 %v192_v19, 0.0  ;;  %v288_v35 = vpack.c.bf16 %v225_v25, %v224_v24  ;;  %v259_v43 = vmax.f32 %v195_v32, 0.0  ;;  %v125_v48 = vmul.f32 %v956_v3, %v54_v33  ;;  %v60_v19 = vld [vmem:[%s1502_s0 + $0x150] sm:$0xff]  ;;  %v61_v24 = vld [vmem:[%s1502_s0 + $0x158] sm:$0xff] }
   0xb   :  { %v289_v46 = vpack.c.bf16 %v227_v37, %v226_v36  ;;  %v164_v47 = vadd.f32 %v963_v6, %v93_v38  ;;  %v126_v49 = vmul.f32 %v956_v3, %v55_v34  ;;  %v165_v52 = vadd.f32 %v963_v6, %v94_v44  ;;  %v31_v38 = vld [vmem:[%s1502_s0 + $0x68] sm:$0xff] }
   0xc   :  { %v304_v41 = vpack.c.bf16 %v257_v30, %v256_v29  ;;  %852 = vmatprep.mubr.msk.bf16.mxu0 %vm328_vm0, %v288_v35  ;;  %v305_v51 = vpack.c.bf16 %v259_v43, %v258_v42  ;;  %v95_v53 = vmul.f32 %v956_v3, %v24_v39  ;;  %v96_v54 = vmul.f32 %v956_v3, %v25_v40  ;;  %v30_v29 = vld [vmem:[%s1502_s0 + $0x60] sm:$0xff]  ;;  %v63_v44 = vld [vmem:[%s1502_s0 + $0x168] sm:$0xff] }
   0xd   :  { %853 = vmatmul.mubr.msk.bf16.vlgmr.msra.gmra.mrb[0].mxu0 %vm328_vm0, %v289_v46  ;;  %v228_v56 = vmax.f32 %v164_v47, 0.0  ;;  %v196_v57 = vadd.f32 %v963_v6, %v125_v48  ;;  %v197_v58 = vadd.f32 %v963_v6, %v126_v49  ;;  %v127_v59 = vmul.f32 %v956_v3, %v56_v45  ;;  %v62_v43 = vld [vmem:[%s1502_s0 + $0x160] sm:$0xff]  ;;  %v32_v49 = vld [vmem:[%s1502_s0 + $0x70] sm:$0xff] }
   0xe   :  { %884 = vmatprep.mubr.msk.bf16.mxu1 %vm328_vm0, %v304_v41  ;;  %v229_v60 = vmax.f32 %v165_v52, 0.0  ;;  %v166_v61 = vadd.f32 %v963_v6, %v95_v53  ;;  %v167_v62 = vadd.f32 %v963_v6, %v96_v54  ;;  %v128_v63 = vmul.f32 %v956_v3, %v57_v50  ;;  %v33_v50 = vld [vmem:[%s1502_s0 + $0x78] sm:$0xff] }
   0xf   :  { %885 = vmatmul.mubr.msk.bf16.vlgmr.msra.gmra.mrb[0].mxu1 %vm328_vm0, %v305_v51  ;;  %v260_v1 = vmax.f32 %v196_v57, 0.0  ;;  %v261_v2 = vmax.f32 %v197_v58, 0.0  ;;  %v198_v4 = vadd.f32 %v963_v6, %v127_v59  ;;  %v97_v5 = vmul.f32 %v956_v3, %v26_v55  ;;  %v64_v55 = vld [vmem:[%s1502_s0 + $0x170] sm:$0xff] }
  0x10   :  { %v290_v9 = vpack.c.bf16 %v229_v60, %v228_v56  ;;  %v230_v10 = vmax.f32 %v166_v61, 0.0  ;;  %v231_v11 = vmax.f32 %v167_v62, 0.0  ;;  %v199_v12 = vadd.f32 %v963_v6, %v128_v63  ;;  %v65_v60 = vld [vmem:[%s1502_s0 + $0x178] sm:$0xff] }
  0x11   :  { %v306_v15 = vpack.c.bf16 %v261_v2, %v260_v1  ;;  %v262_v16 = vmax.f32 %v198_v4, 0.0  ;;  %v98_v17 = vmul.f32 %v956_v3, %v27_v0  ;;  %v168_v18 = vadd.f32 %v963_v6, %v97_v5  ;;  %v34_v1 = vld [vmem:[%s1502_s0 + $0x80] sm:$0xff] }
  0x12   :  { %856 = vmatprep.mubr.msk.bf16.mxu0 %vm328_vm0, %v290_v9  ;;  %v291_v20 = vpack.c.bf16 %v231_v11, %v230_v10  ;;  %v263_v21 = vmax.f32 %v199_v12, 0.0  ;;  %v129_v22 = vmul.f32 %v956_v3, %v58_v7  ;;  %v130_v23 = vmul.f32 %v956_v3, %v59_v8  ;;  %v35_v12 = vld [vmem:[%s1502_s0 + $0x88] sm:$0xff] }
  0x13   :  { %888 = vmatprep.mubr.msk.bf16.mxu1 %vm328_vm0, %v306_v15  ;;  %v169_v25 = vadd.f32 %v963_v6, %v98_v17  ;;  %v232_v26 = vmax.f32 %v168_v18, 0.0  ;;  %v99_v27 = vmul.f32 %v956_v3, %v28_v13  ;;  %v100_v28 = vmul.f32 %v956_v3, %v29_v14  ;;  %v66_v17 = vld [vmem:[%s1502_s0 + $0x180] sm:$0xff]  ;;  %v67_v18 = vld [vmem:[%s1502_s0 + $0x188] sm:$0xff] }
  0x14   :  { %v307_v30 = vpack.c.bf16 %v263_v21, %v262_v16  ;;  %v200_v31 = vadd.f32 %v963_v6, %v129_v22  ;;  %v201_v32 = vadd.f32 %v963_v6, %v130_v23  ;;  %v131_v33 = vmul.f32 %v956_v3, %v60_v19  ;;  %v36_v23 = vld [vmem:[%s1502_s0 + $0x90] sm:$0xff] }
  0x15   :  { %857 = vmatmul.mubr.msk.bf16.gmra.mrb[4].mxu0 %vm328_vm0, %v291_v20  ;;  %v233_v34 = vmax.f32 %v169_v25, 0.0  ;;  %v170_v35 = vadd.f32 %v963_v6, %v99_v27  ;;  %v171_v36 = vadd.f32 %v963_v6, %v100_v28  ;;  %v132_v37 = vmul.f32 %v956_v3, %v61_v24  ;;  %v37_v24 = vld [vmem:[%s1502_s0 + $0x98] sm:$0xff] }
  0x16   :  { %v264_v39 = vmax.f32 %v200_v31, 0.0  ;;  %v265_v40 = vmax.f32 %v201_v32, 0.0  ;;  %v202_v41 = vadd.f32 %v963_v6, %v131_v33  ;;  %v101_v42 = vmul.f32 %v956_v3, %v30_v29  ;;  %v68_v29 = vld [vmem:[%s1502_s0 + $0x190] sm:$0xff] }
  0x17   :  { %889 = vmatmul.mubr.msk.bf16.gmra.mrb[4].mxu1 %vm328_vm0, %v307_v30  ;;  %v292_v45 = vpack.c.bf16 %v233_v34, %v232_v26  ;;  %v234_v46 = vmax.f32 %v170_v35, 0.0  ;;  %v235_v47 = vmax.f32 %v171_v36, 0.0  ;;  %v203_v48 = vadd.f32 %v963_v6, %v132_v37  ;;  %v69_v34 = vld [vmem:[%s1502_s0 + $0x198] sm:$0xff] }
  0x18   :  { %v308_v51 = vpack.c.bf16 %v265_v40, %v264_v39  ;;  %v266_v52 = vmax.f32 %v202_v41, 0.0  ;;  %v102_v53 = vmul.f32 %v956_v3, %v31_v38  ;;  %v172_v54 = vadd.f32 %v963_v6, %v101_v42  ;;  %v38_v39 = vld [vmem:[%s1502_s0 + $0xa0] sm:$0xff] }
  0x19   :  { %860 = vmatprep.mubr.msk.bf16.mxu0 %vm328_vm0, %v292_v45  ;;  %v293_v56 = vpack.c.bf16 %v235_v47, %v234_v46  ;;  %v267_v57 = vmax.f32 %v203_v48, 0.0  ;;  %v133_v58 = vmul.f32 %v956_v3, %v62_v43  ;;  %v134_v59 = vmul.f32 %v956_v3, %v63_v44  ;;  %v39_v48 = vld [vmem:[%s1502_s0 + $0xa8] sm:$0xff] }
  0x1a   :  { %892 = vmatprep.mubr.msk.bf16.mxu1 %vm328_vm0, %v308_v51  ;;  %v173_v61 = vadd.f32 %v963_v6, %v102_v53  ;;  %v236_v62 = vmax.f32 %v172_v54, 0.0  ;;  %v103_v63 = vmul.f32 %v956_v3, %v32_v49  ;;  %v104_v0 = vmul.f32 %v956_v3, %v33_v50  ;;  %v70_v53 = vld [vmem:[%s1502_s0 + $0x1a0] sm:$0xff]  ;;  %v71_v54 = vld [vmem:[%s1502_s0 + $0x1a8] sm:$0xff] }
  0x1b   :  { %v309_v2 = vpack.c.bf16 %v267_v57, %v266_v52  ;;  %v204_v4 = vadd.f32 %v963_v6, %v133_v58  ;;  %v205_v5 = vadd.f32 %v963_v6, %v134_v59  ;;  %v135_v7 = vmul.f32 %v956_v3, %v64_v55  ;;  %v40_v59 = vld [vmem:[%s1502_s0 + $0xb0] sm:$0xff] }
  0x1c   :  { %v237_v8 = vmax.f32 %v173_v61, 0.0  ;;  %v174_v9 = vadd.f32 %v963_v6, %v103_v63  ;;  %v175_v10 = vadd.f32 %v963_v6, %v104_v0  ;;  %v136_v11 = vmul.f32 %v956_v3, %v65_v60  ;;  %v41_v60 = vld [vmem:[%s1502_s0 + $0xb8] sm:$0xff] }
  0x1d   :  { %861 = vmatmul.mubr.msk.bf16.gmra.mrb[8].mxu0 %vm328_vm0, %v293_v56  ;;  %v268_v13 = vmax.f32 %v204_v4, 0.0  ;;  %v269_v14 = vmax.f32 %v205_v5, 0.0  ;;  %v206_v15 = vadd.f32 %v963_v6, %v135_v7  ;;  %v105_v16 = vmul.f32 %v956_v3, %v34_v1  ;;  %v72_v1 = vld [vmem:[%s1502_s0 + $0x1b0] sm:$0xff] }
  0x1e   :  { %v294_v19 = vpack.c.bf16 %v237_v8, %v236_v62  ;;  %v238_v20 = vmax.f32 %v174_v9, 0.0  ;;  %v239_v21 = vmax.f32 %v175_v10, 0.0  ;;  %v207_v22 = vadd.f32 %v963_v6, %v136_v11  ;;  %v73_v8 = vld [vmem:[%s1502_s0 + $0x1b8] sm:$0xff] }
  0x1f   :  { %893 = vmatmul.mubr.msk.bf16.gmra.mrb[8].mxu1 %vm328_vm0, %v309_v2  ;;  %v310_v25 = vpack.c.bf16 %v269_v14, %v268_v13  ;;  %v270_v26 = vmax.f32 %v206_v15, 0.0  ;;  %v106_v27 = vmul.f32 %v956_v3, %v35_v12  ;;  %v176_v28 = vadd.f32 %v963_v6, %v105_v16  ;;  %v42_v13 = vld [vmem:[%s1502_s0 + $0xc0] sm:$0xff] }
  0x20   :  { %864 = vmatprep.mubr.msk.bf16.mxu0 %vm328_vm0, %v294_v19  ;;  %v295_v30 = vpack.c.bf16 %v239_v21, %v238_v20  ;;  %v271_v31 = vmax.f32 %v207_v22, 0.0  ;;  %v137_v32 = vmul.f32 %v956_v3, %v66_v17  ;;  %v138_v33 = vmul.f32 %v956_v3, %v67_v18  ;;  %v43_v22 = vld [vmem:[%s1502_s0 + $0xc8] sm:$0xff] }
  0x21   :  { %896 = vmatprep.mubr.msk.bf16.mxu1 %vm328_vm0, %v310_v25  ;;  %v177_v35 = vadd.f32 %v963_v6, %v106_v27  ;;  %v240_v36 = vmax.f32 %v176_v28, 0.0  ;;  %v107_v37 = vmul.f32 %v956_v3, %v36_v23  ;;  %v108_v38 = vmul.f32 %v956_v3, %v37_v24  ;;  %v74_v27 = vld [vmem:[%s1502_s0 + $0x1c0] sm:$0xff]  ;;  %v75_v28 = vld [vmem:[%s1502_s0 + $0x1c8] sm:$0xff] }
  0x22   :  { %v311_v40 = vpack.c.bf16 %v271_v31, %v270_v26  ;;  %v208_v41 = vadd.f32 %v963_v6, %v137_v32  ;;  %v209_v42 = vadd.f32 %v963_v6, %v138_v33  ;;  %v139_v43 = vmul.f32 %v956_v3, %v68_v29  ;;  %v44_v33 = vld [vmem:[%s1502_s0 + $0xd0] sm:$0xff] }
  0x23   :  { %v241_v44 = vmax.f32 %v177_v35, 0.0  ;;  %v178_v45 = vadd.f32 %v963_v6, %v107_v37  ;;  %v179_v46 = vadd.f32 %v963_v6, %v108_v38  ;;  %v140_v47 = vmul.f32 %v956_v3, %v69_v34  ;;  %v45_v34 = vld [vmem:[%s1502_s0 + $0xd8] sm:$0xff] }
  0x24   :  { %v272_v49 = vmax.f32 %v208_v41, 0.0  ;;  %v273_v50 = vmax.f32 %v209_v42, 0.0  ;;  %v210_v51 = vadd.f32 %v963_v6, %v139_v43  ;;  %v109_v52 = vmul.f32 %v956_v3, %v38_v39  ;;  %v76_v39 = vld [vmem:[%s1502_s0 + $0x1d0] sm:$0xff] }
  0x25   :  { %865 = vmatmul.mubr.msk.bf16.gmra.mrb[12].mxu0 %vm328_vm0, %v295_v30  ;;  %v296_v55 = vpack.c.bf16 %v241_v44, %v240_v36  ;;  %v242_v56 = vmax.f32 %v178_v45, 0.0  ;;  %v243_v57 = vmax.f32 %v179_v46, 0.0  ;;  %v211_v58 = vadd.f32 %v963_v6, %v140_v47  ;;  %v77_v44 = vld [vmem:[%s1502_s0 + $0x1d8] sm:$0xff] }
  0x26   :  { %v312_v61 = vpack.c.bf16 %v273_v50, %v272_v49  ;;  %v274_v62 = vmax.f32 %v210_v51, 0.0  ;;  %v110_v63 = vmul.f32 %v956_v3, %v39_v48  ;;  %v180_v0 = vadd.f32 %v963_v6, %v109_v52  ;;  %v46_v49 = vld [vmem:[%s1502_s0 + $0xe0] sm:$0xff] }
  0x27   :  { %897 = vmatmul.mubr.msk.bf16.gmra.mrb[12].mxu1 %vm328_vm0, %v311_v40  ;;  %868 = vmatprep.mubr.msk.bf16.mxu0 %vm328_vm0, %v296_v55  ;;  %v297_v2 = vpack.c.bf16 %v243_v57, %v242_v56  ;;  %v275_v4 = vmax.f32 %v211_v58, 0.0  ;;  %v141_v5 = vmul.f32 %v956_v3, %v70_v53  ;;  %v142_v7 = vmul.f32 %v956_v3, %v71_v54  ;;  %v47_v58 = vld [vmem:[%s1502_s0 + $0xe8] sm:$0xff] }
  0x28   :  { %900 = vmatprep.mubr.msk.bf16.mxu1 %vm328_vm0, %v312_v61  ;;  %v181_v9 = vadd.f32 %v963_v6, %v110_v63  ;;  %v244_v10 = vmax.f32 %v180_v0, 0.0  ;;  %v111_v11 = vmul.f32 %v956_v3, %v40_v59  ;;  %v112_v12 = vmul.f32 %v956_v3, %v41_v60  ;;  %v78_v63 = vld [vmem:[%s1502_s0 + $0x1e0] sm:$0xff]  ;;  %v79_v0 = vld [vmem:[%s1502_s0 + $0x1e8] sm:$0xff] }
  0x29   :  { %v313_v14 = vpack.c.bf16 %v275_v4, %v274_v62  ;;  %v212_v15 = vadd.f32 %v963_v6, %v141_v5  ;;  %v213_v16 = vadd.f32 %v963_v6, %v142_v7  ;;  %v143_v17 = vmul.f32 %v956_v3, %v72_v1  ;;  %v48_v5 = vld [vmem:[%s1502_s0 + $0xf0] sm:$0xff]  ;;  %v49_v7 = vld [vmem:[%s1502_s0 + $0xf8] sm:$0xff] }
  0x2a   :  { %v245_v18 = vmax.f32 %v181_v9, 0.0  ;;  %v182_v19 = vadd.f32 %v963_v6, %v111_v11  ;;  %v183_v20 = vadd.f32 %v963_v6, %v112_v12  ;;  %v144_v21 = vmul.f32 %v956_v3, %v73_v8  ;;  %v80_v12 = vld [vmem:[%s1502_s0 + $0x1f0] sm:$0xff] }
  0x2b   :  { %v276_v23 = vmax.f32 %v212_v15, 0.0  ;;  %v277_v24 = vmax.f32 %v213_v16, 0.0  ;;  %v214_v25 = vadd.f32 %v963_v6, %v143_v17  ;;  %v113_v26 = vmul.f32 %v956_v3, %v42_v13  ;;  %v81_v17 = vld [vmem:[%s1502_s0 + $0x1f8] sm:$0xff] }
  0x2c   :  { %v298_v29 = vpack.c.bf16 %v245_v18, %v244_v10  ;;  %v246_v30 = vmax.f32 %v182_v19, 0.0  ;;  %v247_v31 = vmax.f32 %v183_v20, 0.0  ;;  %v215_v32 = vadd.f32 %v963_v6, %v144_v21 }
  0x2d   :  { %869 = vmatmul.mubr.msk.bf16.gmra.mrb[16].mxu0 %vm328_vm0, %v297_v2  ;;  %v314_v35 = vpack.c.bf16 %v277_v24, %v276_v23  ;;  %v278_v36 = vmax.f32 %v214_v25, 0.0  ;;  %v114_v37 = vmul.f32 %v956_v3, %v43_v22  ;;  %v184_v38 = vadd.f32 %v963_v6, %v113_v26 }
  0x2e   :  { %872 = vmatprep.mubr.msk.bf16.mxu0 %vm328_vm0, %v298_v29  ;;  %v299_v40 = vpack.c.bf16 %v247_v31, %v246_v30  ;;  %v279_v41 = vmax.f32 %v215_v32, 0.0  ;;  %v145_v42 = vmul.f32 %v956_v3, %v74_v27  ;;  %v146_v43 = vmul.f32 %v956_v3, %v75_v28 }
  0x2f   :  { %901 = vmatmul.mubr.msk.bf16.gmra.mrb[16].mxu1 %vm328_vm0, %v313_v14  ;;  %v185_v45 = vadd.f32 %v963_v6, %v114_v37  ;;  %v248_v46 = vmax.f32 %v184_v38, 0.0  ;;  %v115_v47 = vmul.f32 %v956_v3, %v44_v33  ;;  %v116_v48 = vmul.f32 %v956_v3, %v45_v34 }
  0x30   :  { %904 = vmatprep.mubr.msk.bf16.mxu1 %vm328_vm0, %v314_v35  ;;  %v315_v50 = vpack.c.bf16 %v279_v41, %v278_v36  ;;  %v216_v51 = vadd.f32 %v963_v6, %v145_v42  ;;  %v217_v52 = vadd.f32 %v963_v6, %v146_v43  ;;  %v147_v53 = vmul.f32 %v956_v3, %v76_v39 }
  0x31   :  { %v249_v54 = vmax.f32 %v185_v45, 0.0  ;;  %v186_v55 = vadd.f32 %v963_v6, %v115_v47  ;;  %v187_v56 = vadd.f32 %v963_v6, %v116_v48  ;;  %v148_v57 = vmul.f32 %v956_v3, %v77_v44 }
  0x32   :  { %v280_v59 = vmax.f32 %v216_v51, 0.0  ;;  %v281_v60 = vmax.f32 %v217_v52, 0.0  ;;  %v218_v61 = vadd.f32 %v963_v6, %v147_v53  ;;  %v117_v62 = vmul.f32 %v956_v3, %v46_v49 }
  0x33   :  { %v300_v1 = vpack.c.bf16 %v249_v54, %v248_v46  ;;  %v250_v2 = vmax.f32 %v186_v55, 0.0  ;;  %v219_v4 = vadd.f32 %v963_v6, %v148_v57  ;;  %v251_v9 = vmax.f32 %v187_v56, 0.0 }
  0x34   :  { %v316_v8 = vpack.c.bf16 %v281_v60, %v280_v59  ;;  %v118_v10 = vmul.f32 %v956_v3, %v47_v58  ;;  %v188_v11 = vadd.f32 %v963_v6, %v117_v62  ;;  %v282_v13 = vmax.f32 %v218_v61, 0.0 }
  0x35   :  { %873 = vmatmul.mubr.msk.bf16.gmra.mrb[20].mxu0 %vm328_vm0, %v299_v40  ;;  %v283_v14 = vmax.f32 %v219_v4, 0.0  ;;  %v149_v15 = vmul.f32 %v956_v3, %v78_v63  ;;  %v150_v16 = vmul.f32 %v956_v3, %v79_v0  ;;  %v119_v20 = vmul.f32 %v956_v3, %v48_v5 }
  0x36   :  { %876 = vmatprep.mubr.msk.bf16.mxu0 %vm328_vm0, %v300_v1  ;;  %v189_v18 = vadd.f32 %v963_v6, %v118_v10  ;;  %v252_v19 = vmax.f32 %v188_v11, 0.0  ;;  %v120_v21 = vmul.f32 %v956_v3, %v49_v7  ;;  %v151_v24 = vmul.f32 %v956_v3, %v80_v12 }
  0x37   :  { %905 = vmatmul.mubr.msk.bf16.gmra.mrb[20].mxu1 %vm328_vm0, %v315_v50  ;;  %v220_v22 = vadd.f32 %v963_v6, %v149_v15  ;;  %v221_v23 = vadd.f32 %v963_v6, %v150_v16  ;;  %v301_v25 = vpack.c.bf16 %v251_v9, %v250_v2  ;;  %v152_v27 = vmul.f32 %v956_v3, %v81_v17 }
  0x38   :  { %908 = vmatprep.mubr.msk.bf16.mxu1 %vm328_vm0, %v316_v8  ;;  %v253_v26 = vmax.f32 %v189_v18, 0.0  ;;  %v190_v30 = vadd.f32 %v963_v6, %v119_v20  ;;  %v191_v31 = vadd.f32 %v963_v6, %v120_v21  ;;  %v317_v32 = vpack.c.bf16 %v283_v14, %v282_v13 }
  0x39   :  { %v284_v28 = vmax.f32 %v220_v22, 0.0  ;;  %v285_v29 = vmax.f32 %v221_v23, 0.0  ;;  %v222_v34 = vadd.f32 %v963_v6, %v151_v24  ;;  %v223_v35 = vadd.f32 %v963_v6, %v152_v27 }
  0x3a   :  { %v302_v33 = vpack.c.bf16 %v253_v26, %v252_v19  ;;  %v254_v37 = vmax.f32 %v190_v30, 0.0  ;;  %v255_v38 = vmax.f32 %v191_v31, 0.0 }
  0x3b   :  { %v318_v36 = vpack.c.bf16 %v285_v29, %v284_v28  ;;  %v286_v3 = vmax.f32 %v222_v34, 0.0  ;;  %v287_v39 = vmax.f32 %v223_v35, 0.0 }
  0x3c   :  { %v303_v40 = vpack.c.bf16 %v255_v38, %v254_v37 }
  0x3d   :  { %877 = vmatmul.mubr.msk.bf16.gmra.mrb[24].mxu0 %vm328_vm0, %v301_v25  ;;  %v319_v41 = vpack.c.bf16 %v287_v39, %v286_v3 }
  0x3e   :  { %880 = vmatprep.mubr.msk.bf16.mxu0 %vm328_vm0, %v302_v33 }
  0x3f   :  { %909 = vmatmul.mubr.msk.bf16.gmra.mrb[24].mxu1 %vm328_vm0, %v317_v32 }
  0x40   :  { %912 = vmatprep.mubr.msk.bf16.mxu1 %vm328_vm0, %v318_v36 }
  0x45   :  { %881 = vmatmul.mubr.msk.bf16.gmra.mrb[28].mxu0 %vm328_vm0, %v303_v40 }
  0x47   :  { %913 = vmatmul.mubr.msk.bf16.gmra.mrb[28].mxu1 %vm328_vm0, %v319_v41 }
  0xe0   :  { %v854_v6 = vpop.f32.mrb[0].mxu0 }
  0xe1   :  { %716 = vst [vmem:[%s1505_s4 + $0x10] sm:$0xff] %v854_v6  ;;  %v459_v43 = vpop.f32.mrb[1].mxu0 }
  0xe2   :  { %v886_v42 = vpop.f32.mrb[0].mxu1  ;;  %714 = vst [vmem:[%s1505_s4] sm:$0xff] %v459_v43  ;;  %v855_v45 = vpop.f32.mrb[2].mxu0 }
  0xe3   :  { %748 = vst [vmem:[%s1505_s4 + $0x110] sm:$0xff] %v886_v42  ;;  %v587_v44 = vpop.f32.mrb[1].mxu1  ;;  %717 = vst [vmem:[%s1505_s4 + $0x18] sm:$0xff] %v855_v45  ;;  %v462_v47 = vpop.f32.mrb[3].mxu0 }
  0xe4   :  { %746 = vst [vmem:[%s1505_s4 + $0x100] sm:$0xff] %v587_v44  ;;  %v887_v46 = vpop.f32.mrb[2].mxu1  ;;  %715 = vst [vmem:[%s1505_s4 + $0x8] sm:$0xff] %v462_v47 }
  0xe5   :  { %749 = vst [vmem:[%s1505_s4 + $0x118] sm:$0xff] %v887_v46  ;;  %v590_v48 = vpop.f32.mrb[3].mxu1 }
  0xe6   :  { %747 = vst [vmem:[%s1505_s4 + $0x108] sm:$0xff] %v590_v48 }
  0xe8   :  { %v858_v49 = vpop.f32.mrb[4].mxu0 }
  0xe9   :  { %720 = vst [vmem:[%s1505_s4 + $0x30] sm:$0xff] %v858_v49  ;;  %v475_v51 = vpop.f32.mrb[5].mxu0 }
  0xea   :  { %v890_v50 = vpop.f32.mrb[4].mxu1  ;;  %718 = vst [vmem:[%s1505_s4 + $0x20] sm:$0xff] %v475_v51  ;;  %v859_v53 = vpop.f32.mrb[6].mxu0 }
  0xeb   :  { %752 = vst [vmem:[%s1505_s4 + $0x130] sm:$0xff] %v890_v50  ;;  %v603_v52 = vpop.f32.mrb[5].mxu1  ;;  %721 = vst [vmem:[%s1505_s4 + $0x38] sm:$0xff] %v859_v53  ;;  %v478_v55 = vpop.f32.mrb[7].mxu0 }
  0xec   :  { %750 = vst [vmem:[%s1505_s4 + $0x120] sm:$0xff] %v603_v52  ;;  %v891_v54 = vpop.f32.mrb[6].mxu1  ;;  %719 = vst [vmem:[%s1505_s4 + $0x28] sm:$0xff] %v478_v55 }
  0xed   :  { %753 = vst [vmem:[%s1505_s4 + $0x138] sm:$0xff] %v891_v54  ;;  %v606_v56 = vpop.f32.mrb[7].mxu1 }
  0xee   :  { %751 = vst [vmem:[%s1505_s4 + $0x128] sm:$0xff] %v606_v56 }
  0xf0   :  { %v862_v57 = vpop.f32.mrb[8].mxu0 }
  0xf1   :  { %724 = vst [vmem:[%s1505_s4 + $0x50] sm:$0xff] %v862_v57  ;;  %v491_v59 = vpop.f32.mrb[9].mxu0 }
  0xf2   :  { %v894_v58 = vpop.f32.mrb[8].mxu1  ;;  %722 = vst [vmem:[%s1505_s4 + $0x40] sm:$0xff] %v491_v59  ;;  %v863_v61 = vpop.f32.mrb[10].mxu0 }
  0xf3   :  { %756 = vst [vmem:[%s1505_s4 + $0x150] sm:$0xff] %v894_v58  ;;  %v619_v60 = vpop.f32.mrb[9].mxu1  ;;  %725 = vst [vmem:[%s1505_s4 + $0x58] sm:$0xff] %v863_v61  ;;  %v494_v63 = vpop.f32.mrb[11].mxu0 }
  0xf4   :  { %754 = vst [vmem:[%s1505_s4 + $0x140] sm:$0xff] %v619_v60  ;;  %v895_v62 = vpop.f32.mrb[10].mxu1  ;;  %723 = vst [vmem:[%s1505_s4 + $0x48] sm:$0xff] %v494_v63 }
  0xf5   :  { %757 = vst [vmem:[%s1505_s4 + $0x158] sm:$0xff] %v895_v62  ;;  %v622_v0 = vpop.f32.mrb[11].mxu1 }
  0xf6   :  { %755 = vst [vmem:[%s1505_s4 + $0x148] sm:$0xff] %v622_v0 }
  0xf8   :  { %v866_v1 = vpop.f32.mrb[12].mxu0 }
  0xf9   :  { %728 = vst [vmem:[%s1505_s4 + $0x70] sm:$0xff] %v866_v1  ;;  %v507_v4 = vpop.f32.mrb[13].mxu0 }
  0xfa   :  { %v898_v2 = vpop.f32.mrb[12].mxu1  ;;  %726 = vst [vmem:[%s1505_s4 + $0x60] sm:$0xff] %v507_v4  ;;  %v867_v7 = vpop.f32.mrb[14].mxu0 }
  0xfb   :  { %760 = vst [vmem:[%s1505_s4 + $0x170] sm:$0xff] %v898_v2  ;;  %v635_v5 = vpop.f32.mrb[13].mxu1  ;;  %729 = vst [vmem:[%s1505_s4 + $0x78] sm:$0xff] %v867_v7  ;;  %v510_v9 = vpop.f32.mrb[15].mxu0 }
  0xfc   :  { %758 = vst [vmem:[%s1505_s4 + $0x160] sm:$0xff] %v635_v5  ;;  %v899_v8 = vpop.f32.mrb[14].mxu1  ;;  %727 = vst [vmem:[%s1505_s4 + $0x68] sm:$0xff] %v510_v9 }
  0xfd   :  { %761 = vst [vmem:[%s1505_s4 + $0x178] sm:$0xff] %v899_v8  ;;  %v638_v10 = vpop.f32.mrb[15].mxu1 }
  0xfe   :  { %759 = vst [vmem:[%s1505_s4 + $0x168] sm:$0xff] %v638_v10 }
 0x100   :  { %v870_v11 = vpop.f32.mrb[16].mxu0 }
 0x101   :  { %732 = vst [vmem:[%s1505_s4 + $0x90] sm:$0xff] %v870_v11  ;;  %v523_v13 = vpop.f32.mrb[17].mxu0 }
 0x102   :  { %v902_v12 = vpop.f32.mrb[16].mxu1  ;;  %730 = vst [vmem:[%s1505_s4 + $0x80] sm:$0xff] %v523_v13  ;;  %v871_v15 = vpop.f32.mrb[18].mxu0 }
 0x103   :  { %764 = vst [vmem:[%s1505_s4 + $0x190] sm:$0xff] %v902_v12  ;;  %v651_v14 = vpop.f32.mrb[17].mxu1  ;;  %733 = vst [vmem:[%s1505_s4 + $0x98] sm:$0xff] %v871_v15  ;;  %v526_v17 = vpop.f32.mrb[19].mxu0 }
 0x104   :  { %762 = vst [vmem:[%s1505_s4 + $0x180] sm:$0xff] %v651_v14  ;;  %v903_v16 = vpop.f32.mrb[18].mxu1  ;;  %731 = vst [vmem:[%s1505_s4 + $0x88] sm:$0xff] %v526_v17 }
 0x105   :  { %765 = vst [vmem:[%s1505_s4 + $0x198] sm:$0xff] %v903_v16  ;;  %v654_v18 = vpop.f32.mrb[19].mxu1 }
 0x106   :  { %763 = vst [vmem:[%s1505_s4 + $0x188] sm:$0xff] %v654_v18 }
 0x108   :  { %v874_v19 = vpop.f32.mrb[20].mxu0 }
 0x109   :  { %736 = vst [vmem:[%s1505_s4 + $0xb0] sm:$0xff] %v874_v19  ;;  %v539_v21 = vpop.f32.mrb[21].mxu0 }
 0x10a   :  { %v906_v20 = vpop.f32.mrb[20].mxu1  ;;  %734 = vst [vmem:[%s1505_s4 + $0xa0] sm:$0xff] %v539_v21  ;;  %v875_v23 = vpop.f32.mrb[22].mxu0 }
 0x10b   :  { %768 = vst [vmem:[%s1505_s4 + $0x1b0] sm:$0xff] %v906_v20  ;;  %v667_v22 = vpop.f32.mrb[21].mxu1  ;;  %737 = vst [vmem:[%s1505_s4 + $0xb8] sm:$0xff] %v875_v23  ;;  %v542_v25 = vpop.f32.mrb[23].mxu0 }
 0x10c   :  { %766 = vst [vmem:[%s1505_s4 + $0x1a0] sm:$0xff] %v667_v22  ;;  %v907_v24 = vpop.f32.mrb[22].mxu1  ;;  %735 = vst [vmem:[%s1505_s4 + $0xa8] sm:$0xff] %v542_v25 }
 0x10d   :  { %769 = vst [vmem:[%s1505_s4 + $0x1b8] sm:$0xff] %v907_v24  ;;  %v670_v26 = vpop.f32.mrb[23].mxu1 }
 0x10e   :  { %767 = vst [vmem:[%s1505_s4 + $0x1a8] sm:$0xff] %v670_v26 }
 0x110   :  { %v878_v27 = vpop.f32.mrb[24].mxu0 }
 0x111   :  { %740 = vst [vmem:[%s1505_s4 + $0xd0] sm:$0xff] %v878_v27  ;;  %v555_v29 = vpop.f32.mrb[25].mxu0 }
 0x112   :  { %v910_v28 = vpop.f32.mrb[24].mxu1  ;;  %738 = vst [vmem:[%s1505_s4 + $0xc0] sm:$0xff] %v555_v29  ;;  %v879_v31 = vpop.f32.mrb[26].mxu0 }
 0x113   :  { %772 = vst [vmem:[%s1505_s4 + $0x1d0] sm:$0xff] %v910_v28  ;;  %v683_v30 = vpop.f32.mrb[25].mxu1  ;;  %741 = vst [vmem:[%s1505_s4 + $0xd8] sm:$0xff] %v879_v31  ;;  %v558_v33 = vpop.f32.mrb[27].mxu0 }
 0x114   :  { %770 = vst [vmem:[%s1505_s4 + $0x1c0] sm:$0xff] %v683_v30  ;;  %v911_v32 = vpop.f32.mrb[26].mxu1  ;;  %739 = vst [vmem:[%s1505_s4 + $0xc8] sm:$0xff] %v558_v33 }
 0x115   :  { %773 = vst [vmem:[%s1505_s4 + $0x1d8] sm:$0xff] %v911_v32  ;;  %v686_v34 = vpop.f32.mrb[27].mxu1 }
 0x116   :  { %771 = vst [vmem:[%s1505_s4 + $0x1c8] sm:$0xff] %v686_v34 }
 0x118   :  { %v882_v35 = vpop.f32.mrb[28].mxu0 }
 0x119   :  { %744 = vst [vmem:[%s1505_s4 + $0xf0] sm:$0xff] %v882_v35  ;;  %v571_v37 = vpop.f32.mrb[29].mxu0 }
 0x11a   :  { %v914_v36 = vpop.f32.mrb[28].mxu1  ;;  %742 = vst [vmem:[%s1505_s4 + $0xe0] sm:$0xff] %v571_v37  ;;  %v883_v3 = vpop.f32.mrb[30].mxu0 }
 0x11b   :  { %776 = vst [vmem:[%s1505_s4 + $0x1f0] sm:$0xff] %v914_v36  ;;  %v699_v38 = vpop.f32.mrb[29].mxu1  ;;  %745 = vst [vmem:[%s1505_s4 + $0xf8] sm:$0xff] %v883_v3  ;;  %v574_v40 = vpop.f32.mrb[31].mxu0 }
 0x11c   :  { %774 = vst [vmem:[%s1505_s4 + $0x1e0] sm:$0xff] %v699_v38  ;;  %v915_v39 = vpop.f32.mrb[30].mxu1  ;;  %743 = vst [vmem:[%s1505_s4 + $0xe8] sm:$0xff] %v574_v40 }
 0x11d   :  { %777 = vst [vmem:[%s1505_s4 + $0x1f8] sm:$0xff] %v915_v39  ;;  %v702_v41 = vpop.f32.mrb[31].mxu1 }
 0x11e   :  { %775 = vst [vmem:[%s1505_s4 + $0x1e8] sm:$0xff] %v702_v41 }

// kernel: generator_forward.17
= control target key start
LH: loop header
LB: loop body
LE: loop exit
PB: predicated region body
PF: predicated region fallthrough
CT: control target
= control target key end

     0   :  { %s157_s0 = inlined_call_operand.vmem [shape: f32[64,256], index: 0, kind: input, shape index: {}]   ;;  %s158_s1 = inlined_call_operand.vmem [shape: f32[8,256], index: 1, kind: output, shape index: {0}]   ;;  %s159_s2 = inlined_call_operand.vmem [shape: f32[8,256], index: 2, kind: output, shape index: {1}]  }
   0x1   :  { %v10_v0 = vld [vmem:[%s157_s0] sm:$0xff]  ;;  %v12_v1 = vld [vmem:[%s157_s0 + $0x10] sm:$0xff]  ;;  %v11_v9 = vld [vmem:[%s157_s0 + $0x8] sm:$0xff] }
   0x2   :  { %v14_v2 = vld [vmem:[%s157_s0 + $0x20] sm:$0xff]  ;;  %v16_v3 = vld [vmem:[%s157_s0 + $0x30] sm:$0xff]  ;;  %v26_v4 = vadd.f32 %v12_v1, %v10_v0  ;;  %v42_v5 = vmul.f32 %v10_v0, %v10_v0  ;;  %v44_v6 = vmul.f32 %v12_v1, %v12_v1  ;;  %v13_v12 = vld [vmem:[%s157_s0 + $0x18] sm:$0xff]  ;;  %v43_v18 = vmul.f32 %v11_v9, %v11_v9 }
   0x3   :  { %v46_v7 = vmul.f32 %v14_v2, %v14_v2  ;;  %v18_v8 = vld [vmem:[%s157_s0 + $0x40] sm:$0xff]  ;;  %v20_v10 = vld [vmem:[%s157_s0 + $0x50] sm:$0xff]  ;;  %v15_v13 = vld [vmem:[%s157_s0 + $0x28] sm:$0xff]  ;;  %v48_v14 = vmul.f32 %v16_v3, %v16_v3  ;;  %v33_v17 = vadd.f32 %v13_v12, %v11_v9  ;;  %v45_v19 = vmul.f32 %v13_v12, %v13_v12 }
   0x4   :  { %v27_v11 = vadd.f32 %v26_v4, %v14_v2  ;;  %v58_v15 = vadd.f32 %v44_v6, %v42_v5  ;;  %v17_v16 = vld [vmem:[%s157_s0 + $0x38] sm:$0xff]  ;;  %v22_v20 = vld [vmem:[%s157_s0 + $0x60] sm:$0xff]  ;;  %v50_v22 = vmul.f32 %v18_v8, %v18_v8  ;;  %v47_v24 = vmul.f32 %v15_v13, %v15_v13  ;;  %v19_v25 = vld [vmem:[%s157_s0 + $0x48] sm:$0xff] }
   0x5   :  { %v34_v26 = vadd.f32 %v33_v17, %v15_v13  ;;  %v52_v27 = vmul.f32 %v20_v10, %v20_v10  ;;  %v24_v28 = vld [vmem:[%s157_s0 + $0x70] sm:$0xff]  ;;  %v49_v31 = vmul.f32 %v17_v16, %v17_v16  ;;  %v65_v32 = vadd.f32 %v45_v19, %v43_v18  ;;  %v21_v33 = vld [vmem:[%s157_s0 + $0x58] sm:$0xff]  ;;  %v23_v40 = vld [vmem:[%s157_s0 + $0x68] sm:$0xff] }
   0x6   :  { %v28_v21 = vadd.f32 %v27_v11, %v16_v3  ;;  %v59_v23 = vadd.f32 %v58_v15, %v46_v7  ;;  %v54_v35 = vmul.f32 %v22_v20, %v22_v20  ;;  %v51_v38 = vmul.f32 %v19_v25, %v19_v25  ;;  %v25_v47 = vld [vmem:[%s157_s0 + $0x78] sm:$0xff] }
   0x7   :  { %v35_v34 = vadd.f32 %v34_v26, %v17_v16  ;;  %v66_v39 = vadd.f32 %v65_v32, %v47_v24  ;;  %v56_v42 = vmul.f32 %v24_v28, %v24_v28  ;;  %v53_v45 = vmul.f32 %v21_v33, %v21_v33 }
   0x8   :  { %v29_v29 = vadd.f32 %v28_v21, %v18_v8  ;;  %v60_v30 = vadd.f32 %v59_v23, %v48_v14  ;;  %v55_v51 = vmul.f32 %v23_v40, %v23_v40  ;;  %v57_v55 = vmul.f32 %v25_v47, %v25_v47 }
   0x9   :  { %v36_v41 = vadd.f32 %v35_v34, %v19_v25  ;;  %v67_v46 = vadd.f32 %v66_v39, %v49_v31 }
   0xa   :  { %v30_v36 = vadd.f32 %v29_v29, %v20_v10  ;;  %v61_v37 = vadd.f32 %v60_v30, %v50_v22 }
   0xb   :  { %v37_v48 = vadd.f32 %v36_v41, %v21_v33  ;;  %v68_v52 = vadd.f32 %v67_v46, %v51_v38 }
   0xc   :  { %v31_v43 = vadd.f32 %v30_v36, %v22_v20  ;;  %v62_v44 = vadd.f32 %v61_v37, %v52_v27 }
   0xd   :  { %v38_v53 = vadd.f32 %v37_v48, %v23_v40  ;;  %v69_v56 = vadd.f32 %v68_v52, %v53_v45 }
   0xe   :  { %v32_v49 = vadd.f32 %v31_v43, %v24_v28  ;;  %v63_v50 = vadd.f32 %v62_v44, %v54_v35 }
   0xf   :  { %v39_v57 = vadd.f32 %v38_v53, %v25_v47  ;;  %v70_v58 = vadd.f32 %v69_v56, %v55_v51 }
  0x10   :  { %40 = vst [vmem:[%s158_s1] sm:$0xff] %v32_v49  ;;  %v64_v54 = vadd.f32 %v63_v50, %v56_v42 }
  0x11   :  { %41 = vst [vmem:[%s158_s1 + $0x8] sm:$0xff] %v39_v57  ;;  %v71_v59 = vadd.f32 %v70_v58, %v57_v55 }
  0x12   :  { %72 = vst [vmem:[%s159_s2] sm:$0xff] %v64_v54 }
  0x13   :  { %73 = vst [vmem:[%s159_s2 + $0x8] sm:$0xff] %v71_v59 }

// kernel: generator_forward.18
= control target key start
LH: loop header
LB: loop body
LE: loop exit
PB: predicated region body
PF: predicated region fallthrough
CT: control target
= control target key end

     0   :  { %vm1570_vm0 = vcmask 1043456   ;;  %vm1185_vm1 = vcmask 64512   ;;  %vm2631_vm2 = vcmask 392192   ;;  %s5907_s3 = inlined_call_operand.vmem [shape: bf16[8,48], index: 3, kind: input, shape index: {}]   ;;  %s5908_s0 = inlined_call_operand.vmem [shape: f32[2048,8], index: 0, kind: input, shape index: {}]   ;;  %s5909_s1 = inlined_call_operand.vmem [shape: f32[1,8], index: 1, kind: input, shape index: {}]   ;;  %s5910_s2 = inlined_call_operand.vmem [shape: f32[1,8], index: 2, kind: input, shape index: {}]   ;;  %s5911_s4 = inlined_call_operand.vmem [shape: f32[2048,48], index: 4, kind: output, shape index: {}]  }
   0x1   :  { %v1184_v0 = vld [vmem:[%s5907_s3] sm:$0xf]  ;;  %v19_v2 = vld [vmem:[%s5908_s0 + $0x8] sm:$0xff]  ;;  %v20_v11 = vld [vmem:[%s5908_s0 + $0x10] sm:$0xff] }
   0x2   :  { %v18_v1 = vld [vmem:[%s5908_s0] sm:$0xff]  ;;  %3411 = vmatprep.subr.msk.bf16.mxu0 %vm1570_vm0, %v1184_v0  ;;  %3412 = vmatprep.subr.msk.bf16.mxu1 %vm1570_vm0, %v1184_v0  ;;  %v1572_v3 = vsel %vm1570_vm0, %v1184_v0, 0  ;;  %v147_v9 = vld [vmem:[%s5908_s0 + $0x408] sm:$0xff]  ;;  %v21_v12 = vld [vmem:[%s5908_s0 + $0x18] sm:$0xff] }
   0x3   :  { %v3454_v4 = vld [vmem:[%s5909_s1] ss:$0 sm:$0xff]  ;;  %3152 = vmatpush3.bf16.msra.mxu0 %v1572_v3  ;;  %3410 = vmatpush3.bf16.msra.mxu1 %v1572_v3  ;;  %v148_v16 = vld [vmem:[%s5908_s0 + $0x410] sm:$0xff]  ;;  %v149_v17 = vld [vmem:[%s5908_s0 + $0x418] sm:$0xff] }
   0x4   :  { %v3459_v5 = vld [vmem:[%s5910_s2] ss:$0 sm:$0xff]  ;;  %v281_v7 = vmul.f32 %v3454_v4, %v18_v1  ;;  %v282_v8 = vmul.f32 %v3454_v4, %v19_v2  ;;  %v410_v13 = vmul.f32 %v3454_v4, %v147_v9  ;;  %v283_v14 = vmul.f32 %v3454_v4, %v20_v11  ;;  %v23_v27 = vld [vmem:[%s5908_s0 + $0x28] sm:$0xff]  ;;  %v24_v38 = vld [vmem:[%s5908_s0 + $0x30] sm:$0xff] }
   0x5   :  { %v146_v6 = vld [vmem:[%s5908_s0 + $0x400] sm:$0xff]  ;;  %v284_v15 = vmul.f32 %v3454_v4, %v21_v12  ;;  %v411_v21 = vmul.f32 %v3454_v4, %v148_v16  ;;  %v412_v25 = vmul.f32 %v3454_v4, %v149_v17  ;;  %v151_v37 = vld [vmem:[%s5908_s0 + $0x428] sm:$0xff]  ;;  %v286_v42 = vmul.f32 %v3454_v4, %v23_v27  ;;  %v25_v43 = vld [vmem:[%s5908_s0 + $0x38] sm:$0xff] }
   0x6   :  { %v409_v10 = vmul.f32 %v3454_v4, %v146_v6  ;;  %v544_v18 = vadd.f32 %v3459_v5, %v281_v7  ;;  %v545_v19 = vadd.f32 %v3459_v5, %v282_v8  ;;  %v673_v22 = vadd.f32 %v3459_v5, %v410_v13  ;;  %v22_v26 = vld [vmem:[%s5908_s0 + $0x20] sm:$0xff]  ;;  %v152_v52 = vld [vmem:[%s5908_s0 + $0x430] sm:$0xff]  ;;  %v153_v53 = vld [vmem:[%s5908_s0 + $0x438] sm:$0xff] }
   0x7   :  { %v546_v23 = vadd.f32 %v3459_v5, %v283_v14  ;;  %v547_v24 = vadd.f32 %v3459_v5, %v284_v15  ;;  %v674_v31 = vadd.f32 %v3459_v5, %v411_v21  ;;  %v150_v32 = vld [vmem:[%s5908_s0 + $0x420] sm:$0xff]  ;;  %v675_v36 = vadd.f32 %v3459_v5, %v412_v25  ;;  %v27_v62 = vld [vmem:[%s5908_s0 + $0x48] sm:$0xff]  ;;  %v28_v15 = vld [vmem:[%s5908_s0 + $0x50] sm:$0xff] }
   0x8   :  { %v672_v20 = vadd.f32 %v3459_v5, %v409_v10  ;;  %v800_v28 = vmax.f32 %v544_v18, 0.0  ;;  %v801_v29 = vmax.f32 %v545_v19, 0.0  ;;  %v929_v33 = vmax.f32 %v673_v22, 0.0  ;;  %v26_v57 = vld [vmem:[%s5908_s0 + $0x40] sm:$0xff]  ;;  %v155_v6 = vld [vmem:[%s5908_s0 + $0x448] sm:$0xff]  ;;  %v156_v21 = vld [vmem:[%s5908_s0 + $0x450] sm:$0xff] }
   0x9   :  { %v802_v34 = vmax.f32 %v546_v23, 0.0  ;;  %v803_v35 = vmax.f32 %v547_v24, 0.0  ;;  %v930_v40 = vmax.f32 %v674_v31, 0.0  ;;  %v285_v41 = vmul.f32 %v3454_v4, %v22_v26  ;;  %v154_v3 = vld [vmem:[%s5908_s0 + $0x440] sm:$0xff]  ;;  %v157_v26 = vld [vmem:[%s5908_s0 + $0x458] sm:$0xff] }
   0xa   :  { %v928_v30 = vmax.f32 %v672_v20, 0.0  ;;  %v1056_v39 = vpack.c.bf16 %v801_v29, %v800_v28  ;;  %v931_v46 = vmax.f32 %v675_v36, 0.0  ;;  %v413_v47 = vmul.f32 %v3454_v4, %v150_v32  ;;  %v29_v20 = vld [vmem:[%s5908_s0 + $0x58] sm:$0xff]  ;;  %v30_v31 = vld [vmem:[%s5908_s0 + $0x60] sm:$0xff]  ;;  %v31_v36 = vld [vmem:[%s5908_s0 + $0x68] sm:$0xff] }
   0xb   :  { %v1057_v45 = vpack.c.bf16 %v803_v35, %v802_v34  ;;  %v548_v48 = vadd.f32 %v3459_v5, %v285_v41  ;;  %v549_v49 = vadd.f32 %v3459_v5, %v286_v42  ;;  %v414_v50 = vmul.f32 %v3454_v4, %v151_v37  ;;  %v158_v41 = vld [vmem:[%s5908_s0 + $0x460] sm:$0xff] }
   0xc   :  { %v1120_v44 = vpack.c.bf16 %v929_v33, %v928_v30  ;;  %3153 = vmatprep.mubr.msk.bf16.mxu0 %vm1185_vm1, %v1056_v39  ;;  %v287_v51 = vmul.f32 %v3454_v4, %v24_v38  ;;  %v1121_v54 = vpack.c.bf16 %v931_v46, %v930_v40  ;;  %v676_v55 = vadd.f32 %v3459_v5, %v413_v47  ;;  %v159_v46 = vld [vmem:[%s5908_s0 + $0x468] sm:$0xff]  ;;  %v32_v47 = vld [vmem:[%s5908_s0 + $0x70] sm:$0xff] }
   0xd   :  { %3154 = vmatmul.mubr.msk.bf16.vlgmr.msra.gmra.mrb[0].mxu0 %vm1185_vm1, %v1057_v45  ;;  %v288_v56 = vmul.f32 %v3454_v4, %v25_v43  ;;  %v804_v58 = vmax.f32 %v548_v48, 0.0  ;;  %v805_v59 = vmax.f32 %v549_v49, 0.0  ;;  %v677_v60 = vadd.f32 %v3459_v5, %v414_v50 }
   0xe   :  { %3281 = vmatprep.mubr.msk.bf16.mxu1 %vm1185_vm1, %v1120_v44  ;;  %v550_v61 = vadd.f32 %v3459_v5, %v287_v51  ;;  %v932_v63 = vmax.f32 %v676_v55, 0.0  ;;  %v415_v1 = vmul.f32 %v3454_v4, %v152_v52  ;;  %v416_v2 = vmul.f32 %v3454_v4, %v153_v53  ;;  %v33_v52 = vld [vmem:[%s5908_s0 + $0x78] sm:$0xff] }
   0xf   :  { %3282 = vmatmul.mubr.msk.bf16.vlgmr.msra.gmra.mrb[0].mxu1 %vm1185_vm1, %v1121_v54  ;;  %v551_v0 = vadd.f32 %v3459_v5, %v288_v56  ;;  %v1058_v7 = vpack.c.bf16 %v805_v59, %v804_v58  ;;  %v933_v8 = vmax.f32 %v677_v60, 0.0  ;;  %v289_v10 = vmul.f32 %v3454_v4, %v26_v57 }
  0x10   :  { %v806_v9 = vmax.f32 %v550_v61, 0.0  ;;  %v678_v12 = vadd.f32 %v3459_v5, %v415_v1  ;;  %v679_v13 = vadd.f32 %v3459_v5, %v416_v2  ;;  %v290_v14 = vmul.f32 %v3454_v4, %v27_v62  ;;  %v160_v61 = vld [vmem:[%s5908_s0 + $0x470] sm:$0xff]  ;;  %v161_v62 = vld [vmem:[%s5908_s0 + $0x478] sm:$0xff] }
  0x11   :  { %v807_v11 = vmax.f32 %v551_v0, 0.0  ;;  %3157 = vmatprep.mubr.msk.bf16.mxu0 %vm1185_vm1, %v1058_v7  ;;  %v1122_v16 = vpack.c.bf16 %v933_v8, %v932_v63  ;;  %v552_v17 = vadd.f32 %v3459_v5, %v289_v10  ;;  %v417_v18 = vmul.f32 %v3454_v4, %v154_v3  ;;  %v34_v3 = vld [vmem:[%s5908_s0 + $0x80] sm:$0xff]  ;;  %v35_v10 = vld [vmem:[%s5908_s0 + $0x88] sm:$0xff] }
  0x12   :  { %v418_v19 = vmul.f32 %v3454_v4, %v155_v6  ;;  %v934_v23 = vmax.f32 %v678_v12, 0.0  ;;  %v935_v24 = vmax.f32 %v679_v13, 0.0  ;;  %v553_v25 = vadd.f32 %v3459_v5, %v290_v14 }
  0x13   :  { %v1059_v22 = vpack.c.bf16 %v807_v11, %v806_v9  ;;  %3285 = vmatprep.mubr.msk.bf16.mxu1 %vm1185_vm1, %v1122_v16  ;;  %v808_v27 = vmax.f32 %v552_v17, 0.0  ;;  %v680_v28 = vadd.f32 %v3459_v5, %v417_v18  ;;  %v291_v30 = vmul.f32 %v3454_v4, %v28_v15  ;;  %v162_v15 = vld [vmem:[%s5908_s0 + $0x480] sm:$0xff]  ;;  %v163_v16 = vld [vmem:[%s5908_s0 + $0x488] sm:$0xff] }
  0x14   :  { %v681_v29 = vadd.f32 %v3459_v5, %v418_v19  ;;  %v1123_v32 = vpack.c.bf16 %v935_v24, %v934_v23  ;;  %v809_v33 = vmax.f32 %v553_v25, 0.0  ;;  %v292_v34 = vmul.f32 %v3454_v4, %v29_v20  ;;  %v36_v25 = vld [vmem:[%s5908_s0 + $0x90] sm:$0xff] }
  0x15   :  { %3158 = vmatmul.mubr.msk.bf16.gmra.mrb[4].mxu0 %vm1185_vm1, %v1059_v22  ;;  %v419_v35 = vmul.f32 %v3454_v4, %v156_v21  ;;  %v936_v37 = vmax.f32 %v680_v28, 0.0  ;;  %v554_v39 = vadd.f32 %v3459_v5, %v291_v30  ;;  %v420_v40 = vmul.f32 %v3454_v4, %v157_v26  ;;  %v37_v30 = vld [vmem:[%s5908_s0 + $0x98] sm:$0xff] }
  0x16   :  { %v937_v38 = vmax.f32 %v681_v29, 0.0  ;;  %v1060_v42 = vpack.c.bf16 %v809_v33, %v808_v27  ;;  %v555_v43 = vadd.f32 %v3459_v5, %v292_v34  ;;  %v293_v45 = vmul.f32 %v3454_v4, %v30_v31  ;;  %v164_v31 = vld [vmem:[%s5908_s0 + $0x490] sm:$0xff] }
  0x17   :  { %3286 = vmatmul.mubr.msk.bf16.gmra.mrb[4].mxu1 %vm1185_vm1, %v1123_v32  ;;  %v682_v44 = vadd.f32 %v3459_v5, %v419_v35  ;;  %v810_v49 = vmax.f32 %v554_v39, 0.0  ;;  %v683_v50 = vadd.f32 %v3459_v5, %v420_v40  ;;  %v294_v51 = vmul.f32 %v3454_v4, %v31_v36  ;;  %v165_v36 = vld [vmem:[%s5908_s0 + $0x498] sm:$0xff] }
  0x18   :  { %v1124_v48 = vpack.c.bf16 %v937_v38, %v936_v37  ;;  %3161 = vmatprep.mubr.msk.bf16.mxu0 %vm1185_vm1, %v1060_v42  ;;  %v811_v53 = vmax.f32 %v555_v43, 0.0  ;;  %v556_v55 = vadd.f32 %v3459_v5, %v293_v45  ;;  %v421_v56 = vmul.f32 %v3454_v4, %v158_v41  ;;  %v38_v41 = vld [vmem:[%s5908_s0 + $0xa0] sm:$0xff] }
  0x19   :  { %v938_v54 = vmax.f32 %v682_v44, 0.0  ;;  %v939_v57 = vmax.f32 %v683_v50, 0.0  ;;  %v557_v58 = vadd.f32 %v3459_v5, %v294_v51  ;;  %v422_v59 = vmul.f32 %v3454_v4, %v159_v46  ;;  %v39_v46 = vld [vmem:[%s5908_s0 + $0xa8] sm:$0xff]  ;;  %v166_v51 = vld [vmem:[%s5908_s0 + $0x4a0] sm:$0xff] }
  0x1a   :  { %3289 = vmatprep.mubr.msk.bf16.mxu1 %vm1185_vm1, %v1124_v48  ;;  %v295_v60 = vmul.f32 %v3454_v4, %v32_v47  ;;  %v1061_v63 = vpack.c.bf16 %v811_v53, %v810_v49  ;;  %v812_v0 = vmax.f32 %v556_v55, 0.0  ;;  %v684_v1 = vadd.f32 %v3459_v5, %v421_v56  ;;  %v167_v56 = vld [vmem:[%s5908_s0 + $0x4a8] sm:$0xff] }
  0x1b   :  { %v296_v2 = vmul.f32 %v3454_v4, %v33_v52  ;;  %v1125_v6 = vpack.c.bf16 %v939_v57, %v938_v54  ;;  %v813_v7 = vmax.f32 %v557_v58, 0.0  ;;  %v685_v8 = vadd.f32 %v3459_v5, %v422_v59  ;;  %v40_v57 = vld [vmem:[%s5908_s0 + $0xb0] sm:$0xff] }
  0x1c   :  { %v558_v9 = vadd.f32 %v3459_v5, %v295_v60  ;;  %v940_v11 = vmax.f32 %v684_v1, 0.0  ;;  %v423_v13 = vmul.f32 %v3454_v4, %v160_v61  ;;  %v424_v14 = vmul.f32 %v3454_v4, %v161_v62  ;;  %v41_v62 = vld [vmem:[%s5908_s0 + $0xb8] sm:$0xff] }
  0x1d   :  { %3162 = vmatmul.mubr.msk.bf16.gmra.mrb[8].mxu0 %vm1185_vm1, %v1061_v63  ;;  %v559_v12 = vadd.f32 %v3459_v5, %v296_v2  ;;  %v1062_v17 = vpack.c.bf16 %v813_v7, %v812_v0  ;;  %v941_v18 = vmax.f32 %v685_v8, 0.0  ;;  %v297_v20 = vmul.f32 %v3454_v4, %v34_v3 }
  0x1e   :  { %v814_v19 = vmax.f32 %v558_v9, 0.0  ;;  %v686_v22 = vadd.f32 %v3459_v5, %v423_v13  ;;  %v687_v23 = vadd.f32 %v3459_v5, %v424_v14  ;;  %v298_v24 = vmul.f32 %v3454_v4, %v35_v10  ;;  %v168_v9 = vld [vmem:[%s5908_s0 + $0x4b0] sm:$0xff]  ;;  %v169_v10 = vld [vmem:[%s5908_s0 + $0x4b8] sm:$0xff] }
  0x1f   :  { %3290 = vmatmul.mubr.msk.bf16.gmra.mrb[8].mxu1 %vm1185_vm1, %v1125_v6  ;;  %v815_v21 = vmax.f32 %v559_v12, 0.0  ;;  %3165 = vmatprep.mubr.msk.bf16.mxu0 %vm1185_vm1, %v1062_v17  ;;  %v1126_v26 = vpack.c.bf16 %v941_v18, %v940_v11  ;;  %v560_v27 = vadd.f32 %v3459_v5, %v297_v20  ;;  %v425_v28 = vmul.f32 %v3454_v4, %v162_v15  ;;  %v42_v15 = vld [vmem:[%s5908_s0 + $0xc0] sm:$0xff]  ;;  %v43_v20 = vld [vmem:[%s5908_s0 + $0xc8] sm:$0xff] }
  0x20   :  { %v426_v29 = vmul.f32 %v3454_v4, %v163_v16  ;;  %v942_v33 = vmax.f32 %v686_v22, 0.0  ;;  %v943_v34 = vmax.f32 %v687_v23, 0.0  ;;  %v561_v35 = vadd.f32 %v3459_v5, %v298_v24 }
  0x21   :  { %v1063_v32 = vpack.c.bf16 %v815_v21, %v814_v19  ;;  %3293 = vmatprep.mubr.msk.bf16.mxu1 %vm1185_vm1, %v1126_v26  ;;  %v816_v37 = vmax.f32 %v560_v27, 0.0  ;;  %v688_v38 = vadd.f32 %v3459_v5, %v425_v28  ;;  %v299_v40 = vmul.f32 %v3454_v4, %v36_v25  ;;  %v170_v25 = vld [vmem:[%s5908_s0 + $0x4c0] sm:$0xff]  ;;  %v171_v26 = vld [vmem:[%s5908_s0 + $0x4c8] sm:$0xff] }
  0x22   :  { %v689_v39 = vadd.f32 %v3459_v5, %v426_v29  ;;  %v1127_v42 = vpack.c.bf16 %v943_v34, %v942_v33  ;;  %v817_v43 = vmax.f32 %v561_v35, 0.0  ;;  %v300_v44 = vmul.f32 %v3454_v4, %v37_v30  ;;  %v44_v35 = vld [vmem:[%s5908_s0 + $0xd0] sm:$0xff] }
  0x23   :  { %v427_v45 = vmul.f32 %v3454_v4, %v164_v31  ;;  %v944_v47 = vmax.f32 %v688_v38, 0.0  ;;  %v562_v49 = vadd.f32 %v3459_v5, %v299_v40  ;;  %v428_v50 = vmul.f32 %v3454_v4, %v165_v36  ;;  %v45_v40 = vld [vmem:[%s5908_s0 + $0xd8] sm:$0xff] }
  0x24   :  { %v945_v48 = vmax.f32 %v689_v39, 0.0  ;;  %v1064_v52 = vpack.c.bf16 %v817_v43, %v816_v37  ;;  %v563_v53 = vadd.f32 %v3459_v5, %v300_v44  ;;  %v301_v55 = vmul.f32 %v3454_v4, %v38_v41  ;;  %v172_v41 = vld [vmem:[%s5908_s0 + $0x4d0] sm:$0xff] }
  0x25   :  { %3166 = vmatmul.mubr.msk.bf16.gmra.mrb[12].mxu0 %vm1185_vm1, %v1063_v32  ;;  %v690_v54 = vadd.f32 %v3459_v5, %v427_v45  ;;  %v818_v59 = vmax.f32 %v562_v49, 0.0  ;;  %v691_v60 = vadd.f32 %v3459_v5, %v428_v50  ;;  %v302_v61 = vmul.f32 %v3454_v4, %v39_v46  ;;  %v173_v46 = vld [vmem:[%s5908_s0 + $0x4d8] sm:$0xff] }
  0x26   :  { %v1128_v58 = vpack.c.bf16 %v945_v48, %v944_v47  ;;  %3169 = vmatprep.mubr.msk.bf16.mxu0 %vm1185_vm1, %v1064_v52  ;;  %v819_v63 = vmax.f32 %v563_v53, 0.0  ;;  %v564_v1 = vadd.f32 %v3459_v5, %v301_v55  ;;  %v429_v2 = vmul.f32 %v3454_v4, %v166_v51  ;;  %v46_v51 = vld [vmem:[%s5908_s0 + $0xe0] sm:$0xff] }
  0x27   :  { %3294 = vmatmul.mubr.msk.bf16.gmra.mrb[12].mxu1 %vm1185_vm1, %v1127_v42  ;;  %v946_v0 = vmax.f32 %v690_v54, 0.0  ;;  %v947_v3 = vmax.f32 %v691_v60, 0.0  ;;  %v565_v6 = vadd.f32 %v3459_v5, %v302_v61  ;;  %v430_v7 = vmul.f32 %v3454_v4, %v167_v56  ;;  %v47_v56 = vld [vmem:[%s5908_s0 + $0xe8] sm:$0xff]  ;;  %v174_v61 = vld [vmem:[%s5908_s0 + $0x4e0] sm:$0xff] }
  0x28   :  { %3297 = vmatprep.mubr.msk.bf16.mxu1 %vm1185_vm1, %v1128_v58  ;;  %v303_v8 = vmul.f32 %v3454_v4, %v40_v57  ;;  %v1065_v11 = vpack.c.bf16 %v819_v63, %v818_v59  ;;  %v820_v12 = vmax.f32 %v564_v1, 0.0  ;;  %v692_v13 = vadd.f32 %v3459_v5, %v429_v2  ;;  %v175_v2 = vld [vmem:[%s5908_s0 + $0x4e8] sm:$0xff] }
  0x29   :  { %v304_v14 = vmul.f32 %v3454_v4, %v41_v62  ;;  %v1129_v16 = vpack.c.bf16 %v947_v3, %v946_v0  ;;  %v821_v17 = vmax.f32 %v565_v6, 0.0  ;;  %v693_v18 = vadd.f32 %v3459_v5, %v430_v7  ;;  %v48_v3 = vld [vmem:[%s5908_s0 + $0xf0] sm:$0xff] }
  0x2a   :  { %v566_v19 = vadd.f32 %v3459_v5, %v303_v8  ;;  %v948_v21 = vmax.f32 %v692_v13, 0.0  ;;  %v431_v23 = vmul.f32 %v3454_v4, %v168_v9  ;;  %v432_v24 = vmul.f32 %v3454_v4, %v169_v10  ;;  %v49_v10 = vld [vmem:[%s5908_s0 + $0xf8] sm:$0xff] }
  0x2b   :  { %v567_v22 = vadd.f32 %v3459_v5, %v304_v14  ;;  %v1066_v27 = vpack.c.bf16 %v821_v17, %v820_v12  ;;  %v949_v28 = vmax.f32 %v693_v18, 0.0  ;;  %v305_v30 = vmul.f32 %v3454_v4, %v42_v15 }
  0x2c   :  { %v822_v29 = vmax.f32 %v566_v19, 0.0  ;;  %v694_v32 = vadd.f32 %v3459_v5, %v431_v23  ;;  %v695_v33 = vadd.f32 %v3459_v5, %v432_v24  ;;  %v306_v34 = vmul.f32 %v3454_v4, %v43_v20  ;;  %v176_v19 = vld [vmem:[%s5908_s0 + $0x4f0] sm:$0xff]  ;;  %v177_v20 = vld [vmem:[%s5908_s0 + $0x4f8] sm:$0xff]  ;;  %v50_v24 = vld [vmem:[%s5908_s0 + $0x100] sm:$0xff] }
  0x2d   :  { %3170 = vmatmul.mubr.msk.bf16.gmra.mrb[16].mxu0 %vm1185_vm1, %v1065_v11  ;;  %v823_v31 = vmax.f32 %v567_v22, 0.0  ;;  %v1130_v36 = vpack.c.bf16 %v949_v28, %v948_v21  ;;  %v568_v37 = vadd.f32 %v3459_v5, %v305_v30  ;;  %v433_v38 = vmul.f32 %v3454_v4, %v170_v25 }
  0x2e   :  { %3173 = vmatprep.mubr.msk.bf16.mxu0 %vm1185_vm1, %v1066_v27  ;;  %v434_v39 = vmul.f32 %v3454_v4, %v171_v26  ;;  %v950_v43 = vmax.f32 %v694_v32, 0.0  ;;  %v951_v44 = vmax.f32 %v695_v33, 0.0  ;;  %v569_v45 = vadd.f32 %v3459_v5, %v306_v34  ;;  %v178_v34 = vld [vmem:[%s5908_s0 + $0x500] sm:$0xff] }
  0x2f   :  { %3298 = vmatmul.mubr.msk.bf16.gmra.mrb[16].mxu1 %vm1185_vm1, %v1129_v16  ;;  %v1067_v42 = vpack.c.bf16 %v823_v31, %v822_v29  ;;  %v824_v47 = vmax.f32 %v568_v37, 0.0  ;;  %v696_v48 = vadd.f32 %v3459_v5, %v433_v38  ;;  %v307_v50 = vmul.f32 %v3454_v4, %v44_v35  ;;  %v51_v29 = vld [vmem:[%s5908_s0 + $0x108] sm:$0xff] }
  0x30   :  { %3301 = vmatprep.mubr.msk.bf16.mxu1 %vm1185_vm1, %v1130_v36  ;;  %v697_v49 = vadd.f32 %v3459_v5, %v434_v39  ;;  %v1131_v52 = vpack.c.bf16 %v951_v44, %v950_v43  ;;  %v825_v53 = vmax.f32 %v569_v45, 0.0  ;;  %v308_v54 = vmul.f32 %v3454_v4, %v45_v40  ;;  %v179_v35 = vld [vmem:[%s5908_s0 + $0x508] sm:$0xff]  ;;  %v52_v44 = vld [vmem:[%s5908_s0 + $0x110] sm:$0xff] }
  0x31   :  { %v435_v55 = vmul.f32 %v3454_v4, %v172_v41  ;;  %v952_v57 = vmax.f32 %v696_v48, 0.0  ;;  %v570_v59 = vadd.f32 %v3459_v5, %v307_v50  ;;  %v436_v60 = vmul.f32 %v3454_v4, %v173_v46  ;;  %v180_v50 = vld [vmem:[%s5908_s0 + $0x510] sm:$0xff] }
  0x32   :  { %v953_v58 = vmax.f32 %v697_v49, 0.0  ;;  %v1068_v62 = vpack.c.bf16 %v825_v53, %v824_v47  ;;  %v571_v63 = vadd.f32 %v3459_v5, %v308_v54  ;;  %v309_v1 = vmul.f32 %v3454_v4, %v46_v51  ;;  %v53_v49 = vld [vmem:[%s5908_s0 + $0x118] sm:$0xff] }
  0x33   :  { %v698_v0 = vadd.f32 %v3459_v5, %v435_v55  ;;  %v826_v7 = vmax.f32 %v570_v59, 0.0  ;;  %v699_v8 = vadd.f32 %v3459_v5, %v436_v60  ;;  %v310_v9 = vmul.f32 %v3454_v4, %v47_v56  ;;  %v181_v55 = vld [vmem:[%s5908_s0 + $0x518] sm:$0xff]  ;;  %v54_v60 = vld [vmem:[%s5908_s0 + $0x120] sm:$0xff] }
  0x34   :  { %v1132_v6 = vpack.c.bf16 %v953_v58, %v952_v57  ;;  %v827_v11 = vmax.f32 %v571_v63, 0.0  ;;  %v572_v13 = vadd.f32 %v3459_v5, %v309_v1  ;;  %v437_v14 = vmul.f32 %v3454_v4, %v174_v61 }
  0x35   :  { %3174 = vmatmul.mubr.msk.bf16.gmra.mrb[20].mxu0 %vm1185_vm1, %v1067_v42  ;;  %v954_v12 = vmax.f32 %v698_v0, 0.0  ;;  %v955_v15 = vmax.f32 %v699_v8, 0.0  ;;  %v573_v16 = vadd.f32 %v3459_v5, %v310_v9  ;;  %v438_v17 = vmul.f32 %v3454_v4, %v175_v2  ;;  %v55_v0 = vld [vmem:[%s5908_s0 + $0x128] sm:$0xff] }
  0x36   :  { %3177 = vmatprep.mubr.msk.bf16.mxu0 %vm1185_vm1, %v1068_v62  ;;  %v311_v18 = vmul.f32 %v3454_v4, %v48_v3  ;;  %v828_v21 = vmax.f32 %v572_v13, 0.0  ;;  %v700_v22 = vadd.f32 %v3459_v5, %v437_v14  ;;  %v312_v23 = vmul.f32 %v3454_v4, %v49_v10  ;;  %v56_v13 = vld [vmem:[%s5908_s0 + $0x130] sm:$0xff] }
  0x37   :  { %3302 = vmatmul.mubr.msk.bf16.gmra.mrb[20].mxu1 %vm1185_vm1, %v1131_v52  ;;  %v1069_v25 = vpack.c.bf16 %v827_v11, %v826_v7  ;;  %v829_v26 = vmax.f32 %v573_v16, 0.0  ;;  %v701_v27 = vadd.f32 %v3459_v5, %v438_v17  ;;  %v439_v32 = vmul.f32 %v3454_v4, %v176_v19  ;;  %v182_v7 = vld [vmem:[%s5908_s0 + $0x520] sm:$0xff] }
  0x38   :  { %3305 = vmatprep.mubr.msk.bf16.mxu1 %vm1185_vm1, %v1132_v6  ;;  %v574_v28 = vadd.f32 %v3459_v5, %v311_v18  ;;  %v956_v30 = vmax.f32 %v700_v22, 0.0  ;;  %v575_v31 = vadd.f32 %v3459_v5, %v312_v23  ;;  %v440_v33 = vmul.f32 %v3454_v4, %v177_v20  ;;  %v57_v18 = vld [vmem:[%s5908_s0 + $0x138] sm:$0xff] }
  0x39   :  { %v1133_v36 = vpack.c.bf16 %v955_v15, %v954_v12  ;;  %v1070_v37 = vpack.c.bf16 %v829_v26, %v828_v21  ;;  %v957_v38 = vmax.f32 %v701_v27, 0.0  ;;  %v313_v39 = vmul.f32 %v3454_v4, %v50_v24  ;;  %v183_v12 = vld [vmem:[%s5908_s0 + $0x528] sm:$0xff]  ;;  %v184_v27 = vld [vmem:[%s5908_s0 + $0x530] sm:$0xff] }
  0x3a   :  { %v830_v40 = vmax.f32 %v574_v28, 0.0  ;;  %v702_v41 = vadd.f32 %v3459_v5, %v439_v32  ;;  %v703_v42 = vadd.f32 %v3459_v5, %v440_v33  ;;  %v314_v43 = vmul.f32 %v3454_v4, %v51_v29  ;;  %v185_v28 = vld [vmem:[%s5908_s0 + $0x538] sm:$0xff]  ;;  %v58_v33 = vld [vmem:[%s5908_s0 + $0x140] sm:$0xff] }
  0x3b   :  { %v1134_v45 = vpack.c.bf16 %v957_v38, %v956_v30  ;;  %v576_v46 = vadd.f32 %v3459_v5, %v313_v39  ;;  %v441_v47 = vmul.f32 %v3454_v4, %v178_v34  ;;  %v442_v48 = vmul.f32 %v3454_v4, %v179_v35 }
  0x3c   :  { %v831_v51 = vmax.f32 %v575_v31, 0.0  ;;  %v958_v52 = vmax.f32 %v702_v41, 0.0  ;;  %v959_v53 = vmax.f32 %v703_v42, 0.0  ;;  %v577_v54 = vadd.f32 %v3459_v5, %v314_v43  ;;  %v186_v41 = vld [vmem:[%s5908_s0 + $0x540] sm:$0xff]  ;;  %v187_v42 = vld [vmem:[%s5908_s0 + $0x548] sm:$0xff] }
  0x3d   :  { %3178 = vmatmul.mubr.msk.bf16.gmra.mrb[24].mxu0 %vm1185_vm1, %v1069_v25  ;;  %v832_v56 = vmax.f32 %v576_v46, 0.0  ;;  %v704_v57 = vadd.f32 %v3459_v5, %v441_v47  ;;  %v705_v58 = vadd.f32 %v3459_v5, %v442_v48  ;;  %v315_v59 = vmul.f32 %v3454_v4, %v52_v44 }
  0x3e   :  { %3181 = vmatprep.mubr.msk.bf16.mxu0 %vm1185_vm1, %v1070_v37  ;;  %v833_v61 = vmax.f32 %v577_v54, 0.0  ;;  %v316_v62 = vmul.f32 %v3454_v4, %v53_v49  ;;  %v443_v63 = vmul.f32 %v3454_v4, %v180_v50  ;;  %v444_v6 = vmul.f32 %v3454_v4, %v181_v55  ;;  %v59_v37 = vld [vmem:[%s5908_s0 + $0x148] sm:$0xff]  ;;  %v60_v54 = vld [vmem:[%s5908_s0 + $0x150] sm:$0xff]  ;;  %v61_v55 = vld [vmem:[%s5908_s0 + $0x158] sm:$0xff] }
  0x3f   :  { %3306 = vmatmul.mubr.msk.bf16.gmra.mrb[24].mxu1 %vm1185_vm1, %v1133_v36  ;;  %v960_v1 = vmax.f32 %v704_v57, 0.0  ;;  %v961_v2 = vmax.f32 %v705_v58, 0.0  ;;  %v578_v3 = vadd.f32 %v3459_v5, %v315_v59  ;;  %v1071_v8 = vpack.c.bf16 %v831_v51, %v830_v40 }
  0x40   :  { %3309 = vmatprep.mubr.msk.bf16.mxu1 %vm1185_vm1, %v1134_v45  ;;  %v579_v9 = vadd.f32 %v3459_v5, %v316_v62  ;;  %v706_v10 = vadd.f32 %v3459_v5, %v443_v63  ;;  %v317_v11 = vmul.f32 %v3454_v4, %v54_v60  ;;  %v1135_v14 = vpack.c.bf16 %v959_v53, %v958_v52  ;;  %v188_v60 = vld [vmem:[%s5908_s0 + $0x550] sm:$0xff] }
  0x41   :  { %v1072_v15 = vpack.c.bf16 %v833_v61, %v832_v56  ;;  %v707_v16 = vadd.f32 %v3459_v5, %v444_v6  ;;  %v318_v17 = vmul.f32 %v3454_v4, %v55_v0  ;;  %v1136_v19 = vpack.c.bf16 %v961_v2, %v960_v1  ;;  %v189_v1 = vld [vmem:[%s5908_s0 + $0x558] sm:$0xff]  ;;  %v62_v2 = vld [vmem:[%s5908_s0 + $0x160] sm:$0xff] }
  0x42   :  { %v834_v20 = vmax.f32 %v578_v3, 0.0  ;;  %v580_v21 = vadd.f32 %v3459_v5, %v317_v11  ;;  %v445_v22 = vmul.f32 %v3454_v4, %v182_v7  ;;  %v835_v23 = vmax.f32 %v579_v9, 0.0  ;;  %v63_v9 = vld [vmem:[%s5908_s0 + $0x168] sm:$0xff]  ;;  %v190_v11 = vld [vmem:[%s5908_s0 + $0x560] sm:$0xff] }
  0x43   :  { %v581_v24 = vadd.f32 %v3459_v5, %v318_v17  ;;  %v446_v25 = vmul.f32 %v3454_v4, %v183_v12  ;;  %v319_v26 = vmul.f32 %v3454_v4, %v56_v13  ;;  %v962_v29 = vmax.f32 %v706_v10, 0.0 }
  0x44   :  { %v963_v30 = vmax.f32 %v707_v16, 0.0  ;;  %v708_v31 = vadd.f32 %v3459_v5, %v445_v22  ;;  %v320_v32 = vmul.f32 %v3454_v4, %v57_v18  ;;  %v836_v34 = vmax.f32 %v580_v21, 0.0  ;;  %v191_v16 = vld [vmem:[%s5908_s0 + $0x568] sm:$0xff] }
  0x45   :  { %3182 = vmatmul.mubr.msk.bf16.gmra.mrb[28].mxu0 %vm1185_vm1, %v1071_v8  ;;  %v837_v35 = vmax.f32 %v581_v24, 0.0  ;;  %v709_v36 = vadd.f32 %v3459_v5, %v446_v25  ;;  %v582_v38 = vadd.f32 %v3459_v5, %v319_v26  ;;  %v447_v39 = vmul.f32 %v3454_v4, %v184_v27 }
  0x46   :  { %3185 = vmatprep.mubr.msk.bf16.mxu0 %vm1185_vm1, %v1072_v15  ;;  %v448_v40 = vmul.f32 %v3454_v4, %v185_v28  ;;  %v964_v43 = vmax.f32 %v708_v31, 0.0  ;;  %v583_v45 = vadd.f32 %v3459_v5, %v320_v32  ;;  %v321_v46 = vmul.f32 %v3454_v4, %v58_v33  ;;  %v66_v33 = vld [vmem:[%s5908_s0 + $0x180] sm:$0xff] }
  0x47   :  { %3310 = vmatmul.mubr.msk.bf16.gmra.mrb[28].mxu1 %vm1185_vm1, %v1135_v14  ;;  %v965_v44 = vmax.f32 %v709_v36, 0.0  ;;  %v1073_v47 = vpack.c.bf16 %v835_v23, %v834_v20  ;;  %v1137_v48 = vpack.c.bf16 %v963_v30, %v962_v29  ;;  %v322_v49 = vmul.f32 %v3454_v4, %v59_v37  ;;  %v64_v29 = vld [vmem:[%s5908_s0 + $0x170] sm:$0xff]  ;;  %v65_v30 = vld [vmem:[%s5908_s0 + $0x178] sm:$0xff] }
  0x48   :  { %3313 = vmatprep.mubr.msk.bf16.mxu1 %vm1185_vm1, %v1136_v19  ;;  %v1074_v50 = vpack.c.bf16 %v837_v35, %v836_v34  ;;  %v584_v51 = vadd.f32 %v3459_v5, %v321_v46  ;;  %v449_v52 = vmul.f32 %v3454_v4, %v186_v41  ;;  %v450_v53 = vmul.f32 %v3454_v4, %v187_v42  ;;  %v192_v37 = vld [vmem:[%s5908_s0 + $0x570] sm:$0xff] }
  0x49   :  { %v838_v56 = vmax.f32 %v582_v38, 0.0  ;;  %v710_v57 = vadd.f32 %v3459_v5, %v447_v39  ;;  %v711_v58 = vadd.f32 %v3459_v5, %v448_v40  ;;  %v585_v59 = vadd.f32 %v3459_v5, %v322_v49  ;;  %v193_v38 = vld [vmem:[%s5908_s0 + $0x578] sm:$0xff]  ;;  %v67_v39 = vld [vmem:[%s5908_s0 + $0x188] sm:$0xff] }
  0x4a   :  { %v1138_v61 = vpack.c.bf16 %v965_v44, %v964_v43  ;;  %v839_v62 = vmax.f32 %v583_v45, 0.0  ;;  %v712_v63 = vadd.f32 %v3459_v5, %v449_v52  ;;  %v713_v0 = vadd.f32 %v3459_v5, %v450_v53  ;;  %v194_v44 = vld [vmem:[%s5908_s0 + $0x580] sm:$0xff]  ;;  %v195_v45 = vld [vmem:[%s5908_s0 + $0x588] sm:$0xff] }
  0x4b   :  { %v840_v3 = vmax.f32 %v584_v51, 0.0  ;;  %v841_v6 = vmax.f32 %v585_v59, 0.0  ;;  %v323_v7 = vmul.f32 %v3454_v4, %v60_v54  ;;  %v324_v8 = vmul.f32 %v3454_v4, %v61_v55 }
  0x4c   :  { %v451_v10 = vmul.f32 %v3454_v4, %v188_v60  ;;  %v966_v12 = vmax.f32 %v710_v57, 0.0  ;;  %v967_v13 = vmax.f32 %v711_v58, 0.0  ;;  %v452_v14 = vmul.f32 %v3454_v4, %v189_v1  ;;  %v69_v1 = vld [vmem:[%s5908_s0 + $0x198] sm:$0xff] }
  0x4d   :  { %3186 = vmatmul.mubr.msk.bf16.gmra.mrb[32].mxu0 %vm1185_vm1, %v1073_v47  ;;  %v325_v15 = vmul.f32 %v3454_v4, %v62_v2  ;;  %v1075_v17 = vpack.c.bf16 %v839_v62, %v838_v56  ;;  %v968_v18 = vmax.f32 %v712_v63, 0.0  ;;  %v969_v19 = vmax.f32 %v713_v0, 0.0  ;;  %v68_v0 = vld [vmem:[%s5908_s0 + $0x190] sm:$0xff] }
  0x4e   :  { %3189 = vmatprep.mubr.msk.bf16.mxu0 %vm1185_vm1, %v1074_v50  ;;  %v326_v20 = vmul.f32 %v3454_v4, %v63_v9  ;;  %v1076_v21 = vpack.c.bf16 %v841_v6, %v840_v3  ;;  %v586_v22 = vadd.f32 %v3459_v5, %v323_v7  ;;  %v587_v23 = vadd.f32 %v3459_v5, %v324_v8  ;;  %v70_v7 = vld [vmem:[%s5908_s0 + $0x1a0] sm:$0xff]  ;;  %v71_v8 = vld [vmem:[%s5908_s0 + $0x1a8] sm:$0xff] }
  0x4f   :  { %3314 = vmatmul.mubr.msk.bf16.gmra.mrb[32].mxu1 %vm1185_vm1, %v1137_v48  ;;  %v453_v24 = vmul.f32 %v3454_v4, %v190_v11  ;;  %v714_v25 = vadd.f32 %v3459_v5, %v451_v10  ;;  %v588_v26 = vadd.f32 %v3459_v5, %v325_v15  ;;  %v454_v28 = vmul.f32 %v3454_v4, %v191_v16 }
  0x50   :  { %3317 = vmatprep.mubr.msk.bf16.mxu1 %vm1185_vm1, %v1138_v61  ;;  %v589_v27 = vadd.f32 %v3459_v5, %v326_v20  ;;  %v1139_v31 = vpack.c.bf16 %v967_v13, %v966_v12  ;;  %v715_v32 = vadd.f32 %v3459_v5, %v452_v14  ;;  %v1140_v34 = vpack.c.bf16 %v969_v19, %v968_v18  ;;  %v196_v12 = vld [vmem:[%s5908_s0 + $0x590] sm:$0xff]  ;;  %v197_v13 = vld [vmem:[%s5908_s0 + $0x598] sm:$0xff]  ;;  %v198_v18 = vld [vmem:[%s5908_s0 + $0x5a0] sm:$0xff] }
  0x51   :  { %v716_v35 = vadd.f32 %v3459_v5, %v453_v24  ;;  %v717_v36 = vadd.f32 %v3459_v5, %v454_v28  ;;  %v842_v40 = vmax.f32 %v586_v22, 0.0  ;;  %v843_v41 = vmax.f32 %v587_v23, 0.0  ;;  %v199_v19 = vld [vmem:[%s5908_s0 + $0x5a8] sm:$0xff] }
  0x52   :  { %v327_v42 = vmul.f32 %v3454_v4, %v64_v29  ;;  %v328_v43 = vmul.f32 %v3454_v4, %v65_v30  ;;  %v970_v46 = vmax.f32 %v714_v25, 0.0  ;;  %v844_v47 = vmax.f32 %v588_v26, 0.0 }
  0x53   :  { %v845_v48 = vmax.f32 %v589_v27, 0.0  ;;  %v329_v49 = vmul.f32 %v3454_v4, %v66_v33  ;;  %v971_v50 = vmax.f32 %v715_v32, 0.0  ;;  %v455_v51 = vmul.f32 %v3454_v4, %v192_v37 }
  0x54   :  { %v456_v52 = vmul.f32 %v3454_v4, %v193_v38  ;;  %v330_v53 = vmul.f32 %v3454_v4, %v67_v39  ;;  %v972_v54 = vmax.f32 %v716_v35, 0.0  ;;  %v973_v55 = vmax.f32 %v717_v36, 0.0  ;;  %v72_v39 = vld [vmem:[%s5908_s0 + $0x1b0] sm:$0xff] }
  0x55   :  { %3190 = vmatmul.mubr.msk.bf16.gmra.mrb[36].mxu0 %vm1185_vm1, %v1075_v17  ;;  %v457_v56 = vmul.f32 %v3454_v4, %v194_v44  ;;  %v458_v57 = vmul.f32 %v3454_v4, %v195_v45  ;;  %v1077_v58 = vpack.c.bf16 %v843_v41, %v842_v40  ;;  %v590_v59 = vadd.f32 %v3459_v5, %v327_v42  ;;  %v74_v42 = vld [vmem:[%s5908_s0 + $0x1c0] sm:$0xff] }
  0x56   :  { %3193 = vmatprep.mubr.msk.bf16.mxu0 %vm1185_vm1, %v1076_v21  ;;  %v591_v60 = vadd.f32 %v3459_v5, %v328_v43  ;;  %v1078_v61 = vpack.c.bf16 %v845_v48, %v844_v47  ;;  %v592_v62 = vadd.f32 %v3459_v5, %v329_v49  ;;  %v593_v63 = vadd.f32 %v3459_v5, %v330_v53  ;;  %v75_v43 = vld [vmem:[%s5908_s0 + $0x1c8] sm:$0xff]  ;;  %v200_v47 = vld [vmem:[%s5908_s0 + $0x5b0] sm:$0xff]  ;;  %v201_v48 = vld [vmem:[%s5908_s0 + $0x5b8] sm:$0xff] }
  0x57   :  { %3318 = vmatmul.mubr.msk.bf16.gmra.mrb[36].mxu1 %vm1185_vm1, %v1139_v31  ;;  %v1141_v2 = vpack.c.bf16 %v971_v50, %v970_v46  ;;  %v718_v3 = vadd.f32 %v3459_v5, %v455_v51  ;;  %v719_v6 = vadd.f32 %v3459_v5, %v456_v52  ;;  %v1142_v9 = vpack.c.bf16 %v973_v55, %v972_v54  ;;  %v4068_v51 = vld [vmem:[%s5909_s1] ss:$0 sm:$0xff]  ;;  %v203_v55 = vld [vmem:[%s5908_s0 + $0x5c8] sm:$0xff] }
  0x58   :  { %3321 = vmatprep.mubr.msk.bf16.mxu1 %vm1185_vm1, %v1140_v34  ;;  %v720_v10 = vadd.f32 %v3459_v5, %v457_v56  ;;  %v721_v11 = vadd.f32 %v3459_v5, %v458_v57  ;;  %v846_v14 = vmax.f32 %v590_v59, 0.0  ;;  %v847_v15 = vmax.f32 %v591_v60, 0.0  ;;  %v4037_v34 = vld [vmem:[%s5910_s2] ss:$0 sm:$0xff] }
  0x59   :  { %v331_v16 = vmul.f32 %v3454_v4, %v68_v0  ;;  %v332_v17 = vmul.f32 %v3454_v4, %v69_v1  ;;  %v848_v20 = vmax.f32 %v592_v62, 0.0  ;;  %v849_v21 = vmax.f32 %v593_v63, 0.0  ;;  %v202_v54 = vld [vmem:[%s5908_s0 + $0x5c0] sm:$0xff] }
  0x5a   :  { %v333_v22 = vmul.f32 %v3454_v4, %v70_v7  ;;  %v334_v23 = vmul.f32 %v3454_v4, %v71_v8  ;;  %v974_v24 = vmax.f32 %v718_v3, 0.0  ;;  %v975_v25 = vmax.f32 %v719_v6, 0.0 }
  0x5b   :  { %v459_v26 = vmul.f32 %v3454_v4, %v196_v12  ;;  %v460_v27 = vmul.f32 %v3454_v4, %v197_v13  ;;  %v976_v28 = vmax.f32 %v720_v10, 0.0  ;;  %v977_v29 = vmax.f32 %v721_v11, 0.0  ;;  %v76_v12 = vld [vmem:[%s5908_s0 + $0x1d0] sm:$0xff]  ;;  %v77_v13 = vld [vmem:[%s5908_s0 + $0x1d8] sm:$0xff] }
  0x5c   :  { %v461_v30 = vmul.f32 %v3454_v4, %v198_v18  ;;  %v462_v31 = vmul.f32 %v3454_v4, %v199_v19  ;;  %v1079_v32 = vpack.c.bf16 %v847_v15, %v846_v14  ;;  %v594_v33 = vadd.f32 %v3459_v5, %v331_v16  ;;  %v73_v4 = vld [vmem:[%s5908_s0 + $0x1b8] sm:$0xff]  ;;  %v79_v18 = vld [vmem:[%s5908_s0 + $0x1e8] sm:$0xff] }
  0x5d   :  { %3194 = vmatmul.mubr.msk.bf16.gmra.mrb[40].mxu0 %vm1185_vm1, %v1077_v58  ;;  %v595_v35 = vadd.f32 %v4037_v34, %v332_v17  ;;  %v1080_v36 = vpack.c.bf16 %v849_v21, %v848_v20  ;;  %v596_v37 = vadd.f32 %v4037_v34, %v333_v22  ;;  %v597_v38 = vadd.f32 %v4037_v34, %v334_v23  ;;  %v78_v17 = vld [vmem:[%s5908_s0 + $0x1e0] sm:$0xff]  ;;  %v204_v22 = vld [vmem:[%s5908_s0 + $0x5d0] sm:$0xff]  ;;  %v205_v23 = vld [vmem:[%s5908_s0 + $0x5d8] sm:$0xff] }
  0x5e   :  { %3197 = vmatprep.mubr.msk.bf16.mxu0 %vm1185_vm1, %v1078_v61  ;;  %v1143_v5 = vpack.c.bf16 %v975_v25, %v974_v24  ;;  %v722_v40 = vadd.f32 %v4037_v34, %v459_v26  ;;  %v723_v41 = vadd.f32 %v4037_v34, %v460_v27  ;;  %v1144_v44 = vpack.c.bf16 %v977_v29, %v976_v28  ;;  %v206_v28 = vld [vmem:[%s5908_s0 + $0x5e0] sm:$0xff]  ;;  %v207_v29 = vld [vmem:[%s5908_s0 + $0x5e8] sm:$0xff] }
  0x5f   :  { %3322 = vmatmul.mubr.msk.bf16.gmra.mrb[40].mxu1 %vm1185_vm1, %v1141_v2  ;;  %v724_v45 = vadd.f32 %v4037_v34, %v461_v30  ;;  %v725_v46 = vadd.f32 %v4037_v34, %v462_v31  ;;  %v850_v49 = vmax.f32 %v594_v33, 0.0  ;;  %v851_v50 = vmax.f32 %v595_v35, 0.0 }
  0x60   :  { %3325 = vmatprep.mubr.msk.bf16.mxu1 %vm1185_vm1, %v1142_v9  ;;  %v335_v52 = vmul.f32 %v4068_v51, %v72_v39  ;;  %v336_v53 = vmul.f32 %v4068_v51, %v73_v4  ;;  %v852_v56 = vmax.f32 %v596_v37, 0.0  ;;  %v853_v57 = vmax.f32 %v597_v38, 0.0 }
  0x61   :  { %v337_v58 = vmul.f32 %v4068_v51, %v74_v42  ;;  %v338_v59 = vmul.f32 %v4068_v51, %v75_v43  ;;  %v978_v60 = vmax.f32 %v722_v40, 0.0  ;;  %v979_v61 = vmax.f32 %v723_v41, 0.0 }
  0x62   :  { %v463_v62 = vmul.f32 %v4068_v51, %v200_v47  ;;  %v464_v63 = vmul.f32 %v4068_v51, %v201_v48  ;;  %v980_v0 = vmax.f32 %v724_v45, 0.0  ;;  %v981_v1 = vmax.f32 %v725_v46, 0.0  ;;  %v80_v47 = vld [vmem:[%s5908_s0 + $0x1f0] sm:$0xff]  ;;  %v81_v48 = vld [vmem:[%s5908_s0 + $0x1f8] sm:$0xff] }
  0x63   :  { %v465_v2 = vmul.f32 %v4068_v51, %v202_v54  ;;  %v466_v3 = vmul.f32 %v4068_v51, %v203_v55  ;;  %v1081_v6 = vpack.c.bf16 %v851_v50, %v850_v49  ;;  %v598_v7 = vadd.f32 %v4037_v34, %v335_v52  ;;  %v83_v54 = vld [vmem:[%s5908_s0 + $0x208] sm:$0xff] }
  0x64   :  { %v599_v8 = vadd.f32 %v4037_v34, %v336_v53  ;;  %v1082_v9 = vpack.c.bf16 %v853_v57, %v852_v56  ;;  %v600_v10 = vadd.f32 %v4037_v34, %v337_v58  ;;  %v601_v11 = vadd.f32 %v4037_v34, %v338_v59  ;;  %v82_v53 = vld [vmem:[%s5908_s0 + $0x200] sm:$0xff]  ;;  %v208_v58 = vld [vmem:[%s5908_s0 + $0x5f0] sm:$0xff]  ;;  %v209_v59 = vld [vmem:[%s5908_s0 + $0x5f8] sm:$0xff] }
  0x65   :  { %3198 = vmatmul.mubr.msk.bf16.gmra.mrb[44].mxu0 %vm1185_vm1, %v1079_v32  ;;  %v1145_v14 = vpack.c.bf16 %v979_v61, %v978_v60  ;;  %v726_v15 = vadd.f32 %v4037_v34, %v463_v62  ;;  %v727_v16 = vadd.f32 %v4037_v34, %v464_v63  ;;  %v1146_v19 = vpack.c.bf16 %v981_v1, %v980_v0  ;;  %v210_v0 = vld [vmem:[%s5908_s0 + $0x600] sm:$0xff]  ;;  %v211_v1 = vld [vmem:[%s5908_s0 + $0x608] sm:$0xff] }
  0x66   :  { %3201 = vmatprep.mubr.msk.bf16.mxu0 %vm1185_vm1, %v1080_v36  ;;  %v728_v20 = vadd.f32 %v4037_v34, %v465_v2  ;;  %v729_v21 = vadd.f32 %v4037_v34, %v466_v3  ;;  %v854_v24 = vmax.f32 %v598_v7, 0.0  ;;  %v855_v25 = vmax.f32 %v599_v8, 0.0 }
  0x67   :  { %3326 = vmatmul.mubr.msk.bf16.gmra.mrb[44].mxu1 %vm1185_vm1, %v1143_v5  ;;  %v339_v26 = vmul.f32 %v4068_v51, %v76_v12  ;;  %v340_v27 = vmul.f32 %v4068_v51, %v77_v13  ;;  %v856_v30 = vmax.f32 %v600_v10, 0.0  ;;  %v857_v31 = vmax.f32 %v601_v11, 0.0 }
  0x68   :  { %3329 = vmatprep.mubr.msk.bf16.mxu1 %vm1185_vm1, %v1144_v44  ;;  %v341_v32 = vmul.f32 %v4068_v51, %v78_v17  ;;  %v342_v33 = vmul.f32 %v4068_v51, %v79_v18  ;;  %v982_v35 = vmax.f32 %v726_v15, 0.0  ;;  %v983_v36 = vmax.f32 %v727_v16, 0.0 }
  0x69   :  { %v467_v37 = vmul.f32 %v4068_v51, %v204_v22  ;;  %v468_v38 = vmul.f32 %v4068_v51, %v205_v23  ;;  %v984_v39 = vmax.f32 %v728_v20, 0.0  ;;  %v985_v4 = vmax.f32 %v729_v21, 0.0  ;;  %v84_v22 = vld [vmem:[%s5908_s0 + $0x210] sm:$0xff]  ;;  %v85_v23 = vld [vmem:[%s5908_s0 + $0x218] sm:$0xff] }
  0x6a   :  { %v469_v5 = vmul.f32 %v4068_v51, %v206_v28  ;;  %v470_v40 = vmul.f32 %v4068_v51, %v207_v29  ;;  %v1083_v41 = vpack.c.bf16 %v855_v25, %v854_v24  ;;  %v602_v42 = vadd.f32 %v4037_v34, %v339_v26  ;;  %v87_v28 = vld [vmem:[%s5908_s0 + $0x228] sm:$0xff] }
  0x6b   :  { %v603_v43 = vadd.f32 %v4037_v34, %v340_v27  ;;  %v1084_v44 = vpack.c.bf16 %v857_v31, %v856_v30  ;;  %v604_v45 = vadd.f32 %v4037_v34, %v341_v32  ;;  %v605_v46 = vadd.f32 %v4037_v34, %v342_v33  ;;  %v86_v27 = vld [vmem:[%s5908_s0 + $0x220] sm:$0xff]  ;;  %v212_v32 = vld [vmem:[%s5908_s0 + $0x610] sm:$0xff]  ;;  %v213_v33 = vld [vmem:[%s5908_s0 + $0x618] sm:$0xff] }
  0x6c   :  { %v1147_v49 = vpack.c.bf16 %v983_v36, %v982_v35  ;;  %v730_v50 = vadd.f32 %v4037_v34, %v467_v37  ;;  %v731_v52 = vadd.f32 %v4037_v34, %v468_v38  ;;  %v1148_v55 = vpack.c.bf16 %v985_v4, %v984_v39  ;;  %v214_v39 = vld [vmem:[%s5908_s0 + $0x620] sm:$0xff]  ;;  %v215_v4 = vld [vmem:[%s5908_s0 + $0x628] sm:$0xff] }
  0x6d   :  { %3202 = vmatmul.mubr.msk.bf16.gmra.mrb[48].mxu0 %vm1185_vm1, %v1081_v6  ;;  %v732_v56 = vadd.f32 %v4037_v34, %v469_v5  ;;  %v733_v57 = vadd.f32 %v4037_v34, %v470_v40  ;;  %v858_v60 = vmax.f32 %v602_v42, 0.0  ;;  %v859_v61 = vmax.f32 %v603_v43, 0.0 }
  0x6e   :  { %3205 = vmatprep.mubr.msk.bf16.mxu0 %vm1185_vm1, %v1082_v9  ;;  %v343_v62 = vmul.f32 %v4068_v51, %v80_v47  ;;  %v344_v63 = vmul.f32 %v4068_v51, %v81_v48  ;;  %v860_v2 = vmax.f32 %v604_v45, 0.0  ;;  %v861_v3 = vmax.f32 %v605_v46, 0.0 }
  0x6f   :  { %3330 = vmatmul.mubr.msk.bf16.gmra.mrb[48].mxu1 %vm1185_vm1, %v1145_v14  ;;  %v345_v6 = vmul.f32 %v4068_v51, %v82_v53  ;;  %v346_v7 = vmul.f32 %v4068_v51, %v83_v54  ;;  %v986_v8 = vmax.f32 %v730_v50, 0.0  ;;  %v987_v9 = vmax.f32 %v731_v52, 0.0 }
  0x70   :  { %3333 = vmatprep.mubr.msk.bf16.mxu1 %vm1185_vm1, %v1146_v19  ;;  %v471_v10 = vmul.f32 %v4068_v51, %v208_v58  ;;  %v472_v11 = vmul.f32 %v4068_v51, %v209_v59  ;;  %v988_v12 = vmax.f32 %v732_v56, 0.0  ;;  %v989_v13 = vmax.f32 %v733_v57, 0.0  ;;  %v88_v58 = vld [vmem:[%s5908_s0 + $0x230] sm:$0xff]  ;;  %v89_v59 = vld [vmem:[%s5908_s0 + $0x238] sm:$0xff] }
  0x71   :  { %v473_v14 = vmul.f32 %v4068_v51, %v210_v0  ;;  %v474_v15 = vmul.f32 %v4068_v51, %v211_v1  ;;  %v1085_v16 = vpack.c.bf16 %v859_v61, %v858_v60  ;;  %v606_v17 = vadd.f32 %v4037_v34, %v343_v62  ;;  %v91_v0 = vld [vmem:[%s5908_s0 + $0x248] sm:$0xff] }
  0x72   :  { %v607_v18 = vadd.f32 %v4037_v34, %v344_v63  ;;  %v1086_v19 = vpack.c.bf16 %v861_v3, %v860_v2  ;;  %v608_v20 = vadd.f32 %v4037_v34, %v345_v6  ;;  %v609_v21 = vadd.f32 %v4037_v34, %v346_v7  ;;  %v90_v63 = vld [vmem:[%s5908_s0 + $0x240] sm:$0xff]  ;;  %v216_v6 = vld [vmem:[%s5908_s0 + $0x630] sm:$0xff]  ;;  %v217_v7 = vld [vmem:[%s5908_s0 + $0x638] sm:$0xff] }
  0x73   :  { %v1149_v24 = vpack.c.bf16 %v987_v9, %v986_v8  ;;  %v734_v25 = vadd.f32 %v4037_v34, %v471_v10  ;;  %v735_v26 = vadd.f32 %v4037_v34, %v472_v11  ;;  %v1150_v29 = vpack.c.bf16 %v989_v13, %v988_v12  ;;  %v218_v12 = vld [vmem:[%s5908_s0 + $0x640] sm:$0xff]  ;;  %v219_v13 = vld [vmem:[%s5908_s0 + $0x648] sm:$0xff] }
  0x74   :  { %v736_v30 = vadd.f32 %v4037_v34, %v473_v14  ;;  %v737_v31 = vadd.f32 %v4037_v34, %v474_v15  ;;  %v862_v35 = vmax.f32 %v606_v17, 0.0  ;;  %v863_v36 = vmax.f32 %v607_v18, 0.0 }
  0x75   :  { %3206 = vmatmul.mubr.msk.bf16.gmra.mrb[52].mxu0 %vm1185_vm1, %v1083_v41  ;;  %v347_v37 = vmul.f32 %v4068_v51, %v84_v22  ;;  %v348_v38 = vmul.f32 %v4068_v51, %v85_v23  ;;  %v864_v5 = vmax.f32 %v608_v20, 0.0  ;;  %v865_v40 = vmax.f32 %v609_v21, 0.0 }
  0x76   :  { %3209 = vmatprep.mubr.msk.bf16.mxu0 %vm1185_vm1, %v1084_v44  ;;  %v349_v41 = vmul.f32 %v4068_v51, %v86_v27  ;;  %v350_v42 = vmul.f32 %v4068_v51, %v87_v28  ;;  %v990_v43 = vmax.f32 %v734_v25, 0.0  ;;  %v991_v44 = vmax.f32 %v735_v26, 0.0 }
  0x77   :  { %3334 = vmatmul.mubr.msk.bf16.gmra.mrb[52].mxu1 %vm1185_vm1, %v1147_v49  ;;  %v475_v45 = vmul.f32 %v4068_v51, %v212_v32  ;;  %v476_v46 = vmul.f32 %v4068_v51, %v213_v33  ;;  %v992_v47 = vmax.f32 %v736_v30, 0.0  ;;  %v993_v48 = vmax.f32 %v737_v31, 0.0  ;;  %v92_v32 = vld [vmem:[%s5908_s0 + $0x250] sm:$0xff]  ;;  %v93_v33 = vld [vmem:[%s5908_s0 + $0x258] sm:$0xff] }
  0x78   :  { %3337 = vmatprep.mubr.msk.bf16.mxu1 %vm1185_vm1, %v1148_v55  ;;  %v477_v49 = vmul.f32 %v4068_v51, %v214_v39  ;;  %v478_v50 = vmul.f32 %v4068_v51, %v215_v4  ;;  %v1087_v52 = vpack.c.bf16 %v863_v36, %v862_v35  ;;  %v610_v53 = vadd.f32 %v4037_v34, %v347_v37  ;;  %v95_v39 = vld [vmem:[%s5908_s0 + $0x268] sm:$0xff] }
  0x79   :  { %v611_v54 = vadd.f32 %v4037_v34, %v348_v38  ;;  %v1088_v55 = vpack.c.bf16 %v865_v40, %v864_v5  ;;  %v612_v56 = vadd.f32 %v4037_v34, %v349_v41  ;;  %v613_v57 = vadd.f32 %v4037_v34, %v350_v42  ;;  %v94_v38 = vld [vmem:[%s5908_s0 + $0x260] sm:$0xff]  ;;  %v220_v41 = vld [vmem:[%s5908_s0 + $0x650] sm:$0xff]  ;;  %v221_v42 = vld [vmem:[%s5908_s0 + $0x658] sm:$0xff] }
  0x7a   :  { %v1151_v60 = vpack.c.bf16 %v991_v44, %v990_v43  ;;  %v738_v61 = vadd.f32 %v4037_v34, %v475_v45  ;;  %v739_v62 = vadd.f32 %v4037_v34, %v476_v46  ;;  %v1152_v1 = vpack.c.bf16 %v993_v48, %v992_v47  ;;  %v222_v47 = vld [vmem:[%s5908_s0 + $0x660] sm:$0xff]  ;;  %v223_v48 = vld [vmem:[%s5908_s0 + $0x668] sm:$0xff] }
  0x7b   :  { %v740_v2 = vadd.f32 %v4037_v34, %v477_v49  ;;  %v741_v3 = vadd.f32 %v4037_v34, %v478_v50  ;;  %v866_v8 = vmax.f32 %v610_v53, 0.0  ;;  %v867_v9 = vmax.f32 %v611_v54, 0.0 }
  0x7c   :  { %v351_v10 = vmul.f32 %v4068_v51, %v88_v58  ;;  %v352_v11 = vmul.f32 %v4068_v51, %v89_v59  ;;  %v868_v14 = vmax.f32 %v612_v56, 0.0  ;;  %v869_v15 = vmax.f32 %v613_v57, 0.0 }
  0x7d   :  { %3210 = vmatmul.mubr.msk.bf16.gmra.mrb[56].mxu0 %vm1185_vm1, %v1085_v16  ;;  %v353_v16 = vmul.f32 %v4068_v51, %v90_v63  ;;  %v354_v17 = vmul.f32 %v4068_v51, %v91_v0  ;;  %v994_v18 = vmax.f32 %v738_v61, 0.0  ;;  %v479_v20 = vmul.f32 %v4068_v51, %v216_v6  ;;  %v96_v6 = vld [vmem:[%s5908_s0 + $0x270] sm:$0xff] }
  0x7e   :  { %3213 = vmatprep.mubr.msk.bf16.mxu0 %vm1185_vm1, %v1086_v19  ;;  %v995_v19 = vmax.f32 %v739_v62, 0.0  ;;  %v480_v21 = vmul.f32 %v4068_v51, %v217_v7  ;;  %v996_v22 = vmax.f32 %v740_v2, 0.0  ;;  %v997_v23 = vmax.f32 %v741_v3, 0.0  ;;  %v97_v7 = vld [vmem:[%s5908_s0 + $0x278] sm:$0xff] }
  0x7f   :  { %3338 = vmatmul.mubr.msk.bf16.gmra.mrb[56].mxu1 %vm1185_vm1, %v1149_v24  ;;  %v481_v24 = vmul.f32 %v4068_v51, %v218_v12  ;;  %v482_v25 = vmul.f32 %v4068_v51, %v219_v13  ;;  %v1089_v26 = vpack.c.bf16 %v867_v9, %v866_v8  ;;  %v614_v27 = vadd.f32 %v4037_v34, %v351_v10  ;;  %v99_v12 = vld [vmem:[%s5908_s0 + $0x288] sm:$0xff] }
  0x80   :  { %3341 = vmatprep.mubr.msk.bf16.mxu1 %vm1185_vm1, %v1150_v29  ;;  %v615_v28 = vadd.f32 %v4037_v34, %v352_v11  ;;  %v1090_v29 = vpack.c.bf16 %v869_v15, %v868_v14  ;;  %v616_v30 = vadd.f32 %v4037_v34, %v353_v16  ;;  %v617_v31 = vadd.f32 %v4037_v34, %v354_v17  ;;  %v98_v11 = vld [vmem:[%s5908_s0 + $0x280] sm:$0xff]  ;;  %v224_v16 = vld [vmem:[%s5908_s0 + $0x670] sm:$0xff]  ;;  %v225_v17 = vld [vmem:[%s5908_s0 + $0x678] sm:$0xff] }
  0x81   :  { %v1153_v35 = vpack.c.bf16 %v995_v19, %v994_v18  ;;  %v742_v36 = vadd.f32 %v4037_v34, %v479_v20  ;;  %v743_v37 = vadd.f32 %v4037_v34, %v480_v21  ;;  %v1154_v4 = vpack.c.bf16 %v997_v23, %v996_v22  ;;  %v226_v22 = vld [vmem:[%s5908_s0 + $0x680] sm:$0xff]  ;;  %v227_v23 = vld [vmem:[%s5908_s0 + $0x688] sm:$0xff] }
  0x82   :  { %v744_v5 = vadd.f32 %v4037_v34, %v481_v24  ;;  %v745_v40 = vadd.f32 %v4037_v34, %v482_v25  ;;  %v870_v43 = vmax.f32 %v614_v27, 0.0  ;;  %v871_v44 = vmax.f32 %v615_v28, 0.0 }
  0x83   :  { %v355_v45 = vmul.f32 %v4068_v51, %v92_v32  ;;  %v356_v46 = vmul.f32 %v4068_v51, %v93_v33  ;;  %v872_v49 = vmax.f32 %v616_v30, 0.0  ;;  %v873_v50 = vmax.f32 %v617_v31, 0.0 }
  0x84   :  { %v358_v53 = vmul.f32 %v4068_v51, %v95_v39  ;;  %v998_v54 = vmax.f32 %v742_v36, 0.0  ;;  %v483_v56 = vmul.f32 %v4068_v51, %v220_v41  ;;  %v484_v57 = vmul.f32 %v4068_v51, %v221_v42  ;;  %v100_v41 = vld [vmem:[%s5908_s0 + $0x290] sm:$0xff]  ;;  %v101_v42 = vld [vmem:[%s5908_s0 + $0x298] sm:$0xff] }
  0x85   :  { %3214 = vmatmul.mubr.msk.bf16.gmra.mrb[60].mxu0 %vm1185_vm1, %v1087_v52  ;;  %v357_v52 = vmul.f32 %v4068_v51, %v94_v38  ;;  %v1000_v58 = vmax.f32 %v744_v5, 0.0  ;;  %v1001_v59 = vmax.f32 %v745_v40, 0.0  ;;  %v486_v61 = vmul.f32 %v4068_v51, %v223_v48 }
  0x86   :  { %3217 = vmatprep.mubr.msk.bf16.mxu0 %vm1185_vm1, %v1088_v55  ;;  %v999_v55 = vmax.f32 %v743_v37, 0.0  ;;  %v1091_v62 = vpack.c.bf16 %v871_v44, %v870_v43  ;;  %v618_v63 = vadd.f32 %v4037_v34, %v355_v45  ;;  %v619_v0 = vadd.f32 %v4037_v34, %v356_v46  ;;  %v102_v46 = vld [vmem:[%s5908_s0 + $0x2a0] sm:$0xff] }
  0x87   :  { %3342 = vmatmul.mubr.msk.bf16.gmra.mrb[60].mxu1 %vm1185_vm1, %v1151_v60  ;;  %v485_v60 = vmul.f32 %v4068_v51, %v222_v47  ;;  %v620_v2 = vadd.f32 %v4037_v34, %v357_v52  ;;  %v621_v3 = vadd.f32 %v4037_v34, %v358_v53  ;;  %v746_v9 = vadd.f32 %v4037_v34, %v483_v56  ;;  %v103_v47 = vld [vmem:[%s5908_s0 + $0x2a8] sm:$0xff]  ;;  %v228_v52 = vld [vmem:[%s5908_s0 + $0x690] sm:$0xff]  ;;  %v229_v53 = vld [vmem:[%s5908_s0 + $0x698] sm:$0xff] }
  0x88   :  { %3345 = vmatprep.mubr.msk.bf16.mxu1 %vm1185_vm1, %v1152_v1  ;;  %v1092_v1 = vpack.c.bf16 %v873_v50, %v872_v49  ;;  %v1155_v8 = vpack.c.bf16 %v999_v55, %v998_v54  ;;  %v747_v10 = vadd.f32 %v4037_v34, %v484_v57  ;;  %v1156_v13 = vpack.c.bf16 %v1001_v59, %v1000_v58  ;;  %v230_v58 = vld [vmem:[%s5908_s0 + $0x6a0] sm:$0xff]  ;;  %v231_v59 = vld [vmem:[%s5908_s0 + $0x6a8] sm:$0xff] }
  0x89   :  { %v748_v14 = vadd.f32 %v4037_v34, %v485_v60  ;;  %v749_v15 = vadd.f32 %v4037_v34, %v486_v61  ;;  %v874_v18 = vmax.f32 %v618_v63, 0.0  ;;  %v875_v19 = vmax.f32 %v619_v0, 0.0 }
  0x8a   :  { %v359_v20 = vmul.f32 %v4068_v51, %v96_v6  ;;  %v360_v21 = vmul.f32 %v4068_v51, %v97_v7  ;;  %v876_v24 = vmax.f32 %v620_v2, 0.0  ;;  %v877_v25 = vmax.f32 %v621_v3, 0.0 }
  0x8b   :  { %v362_v27 = vmul.f32 %v4068_v51, %v99_v12  ;;  %v1002_v28 = vmax.f32 %v746_v9, 0.0  ;;  %v487_v30 = vmul.f32 %v4068_v51, %v224_v16  ;;  %v488_v31 = vmul.f32 %v4068_v51, %v225_v17  ;;  %v104_v16 = vld [vmem:[%s5908_s0 + $0x2b0] sm:$0xff]  ;;  %v105_v17 = vld [vmem:[%s5908_s0 + $0x2b8] sm:$0xff] }
  0x8c   :  { %v1004_v32 = vmax.f32 %v748_v14, 0.0  ;;  %v1005_v33 = vmax.f32 %v749_v15, 0.0  ;;  %v490_v36 = vmul.f32 %v4068_v51, %v227_v23  ;;  %v1093_v37 = vpack.c.bf16 %v875_v19, %v874_v18 }
  0x8d   :  { %3218 = vmatmul.mubr.msk.bf16.gmra.mrb[64].mxu0 %vm1185_vm1, %v1089_v26  ;;  %v361_v26 = vmul.f32 %v4068_v51, %v98_v11  ;;  %v622_v38 = vadd.f32 %v4037_v34, %v359_v20  ;;  %v623_v39 = vadd.f32 %v4037_v34, %v360_v21  ;;  %v625_v40 = vadd.f32 %v4037_v34, %v362_v27  ;;  %v106_v21 = vld [vmem:[%s5908_s0 + $0x2c0] sm:$0xff]  ;;  %v233_v27 = vld [vmem:[%s5908_s0 + $0x6b8] sm:$0xff] }
  0x8e   :  { %3221 = vmatprep.mubr.msk.bf16.mxu0 %vm1185_vm1, %v1090_v29  ;;  %v1003_v29 = vmax.f32 %v747_v10, 0.0  ;;  %v750_v44 = vadd.f32 %v4037_v34, %v487_v30  ;;  %v751_v45 = vadd.f32 %v4037_v34, %v488_v31  ;;  %v1158_v48 = vpack.c.bf16 %v1005_v33, %v1004_v32  ;;  %v234_v32 = vld [vmem:[%s5908_s0 + $0x6c0] sm:$0xff]  ;;  %v235_v33 = vld [vmem:[%s5908_s0 + $0x6c8] sm:$0xff] }
  0x8f   :  { %3346 = vmatmul.mubr.msk.bf16.gmra.mrb[64].mxu1 %vm1185_vm1, %v1153_v35  ;;  %v489_v35 = vmul.f32 %v4068_v51, %v226_v22  ;;  %v624_v5 = vadd.f32 %v4037_v34, %v361_v26  ;;  %v753_v50 = vadd.f32 %v4037_v34, %v490_v36  ;;  %v878_v54 = vmax.f32 %v622_v38, 0.0  ;;  %v107_v22 = vld [vmem:[%s5908_s0 + $0x2c8] sm:$0xff]  ;;  %v232_v26 = vld [vmem:[%s5908_s0 + $0x6b0] sm:$0xff] }
  0x90   :  { %3349 = vmatprep.mubr.msk.bf16.mxu1 %vm1185_vm1, %v1154_v4  ;;  %v1094_v4 = vpack.c.bf16 %v877_v25, %v876_v24  ;;  %v1157_v43 = vpack.c.bf16 %v1003_v29, %v1002_v28  ;;  %v879_v55 = vmax.f32 %v623_v39, 0.0  ;;  %v363_v56 = vmul.f32 %v4068_v51, %v100_v41 }
  0x91   :  { %v752_v49 = vadd.f32 %v4037_v34, %v489_v35  ;;  %v364_v57 = vmul.f32 %v4068_v51, %v101_v42  ;;  %v880_v60 = vmax.f32 %v624_v5, 0.0  ;;  %v881_v61 = vmax.f32 %v625_v40, 0.0 }
  0x92   :  { %v366_v63 = vmul.f32 %v4068_v51, %v103_v47  ;;  %v1006_v0 = vmax.f32 %v750_v44, 0.0  ;;  %v491_v2 = vmul.f32 %v4068_v51, %v228_v52  ;;  %v492_v3 = vmul.f32 %v4068_v51, %v229_v53  ;;  %v108_v52 = vld [vmem:[%s5908_s0 + $0x2d0] sm:$0xff]  ;;  %v109_v53 = vld [vmem:[%s5908_s0 + $0x2d8] sm:$0xff] }
  0x93   :  { %v1008_v6 = vmax.f32 %v752_v49, 0.0  ;;  %v1009_v7 = vmax.f32 %v753_v50, 0.0  ;;  %v494_v9 = vmul.f32 %v4068_v51, %v231_v59  ;;  %v1095_v10 = vpack.c.bf16 %v879_v55, %v878_v54 }
  0x94   :  { %v626_v11 = vadd.f32 %v4037_v34, %v363_v56  ;;  %v627_v12 = vadd.f32 %v4037_v34, %v364_v57  ;;  %v629_v15 = vadd.f32 %v4037_v34, %v366_v63  ;;  %v754_v19 = vadd.f32 %v4037_v34, %v491_v2  ;;  %v110_v57 = vld [vmem:[%s5908_s0 + $0x2e0] sm:$0xff]  ;;  %v237_v63 = vld [vmem:[%s5908_s0 + $0x6d8] sm:$0xff] }
  0x95   :  { %3222 = vmatmul.mubr.msk.bf16.gmra.mrb[68].mxu0 %vm1185_vm1, %v1091_v62  ;;  %v365_v62 = vmul.f32 %v4068_v51, %v102_v46  ;;  %v755_v20 = vadd.f32 %v4037_v34, %v492_v3  ;;  %v1160_v23 = vpack.c.bf16 %v1009_v7, %v1008_v6  ;;  %v757_v25 = vadd.f32 %v4037_v34, %v494_v9  ;;  %v238_v6 = vld [vmem:[%s5908_s0 + $0x6e0] sm:$0xff]  ;;  %v239_v7 = vld [vmem:[%s5908_s0 + $0x6e8] sm:$0xff] }
  0x96   :  { %3225 = vmatprep.mubr.msk.bf16.mxu0 %vm1185_vm1, %v1092_v1  ;;  %v1007_v1 = vmax.f32 %v751_v45, 0.0  ;;  %v882_v28 = vmax.f32 %v626_v11, 0.0  ;;  %v883_v29 = vmax.f32 %v627_v12, 0.0  ;;  %v367_v30 = vmul.f32 %v4068_v51, %v104_v16 }
  0x97   :  { %3350 = vmatmul.mubr.msk.bf16.gmra.mrb[68].mxu1 %vm1185_vm1, %v1155_v8  ;;  %v493_v8 = vmul.f32 %v4068_v51, %v230_v58  ;;  %v628_v14 = vadd.f32 %v4037_v34, %v365_v62  ;;  %v368_v31 = vmul.f32 %v4068_v51, %v105_v17  ;;  %v885_v36 = vmax.f32 %v629_v15, 0.0  ;;  %v111_v58 = vld [vmem:[%s5908_s0 + $0x2e8] sm:$0xff]  ;;  %v236_v62 = vld [vmem:[%s5908_s0 + $0x6d0] sm:$0xff] }
  0x98   :  { %3353 = vmatprep.mubr.msk.bf16.mxu1 %vm1185_vm1, %v1156_v13  ;;  %v1096_v13 = vpack.c.bf16 %v881_v61, %v880_v60  ;;  %v1159_v18 = vpack.c.bf16 %v1007_v1, %v1006_v0  ;;  %v370_v38 = vmul.f32 %v4068_v51, %v107_v22  ;;  %v1010_v39 = vmax.f32 %v754_v19, 0.0 }
  0x99   :  { %v756_v24 = vadd.f32 %v4037_v34, %v493_v8  ;;  %v884_v35 = vmax.f32 %v628_v14, 0.0  ;;  %v495_v5 = vmul.f32 %v4068_v51, %v232_v26  ;;  %v496_v40 = vmul.f32 %v4068_v51, %v233_v27  ;;  %v112_v26 = vld [vmem:[%s5908_s0 + $0x2f0] sm:$0xff]  ;;  %v113_v27 = vld [vmem:[%s5908_s0 + $0x2f8] sm:$0xff] }
  0x9a   :  { %v1013_v42 = vmax.f32 %v757_v25, 0.0  ;;  %v498_v44 = vmul.f32 %v4068_v51, %v235_v33  ;;  %v1097_v45 = vpack.c.bf16 %v883_v29, %v882_v28  ;;  %v630_v46 = vadd.f32 %v4037_v34, %v367_v30 }
  0x9b   :  { %v1012_v41 = vmax.f32 %v756_v24, 0.0  ;;  %v631_v47 = vadd.f32 %v4037_v34, %v368_v31  ;;  %v633_v50 = vadd.f32 %v4037_v34, %v370_v38  ;;  %v758_v55 = vadd.f32 %v4037_v34, %v495_v5  ;;  %v114_v31 = vld [vmem:[%s5908_s0 + $0x300] sm:$0xff]  ;;  %v241_v38 = vld [vmem:[%s5908_s0 + $0x6f8] sm:$0xff] }
  0x9c   :  { %v759_v56 = vadd.f32 %v4037_v34, %v496_v40  ;;  %v761_v61 = vadd.f32 %v4037_v34, %v498_v44  ;;  %v886_v0 = vmax.f32 %v630_v46, 0.0  ;;  %v371_v2 = vmul.f32 %v4068_v51, %v108_v52 }
  0x9d   :  { %3226 = vmatmul.mubr.msk.bf16.gmra.mrb[72].mxu0 %vm1185_vm1, %v1093_v37  ;;  %v369_v37 = vmul.f32 %v4068_v51, %v106_v21  ;;  %v1162_v59 = vpack.c.bf16 %v1013_v42, %v1012_v41  ;;  %v887_v1 = vmax.f32 %v631_v47, 0.0  ;;  %v372_v3 = vmul.f32 %v4068_v51, %v109_v53  ;;  %v242_v41 = vld [vmem:[%s5908_s0 + $0x700] sm:$0xff]  ;;  %v243_v42 = vld [vmem:[%s5908_s0 + $0x708] sm:$0xff] }
  0x9e   :  { %3229 = vmatprep.mubr.msk.bf16.mxu0 %vm1185_vm1, %v1094_v4  ;;  %v1011_v4 = vmax.f32 %v755_v20, 0.0  ;;  %v889_v9 = vmax.f32 %v633_v50, 0.0  ;;  %v374_v11 = vmul.f32 %v4068_v51, %v111_v58  ;;  %v1014_v12 = vmax.f32 %v758_v55, 0.0 }
  0x9f   :  { %3354 = vmatmul.mubr.msk.bf16.gmra.mrb[72].mxu1 %vm1185_vm1, %v1157_v43  ;;  %v497_v43 = vmul.f32 %v4068_v51, %v234_v32  ;;  %v632_v49 = vadd.f32 %v4037_v34, %v369_v37  ;;  %v499_v14 = vmul.f32 %v4068_v51, %v236_v62  ;;  %v500_v15 = vmul.f32 %v4068_v51, %v237_v63  ;;  %v115_v32 = vld [vmem:[%s5908_s0 + $0x308] sm:$0xff]  ;;  %v240_v37 = vld [vmem:[%s5908_s0 + $0x6f0] sm:$0xff]  ;;  %v117_v63 = vld [vmem:[%s5908_s0 + $0x318] sm:$0xff] }
  0xa0   :  { %3357 = vmatprep.mubr.msk.bf16.mxu1 %vm1185_vm1, %v1158_v48  ;;  %v1098_v48 = vpack.c.bf16 %v885_v36, %v884_v35  ;;  %v1161_v54 = vpack.c.bf16 %v1011_v4, %v1010_v39  ;;  %v1017_v17 = vmax.f32 %v761_v61, 0.0  ;;  %v502_v19 = vmul.f32 %v4068_v51, %v239_v7  ;;  %v116_v62 = vld [vmem:[%s5908_s0 + $0x310] sm:$0xff] }
  0xa1   :  { %v760_v60 = vadd.f32 %v4037_v34, %v497_v43  ;;  %v888_v8 = vmax.f32 %v632_v49, 0.0  ;;  %v1099_v20 = vpack.c.bf16 %v887_v1, %v886_v0  ;;  %v634_v21 = vadd.f32 %v4037_v34, %v371_v2 }
  0xa2   :  { %v635_v22 = vadd.f32 %v4037_v34, %v372_v3  ;;  %v637_v25 = vadd.f32 %v4037_v34, %v374_v11  ;;  %v762_v29 = vadd.f32 %v4037_v34, %v499_v14  ;;  %v763_v30 = vadd.f32 %v4037_v34, %v500_v15  ;;  %v118_v3 = vld [vmem:[%s5908_s0 + $0x320] sm:$0xff]  ;;  %v245_v11 = vld [vmem:[%s5908_s0 + $0x718] sm:$0xff] }
  0xa3   :  { %v1016_v16 = vmax.f32 %v760_v60, 0.0  ;;  %v765_v36 = vadd.f32 %v4037_v34, %v502_v19  ;;  %v890_v39 = vmax.f32 %v634_v21, 0.0  ;;  %v375_v5 = vmul.f32 %v4068_v51, %v112_v26 }
  0xa4   :  { %v891_v4 = vmax.f32 %v635_v22, 0.0  ;;  %v376_v40 = vmul.f32 %v4068_v51, %v113_v27  ;;  %v893_v44 = vmax.f32 %v637_v25, 0.0  ;;  %v378_v46 = vmul.f32 %v4068_v51, %v115_v32 }
  0xa5   :  { %3230 = vmatmul.mubr.msk.bf16.gmra.mrb[76].mxu0 %vm1185_vm1, %v1095_v10  ;;  %v373_v10 = vmul.f32 %v4068_v51, %v110_v57  ;;  %v1164_v33 = vpack.c.bf16 %v1017_v17, %v1016_v16  ;;  %v1018_v47 = vmax.f32 %v762_v29, 0.0  ;;  %v503_v49 = vmul.f32 %v4068_v51, %v240_v37  ;;  %v246_v16 = vld [vmem:[%s5908_s0 + $0x720] sm:$0xff]  ;;  %v247_v17 = vld [vmem:[%s5908_s0 + $0x728] sm:$0xff]  ;;  %v120_v37 = vld [vmem:[%s5908_s0 + $0x330] sm:$0xff] }
  0xa6   :  { %3233 = vmatprep.mubr.msk.bf16.mxu0 %vm1185_vm1, %v1096_v13  ;;  %v1015_v13 = vmax.f32 %v759_v56, 0.0  ;;  %v504_v50 = vmul.f32 %v4068_v51, %v241_v38  ;;  %v1021_v53 = vmax.f32 %v765_v36, 0.0  ;;  %v506_v55 = vmul.f32 %v4068_v51, %v243_v42  ;;  %v121_v38 = vld [vmem:[%s5908_s0 + $0x338] sm:$0xff] }
  0xa7   :  { %3358 = vmatmul.mubr.msk.bf16.gmra.mrb[76].mxu1 %vm1185_vm1, %v1159_v18  ;;  %v501_v18 = vmul.f32 %v4068_v51, %v238_v6  ;;  %v636_v24 = vadd.f32 %v4037_v34, %v373_v10  ;;  %v1101_v56 = vpack.c.bf16 %v891_v4, %v890_v39  ;;  %v638_v57 = vadd.f32 %v4037_v34, %v375_v5  ;;  %v119_v6 = vld [vmem:[%s5908_s0 + $0x328] sm:$0xff]  ;;  %v244_v10 = vld [vmem:[%s5908_s0 + $0x710] sm:$0xff] }
  0xa8   :  { %3361 = vmatprep.mubr.msk.bf16.mxu1 %vm1185_vm1, %v1160_v23  ;;  %v1100_v23 = vpack.c.bf16 %v889_v9, %v888_v8  ;;  %v1163_v28 = vpack.c.bf16 %v1015_v13, %v1014_v12  ;;  %v639_v58 = vadd.f32 %v4037_v34, %v376_v40  ;;  %v641_v61 = vadd.f32 %v4037_v34, %v378_v46  ;;  %v122_v40 = vld [vmem:[%s5908_s0 + $0x340] sm:$0xff]  ;;  %v249_v46 = vld [vmem:[%s5908_s0 + $0x738] sm:$0xff] }
  0xa9   :  { %v764_v35 = vadd.f32 %v4037_v34, %v501_v18  ;;  %v892_v43 = vmax.f32 %v636_v24, 0.0  ;;  %v766_v1 = vadd.f32 %v4037_v34, %v503_v49  ;;  %v767_v2 = vadd.f32 %v4037_v34, %v504_v50 }
  0xaa   :  { %v769_v9 = vadd.f32 %v4037_v34, %v506_v55  ;;  %v894_v12 = vmax.f32 %v638_v57, 0.0  ;;  %v895_v13 = vmax.f32 %v639_v58, 0.0  ;;  %v379_v14 = vmul.f32 %v4068_v51, %v116_v62 }
  0xab   :  { %v1020_v52 = vmax.f32 %v764_v35, 0.0  ;;  %v380_v15 = vmul.f32 %v4068_v51, %v117_v63  ;;  %v897_v19 = vmax.f32 %v641_v61, 0.0  ;;  %v382_v21 = vmul.f32 %v4068_v51, %v119_v6 }
  0xac   :  { %v1022_v22 = vmax.f32 %v766_v1, 0.0  ;;  %v507_v24 = vmul.f32 %v4068_v51, %v244_v10  ;;  %v508_v25 = vmul.f32 %v4068_v51, %v245_v11  ;;  %v1025_v27 = vmax.f32 %v769_v9, 0.0  ;;  %v124_v10 = vld [vmem:[%s5908_s0 + $0x350] sm:$0xff] }
  0xad   :  { %3234 = vmatmul.mubr.msk.bf16.gmra.mrb[80].mxu0 %vm1185_vm1, %v1097_v45  ;;  %v377_v45 = vmul.f32 %v4068_v51, %v114_v31  ;;  %v1166_v7 = vpack.c.bf16 %v1021_v53, %v1020_v52  ;;  %v510_v29 = vmul.f32 %v4068_v51, %v247_v17  ;;  %v642_v31 = vadd.f32 %v4037_v34, %v379_v14  ;;  %v251_v52 = vld [vmem:[%s5908_s0 + $0x748] sm:$0xff]  ;;  %v126_v14 = vld [vmem:[%s5908_s0 + $0x360] sm:$0xff] }
  0xae   :  { %3237 = vmatprep.mubr.msk.bf16.mxu0 %vm1185_vm1, %v1098_v48  ;;  %v1019_v48 = vmax.f32 %v763_v30, 0.0  ;;  %v1103_v30 = vpack.c.bf16 %v895_v13, %v894_v12  ;;  %v643_v32 = vadd.f32 %v4037_v34, %v380_v15  ;;  %v645_v36 = vadd.f32 %v4037_v34, %v382_v21  ;;  %v127_v15 = vld [vmem:[%s5908_s0 + $0x368] sm:$0xff] }
  0xaf   :  { %3362 = vmatmul.mubr.msk.bf16.gmra.mrb[80].mxu1 %vm1185_vm1, %v1161_v54  ;;  %v505_v54 = vmul.f32 %v4068_v51, %v242_v41  ;;  %v640_v60 = vadd.f32 %v4037_v34, %v377_v45  ;;  %v770_v4 = vadd.f32 %v4037_v34, %v507_v24  ;;  %v771_v5 = vadd.f32 %v4037_v34, %v508_v25  ;;  %v123_v41 = vld [vmem:[%s5908_s0 + $0x348] sm:$0xff]  ;;  %v248_v45 = vld [vmem:[%s5908_s0 + $0x730] sm:$0xff] }
  0xb0   :  { %3365 = vmatprep.mubr.msk.bf16.mxu1 %vm1185_vm1, %v1162_v59  ;;  %v1102_v59 = vpack.c.bf16 %v893_v44, %v892_v43  ;;  %v1165_v0 = vpack.c.bf16 %v1019_v48, %v1018_v47  ;;  %v773_v44 = vadd.f32 %v4037_v34, %v510_v29  ;;  %v898_v47 = vmax.f32 %v642_v31, 0.0 }
  0xb1   :  { %v768_v8 = vadd.f32 %v4037_v34, %v505_v54  ;;  %v896_v18 = vmax.f32 %v640_v60, 0.0  ;;  %v899_v48 = vmax.f32 %v643_v32, 0.0  ;;  %v383_v49 = vmul.f32 %v4068_v51, %v120_v37 }
  0xb2   :  { %v384_v50 = vmul.f32 %v4068_v51, %v121_v38  ;;  %v901_v54 = vmax.f32 %v645_v36, 0.0  ;;  %v385_v55 = vmul.f32 %v4068_v51, %v122_v40  ;;  %v1026_v57 = vmax.f32 %v770_v4, 0.0 }
  0xb3   :  { %v1024_v26 = vmax.f32 %v768_v8, 0.0  ;;  %v1027_v58 = vmax.f32 %v771_v5, 0.0  ;;  %v512_v60 = vmul.f32 %v4068_v51, %v249_v46  ;;  %v1029_v62 = vmax.f32 %v773_v44, 0.0  ;;  %v129_v46 = vld [vmem:[%s5908_s0 + $0x378] sm:$0xff] }
  0xb4   :  { %v1105_v1 = vpack.c.bf16 %v899_v48, %v898_v47 }
  0xb5   :  { %3238 = vmatmul.mubr.msk.bf16.gmra.mrb[84].mxu0 %vm1185_vm1, %v1099_v20  ;;  %v381_v20 = vmul.f32 %v4068_v51, %v118_v3  ;;  %v1168_v42 = vpack.c.bf16 %v1025_v27, %v1024_v26  ;;  %v1169_v11 = vpack.c.bf16 %v1027_v58, %v1026_v57  ;;  %v254_v26 = vld [vmem:[%s5908_s0 + $0x760] sm:$0xff]  ;;  %v255_v27 = vld [vmem:[%s5908_s0 + $0x768] sm:$0xff] }
  0xb6   :  { %3241 = vmatprep.mubr.msk.bf16.mxu0 %vm1185_vm1, %v1100_v23  ;;  %v1023_v23 = vmax.f32 %v767_v2, 0.0  ;;  %v4618_v2 = vld [vmem:[%s5910_s2] ss:$0 sm:$0xff] }
  0xb7   :  { %3366 = vmatmul.mubr.msk.bf16.gmra.mrb[84].mxu1 %vm1185_vm1, %v1163_v28  ;;  %v509_v28 = vmul.f32 %v4068_v51, %v246_v16  ;;  %v644_v35 = vadd.f32 %v4037_v34, %v381_v20  ;;  %v646_v3 = vadd.f32 %v4618_v2, %v383_v49  ;;  %v647_v6 = vadd.f32 %v4618_v2, %v384_v50  ;;  %v253_v20 = vld [vmem:[%s5908_s0 + $0x758] sm:$0xff]  ;;  %v130_v50 = vld [vmem:[%s5908_s0 + $0x380] sm:$0xff] }
  0xb8   :  { %3369 = vmatprep.mubr.msk.bf16.mxu1 %vm1185_vm1, %v1164_v33  ;;  %v1104_v33 = vpack.c.bf16 %v897_v19, %v896_v18  ;;  %v1167_v39 = vpack.c.bf16 %v1023_v23, %v1022_v22  ;;  %v648_v8 = vadd.f32 %v4618_v2, %v385_v55  ;;  %v775_v13 = vadd.f32 %v4618_v2, %v512_v60  ;;  %v252_v19 = vld [vmem:[%s5908_s0 + $0x750] sm:$0xff]  ;;  %v4650_v23 = vld [vmem:[%s5909_s1] ss:$0 sm:$0xff] }
  0xb9   :  { %v772_v43 = vadd.f32 %v4037_v34, %v509_v28  ;;  %v250_v34 = vld [vmem:[%s5908_s0 + $0x740] sm:$0xff]  ;;  %v900_v53 = vmax.f32 %v644_v35, 0.0  ;;  %v902_v21 = vmax.f32 %v646_v3, 0.0  ;;  %v903_v22 = vmax.f32 %v647_v6, 0.0  ;;  %v256_v55 = vld [vmem:[%s5908_s0 + $0x770] sm:$0xff] }
  0xba   :  { %v513_v63 = vmul.f32 %v4068_v51, %v250_v34  ;;  %v387_v24 = vmul.f32 %v4650_v23, %v124_v10  ;;  %v904_v28 = vmax.f32 %v648_v8, 0.0  ;;  %v390_v31 = vmul.f32 %v4650_v23, %v127_v15  ;;  %v131_v34 = vld [vmem:[%s5908_s0 + $0x388] sm:$0xff] }
  0xbb   :  { %v1028_v61 = vmax.f32 %v772_v43, 0.0  ;;  %v515_v35 = vmul.f32 %v4650_v23, %v252_v19  ;;  %v516_v36 = vmul.f32 %v4650_v23, %v253_v20  ;;  %v518_v4 = vmul.f32 %v4650_v23, %v255_v27  ;;  %v132_v19 = vld [vmem:[%s5908_s0 + $0x390] sm:$0xff]  ;;  %v133_v20 = vld [vmem:[%s5908_s0 + $0x398] sm:$0xff] }
  0xbc   :  { %v776_v17 = vadd.f32 %v4618_v2, %v513_v63  ;;  %v1107_v5 = vpack.c.bf16 %v903_v22, %v902_v21  ;;  %v650_v40 = vadd.f32 %v4618_v2, %v387_v24  ;;  %v653_v44 = vadd.f32 %v4618_v2, %v390_v31  ;;  %v261_v31 = vld [vmem:[%s5908_s0 + $0x798] sm:$0xff] }
  0xbd   :  { %3242 = vmatmul.mubr.msk.bf16.gmra.mrb[88].mxu0 %vm1185_vm1, %v1101_v56  ;;  %v386_v56 = vmul.f32 %v4068_v51, %v123_v41  ;;  %v1170_v16 = vpack.c.bf16 %v1029_v62, %v1028_v61  ;;  %v778_v48 = vadd.f32 %v4618_v2, %v515_v35  ;;  %v779_v49 = vadd.f32 %v4618_v2, %v516_v36  ;;  %v258_v61 = vld [vmem:[%s5908_s0 + $0x780] sm:$0xff]  ;;  %v259_v62 = vld [vmem:[%s5908_s0 + $0x788] sm:$0xff] }
  0xbe   :  { %3245 = vmatprep.mubr.msk.bf16.mxu0 %vm1185_vm1, %v1102_v59  ;;  %v511_v59 = vmul.f32 %v4068_v51, %v248_v45  ;;  %v1032_v37 = vmax.f32 %v776_v17, 0.0  ;;  %v128_v45 = vld [vmem:[%s5908_s0 + $0x370] sm:$0xff]  ;;  %v906_v57 = vmax.f32 %v650_v40, 0.0  ;;  %v392_v60 = vmul.f32 %v4650_v23, %v129_v46 }
  0xbf   :  { %3370 = vmatmul.mubr.msk.bf16.gmra.mrb[88].mxu1 %vm1185_vm1, %v1165_v0  ;;  %v514_v0 = vmul.f32 %v4068_v51, %v251_v52  ;;  %v649_v9 = vadd.f32 %v4618_v2, %v386_v56  ;;  %v125_v51 = vld [vmem:[%s5908_s0 + $0x358] sm:$0xff]  ;;  %v394_v3 = vmul.f32 %v4650_v23, %v131_v34  ;;  %v1034_v6 = vmax.f32 %v778_v48, 0.0 }
  0xc0   :  { %3373 = vmatprep.mubr.msk.bf16.mxu1 %vm1185_vm1, %v1166_v7  ;;  %v1106_v7 = vpack.c.bf16 %v901_v54, %v900_v53  ;;  %v774_v12 = vadd.f32 %v4618_v2, %v511_v59  ;;  %v388_v25 = vmul.f32 %v4650_v23, %v125_v51  ;;  %v781_v54 = vadd.f32 %v4618_v2, %v518_v4  ;;  %v257_v56 = vld [vmem:[%s5908_s0 + $0x778] sm:$0xff] }
  0xc1   :  { %v777_v18 = vadd.f32 %v4618_v2, %v514_v0  ;;  %v905_v29 = vmax.f32 %v649_v9, 0.0  ;;  %v391_v59 = vmul.f32 %v4650_v23, %v128_v45  ;;  %v909_v0 = vmax.f32 %v653_v44, 0.0 }
  0xc2   :  { %v1030_v32 = vmax.f32 %v774_v12, 0.0  ;;  %v651_v41 = vadd.f32 %v4618_v2, %v388_v25  ;;  %v519_v8 = vmul.f32 %v4650_v23, %v256_v55  ;;  %v520_v9 = vmul.f32 %v4650_v23, %v257_v56  ;;  %v134_v25 = vld [vmem:[%s5908_s0 + $0x3a0] sm:$0xff] }
  0xc3   :  { %v1033_v38 = vmax.f32 %v777_v18, 0.0  ;;  %v1037_v51 = vmax.f32 %v781_v54, 0.0  ;;  %v522_v12 = vmul.f32 %v4650_v23, %v259_v62  ;;  %v655_v15 = vadd.f32 %v4618_v2, %v392_v60  ;;  %v137_v60 = vld [vmem:[%s5908_s0 + $0x3b8] sm:$0xff] }
  0xc4   :  { %v907_v58 = vmax.f32 %v651_v41, 0.0  ;;  %v657_v18 = vadd.f32 %v4618_v2, %v394_v3  ;;  %v782_v22 = vadd.f32 %v4618_v2, %v519_v8  ;;  %v783_v24 = vadd.f32 %v4618_v2, %v520_v9  ;;  %v138_v3 = vld [vmem:[%s5908_s0 + $0x3c0] sm:$0xff] }
  0xc5   :  { %3246 = vmatmul.mubr.msk.bf16.gmra.mrb[92].mxu0 %vm1185_vm1, %v1103_v30  ;;  %v389_v30 = vmul.f32 %v4650_v23, %v126_v14  ;;  %v1172_v52 = vpack.c.bf16 %v1033_v38, %v1032_v37  ;;  %v654_v14 = vadd.f32 %v4618_v2, %v391_v59  ;;  %v395_v35 = vmul.f32 %v4650_v23, %v132_v19  ;;  %v262_v37 = vld [vmem:[%s5908_s0 + $0x7a0] sm:$0xff]  ;;  %v263_v38 = vld [vmem:[%s5908_s0 + $0x7a8] sm:$0xff]  ;;  %v136_v59 = vld [vmem:[%s5908_s0 + $0x3b0] sm:$0xff] }
  0xc6   :  { %3249 = vmatprep.mubr.msk.bf16.mxu0 %vm1185_vm1, %v1104_v33  ;;  %v1031_v33 = vmax.f32 %v775_v13, 0.0  ;;  %v1109_v13 = vpack.c.bf16 %v907_v58, %v906_v57  ;;  %v396_v36 = vmul.f32 %v4650_v23, %v133_v20  ;;  %v913_v4 = vmax.f32 %v657_v18, 0.0  ;;  %v267_v18 = vld [vmem:[%s5908_s0 + $0x7c8] sm:$0xff] }
  0xc7   :  { %3374 = vmatmul.mubr.msk.bf16.gmra.mrb[92].mxu1 %vm1185_vm1, %v1167_v39  ;;  %v517_v39 = vmul.f32 %v4650_v23, %v254_v26  ;;  %v652_v43 = vadd.f32 %v4618_v2, %v389_v30  ;;  %v135_v26 = vld [vmem:[%s5908_s0 + $0x3a8] sm:$0xff]  ;;  %v260_v30 = vld [vmem:[%s5908_s0 + $0x790] sm:$0xff]  ;;  %v1038_v41 = vmax.f32 %v782_v22, 0.0  ;;  %v524_v44 = vmul.f32 %v4650_v23, %v261_v31 }
  0xc8   :  { %3377 = vmatprep.mubr.msk.bf16.mxu1 %vm1185_vm1, %v1168_v42  ;;  %v1108_v42 = vpack.c.bf16 %v905_v29, %v904_v28  ;;  %v1171_v47 = vpack.c.bf16 %v1031_v33, %v1030_v32  ;;  %v785_v29 = vadd.f32 %v4618_v2, %v522_v12  ;;  %v910_v32 = vmax.f32 %v654_v14, 0.0 }
  0xc9   :  { %v780_v53 = vadd.f32 %v4618_v2, %v517_v39  ;;  %v908_v63 = vmax.f32 %v652_v43, 0.0  ;;  %v911_v33 = vmax.f32 %v655_v15, 0.0  ;;  %v398_v40 = vmul.f32 %v4650_v23, %v135_v26 }
  0xca   :  { %v523_v43 = vmul.f32 %v4650_v23, %v260_v30  ;;  %v525_v48 = vmul.f32 %v4650_v23, %v262_v37  ;;  %v399_v15 = vmul.f32 %v4650_v23, %v136_v59 }
  0xcb   :  { %v1036_v10 = vmax.f32 %v780_v53, 0.0  ;;  %v1111_v34 = vpack.c.bf16 %v911_v33, %v910_v32  ;;  %v659_v53 = vadd.f32 %v4618_v2, %v396_v36  ;;  %v661_v58 = vadd.f32 %v4618_v2, %v398_v40 }
  0xcc   :  { %v788_v9 = vadd.f32 %v4618_v2, %v525_v48  ;;  %v530_v32 = vmul.f32 %v4650_v23, %v267_v18  ;;  %v662_v36 = vadd.f32 %v4618_v2, %v399_v15  ;;  %v142_v48 = vld [vmem:[%s5908_s0 + $0x3e0] sm:$0xff] }
  0xcd   :  { %3250 = vmatmul.mubr.msk.bf16.gmra.mrb[96].mxu0 %vm1185_vm1, %v1105_v1  ;;  %v393_v1 = vmul.f32 %v4650_v23, %v130_v50  ;;  %v1174_v27 = vpack.c.bf16 %v1037_v51, %v1036_v10  ;;  %v264_v51 = vld [vmem:[%s5908_s0 + $0x7b0] sm:$0xff]  ;;  %v915_v14 = vmax.f32 %v659_v53, 0.0  ;;  %v917_v20 = vmax.f32 %v661_v58, 0.0 }
  0xce   :  { %3253 = vmatprep.mubr.msk.bf16.mxu0 %vm1185_vm1, %v1106_v7  ;;  %v1035_v7 = vmax.f32 %v779_v49, 0.0  ;;  %v526_v49 = vmul.f32 %v4650_v23, %v263_v38  ;;  %v527_v26 = vmul.f32 %v4650_v23, %v264_v51  ;;  %v793_v53 = vadd.f32 %v4618_v2, %v530_v32 }
  0xcf   :  { %3378 = vmatmul.mubr.msk.bf16.gmra.mrb[96].mxu1 %vm1185_vm1, %v1169_v11  ;;  %v521_v11 = vmul.f32 %v4650_v23, %v258_v61  ;;  %v656_v17 = vadd.f32 %v4618_v2, %v393_v1  ;;  %v787_v1 = vadd.f32 %v4618_v2, %v524_v44 }
  0xd0   :  { %3381 = vmatprep.mubr.msk.bf16.mxu1 %vm1185_vm1, %v1170_v16  ;;  %v1110_v16 = vpack.c.bf16 %v909_v0, %v908_v63  ;;  %v1173_v21 = vpack.c.bf16 %v1035_v7, %v1034_v6  ;;  %v786_v0 = vadd.f32 %v4618_v2, %v523_v43  ;;  %v139_v6 = vld [vmem:[%s5908_s0 + $0x3c8] sm:$0xff]  ;;  %v789_v10 = vadd.f32 %v4618_v2, %v526_v49 }
  0xd1   :  { %v784_v28 = vadd.f32 %v4618_v2, %v521_v11  ;;  %v912_v39 = vmax.f32 %v656_v17, 0.0  ;;  %v265_v11 = vld [vmem:[%s5908_s0 + $0x7b8] sm:$0xff]  ;;  %v266_v17 = vld [vmem:[%s5908_s0 + $0x7c0] sm:$0xff]  ;;  %v402_v22 = vmul.f32 %v4650_v23, %v139_v6  ;;  %v143_v49 = vld [vmem:[%s5908_s0 + $0x3e8] sm:$0xff] }
  0xd2   :  { %v1045_v30 = vmax.f32 %v789_v10, 0.0  ;;  %v529_v31 = vmul.f32 %v4650_v23, %v266_v17 }
  0xd3   :  { %v1040_v46 = vmax.f32 %v784_v28, 0.0  ;;  %v1112_v56 = vpack.c.bf16 %v913_v4, %v912_v39  ;;  %v665_v40 = vadd.f32 %v4618_v2, %v402_v22 }
  0xd5   :  { %3254 = vmatmul.mubr.msk.bf16.gmra.mrb[100].mxu0 %vm1185_vm1, %v1107_v5  ;;  %v397_v5 = vmul.f32 %v4650_v23, %v134_v25  ;;  %v1043_v25 = vmax.f32 %v787_v1, 0.0  ;;  %v405_v1 = vmul.f32 %v4650_v23, %v142_v48 }
  0xd6   :  { %3257 = vmatprep.mubr.msk.bf16.mxu0 %vm1185_vm1, %v1108_v42  ;;  %v1039_v42 = vmax.f32 %v783_v24, 0.0  ;;  %v1042_v24 = vmax.f32 %v786_v0, 0.0  ;;  %v921_v0 = vmax.f32 %v665_v40, 0.0 }
  0xd7   :  { %3382 = vmatmul.mubr.msk.bf16.gmra.mrb[100].mxu1 %vm1185_vm1, %v1171_v47  ;;  %v1041_v47 = vmax.f32 %v785_v29, 0.0  ;;  %v660_v57 = vadd.f32 %v4618_v2, %v397_v5  ;;  %v1044_v29 = vmax.f32 %v788_v9, 0.0 }
  0xd8   :  { %3385 = vmatprep.mubr.msk.bf16.mxu1 %vm1185_vm1, %v1172_v52  ;;  %v658_v52 = vadd.f32 %v4618_v2, %v395_v35  ;;  %v1175_v63 = vpack.c.bf16 %v1039_v42, %v1038_v41  ;;  %v140_v41 = vld [vmem:[%s5908_s0 + $0x3d0] sm:$0xff]  ;;  %v141_v42 = vld [vmem:[%s5908_s0 + $0x3d8] sm:$0xff] }
  0xd9   :  { %v1176_v8 = vpack.c.bf16 %v1041_v47, %v1040_v46  ;;  %v916_v19 = vmax.f32 %v660_v57, 0.0  ;;  %v790_v46 = vadd.f32 %v4618_v2, %v527_v26  ;;  %v918_v57 = vmax.f32 %v662_v36, 0.0  ;;  %v272_v36 = vld [vmem:[%s5908_s0 + $0x7f0] sm:$0xff] }
  0xda   :  { %v403_v59 = vmul.f32 %v4650_v23, %v140_v41 }
  0xdb   :  { %v1114_v4 = vpack.c.bf16 %v917_v20, %v916_v19  ;;  %v1046_v6 = vmax.f32 %v790_v46, 0.0 }
  0xdd   :  { %3258 = vmatmul.mubr.msk.bf16.gmra.mrb[104].mxu0 %vm1185_vm1, %v1109_v13  ;;  %v914_v13 = vmax.f32 %v658_v52, 0.0  ;;  %v792_v52 = vadd.f32 %v4618_v2, %v529_v31 }
  0xde   :  { %3261 = vmatprep.mubr.msk.bf16.mxu0 %vm1185_vm1, %v1110_v16  ;;  %v400_v16 = vmul.f32 %v4650_v23, %v137_v60  ;;  %v404_v60 = vmul.f32 %v4650_v23, %v141_v42 }
  0xdf   :  { %3386 = vmatmul.mubr.msk.bf16.gmra.mrb[104].mxu1 %vm1185_vm1, %v1173_v21  ;;  %v401_v21 = vmul.f32 %v4650_v23, %v138_v3  ;;  %v1113_v35 = vpack.c.bf16 %v915_v14, %v914_v13  ;;  %v406_v3 = vmul.f32 %v4650_v23, %v143_v49  ;;  %v1048_v51 = vmax.f32 %v792_v52, 0.0 }
  0xe0   :  { %v3155_v45 = vpop.f32.mrb[0].mxu0  ;;  %3389 = vmatprep.mubr.msk.bf16.mxu1 %vm1185_vm1, %v1174_v27  ;;  %v528_v27 = vmul.f32 %v4650_v23, %v265_v11  ;;  %v663_v37 = vadd.f32 %v4618_v2, %v400_v16  ;;  %v1049_v11 = vmax.f32 %v793_v53, 0.0  ;;  %v666_v16 = vadd.f32 %v4618_v2, %v403_v59 }
  0xe1   :  { %2634 = vst.msk [vmem:[%s5911_s4 + $0x10] sm:$0xff] %vm2631_vm2, %v3155_v45  ;;  %v1608_v50 = vpop.f32.mrb[1].mxu0  ;;  %v664_v5 = vadd.f32 %v4618_v2, %v401_v21  ;;  %v1177_v45 = vpack.c.bf16 %v1043_v25, %v1042_v24  ;;  %v667_v17 = vadd.f32 %v4618_v2, %v404_v60  ;;  %v668_v21 = vadd.f32 %v4618_v2, %v405_v1  ;;  %v144_v24 = vld [vmem:[%s5908_s0 + $0x3f0] sm:$0xff]  ;;  %v145_v25 = vld [vmem:[%s5908_s0 + $0x3f8] sm:$0xff] }
  0xe2   :  { %v3283_v54 = vpop.f32.mrb[0].mxu1  ;;  %2632 = vst.msk [vmem:[%s5911_s4] sm:$0xff] %vm2631_vm2, %v1608_v50  ;;  %v3156_v55 = vpop.f32.mrb[2].mxu0  ;;  %v791_v47 = vadd.f32 %v4618_v2, %v528_v27  ;;  %v919_v58 = vmax.f32 %v663_v37, 0.0  ;;  %v669_v22 = vadd.f32 %v4618_v2, %v406_v3  ;;  %v1180_v32 = vpack.c.bf16 %v1049_v11, %v1048_v51  ;;  %v273_v37 = vld [vmem:[%s5908_s0 + $0x7f8] sm:$0xff] }
  0xe3   :  { %2762 = vst.msk [vmem:[%s5911_s4 + $0x410] sm:$0xff] %vm2631_vm2, %v3283_v54  ;;  %v2120_v61 = vpop.f32.mrb[1].mxu1  ;;  %2635 = vst.msk [vmem:[%s5911_s4 + $0x18] sm:$0xff] %vm2631_vm2, %v3156_v55  ;;  %v1611_v62 = vpop.f32.mrb[3].mxu0  ;;  %v268_v54 = vld [vmem:[%s5908_s0 + $0x7d0] sm:$0xff]  ;;  %v269_v55 = vld [vmem:[%s5908_s0 + $0x7d8] sm:$0xff]  ;;  %v408_v40 = vmul.f32 %v4650_v23, %v145_v25  ;;  %v536_v46 = vmul.f32 %v4650_v23, %v273_v37 }
  0xe4   :  { %2760 = vst.msk [vmem:[%s5911_s4 + $0x400] sm:$0xff] %vm2631_vm2, %v2120_v61  ;;  %v3284_v7 = vpop.f32.mrb[2].mxu1  ;;  %2633 = vst.msk [vmem:[%s5911_s4 + $0x8] sm:$0xff] %vm2631_vm2, %v1611_v62  ;;  %v270_v61 = vld [vmem:[%s5908_s0 + $0x7e0] sm:$0xff]  ;;  %v271_v62 = vld [vmem:[%s5908_s0 + $0x7e8] sm:$0xff]  ;;  %v532_v9 = vmul.f32 %v4650_v23, %v269_v55  ;;  %v1115_v15 = vpack.c.bf16 %v919_v58, %v918_v57  ;;  %v924_v41 = vmax.f32 %v668_v21, 0.0 }
  0xe5   :  { %2763 = vst.msk [vmem:[%s5911_s4 + $0x418] sm:$0xff] %vm2631_vm2, %v3284_v7  ;;  %v2123_v12 = vpop.f32.mrb[3].mxu1  ;;  %3262 = vmatmul.mubr.msk.bf16.gmra.mrb[108].mxu0 %vm1185_vm1, %v1111_v34  ;;  %v1178_v34 = vpack.c.bf16 %v1045_v30, %v1044_v29  ;;  %v1047_v7 = vmax.f32 %v791_v47, 0.0  ;;  %v534_v13 = vmul.f32 %v4650_v23, %v271_v62  ;;  %v925_v42 = vmax.f32 %v669_v22, 0.0 }
  0xe6   :  { %2761 = vst.msk [vmem:[%s5911_s4 + $0x408] sm:$0xff] %vm2631_vm2, %v2123_v12  ;;  %3265 = vmatprep.mubr.msk.bf16.mxu0 %vm1185_vm1, %v1112_v56  ;;  %v533_v12 = vmul.f32 %v4650_v23, %v270_v61  ;;  %v795_v30 = vadd.f32 %v4618_v2, %v532_v9  ;;  %v671_v53 = vadd.f32 %v4618_v2, %v408_v40 }
  0xe7   :  { %3390 = vmatmul.mubr.msk.bf16.gmra.mrb[108].mxu1 %vm1185_vm1, %v1175_v63  ;;  %v920_v63 = vmax.f32 %v664_v5, 0.0  ;;  %v407_v5 = vmul.f32 %v4650_v23, %v144_v24  ;;  %v1118_v55 = vpack.c.bf16 %v925_v42, %v924_v41  ;;  %v799_v60 = vadd.f32 %v4618_v2, %v536_v46 }
  0xe8   :  { %v3159_v28 = vpop.f32.mrb[4].mxu0  ;;  %3393 = vmatprep.mubr.msk.bf16.mxu1 %vm1185_vm1, %v1176_v8  ;;  %v531_v8 = vmul.f32 %v4650_v23, %v268_v54 }
  0xe9   :  { %2638 = vst.msk [vmem:[%s5911_s4 + $0x30] sm:$0xff] %vm2631_vm2, %v3159_v28  ;;  %v1624_v33 = vpop.f32.mrb[5].mxu0  ;;  %v1116_v20 = vpack.c.bf16 %v921_v0, %v920_v63  ;;  %v1179_v28 = vpack.c.bf16 %v1047_v7, %v1046_v6  ;;  %v670_v52 = vadd.f32 %v4618_v2, %v407_v5  ;;  %v927_v0 = vmax.f32 %v671_v53, 0.0 }
  0xea   :  { %v3287_v38 = vpop.f32.mrb[4].mxu1  ;;  %2636 = vst.msk [vmem:[%s5911_s4 + $0x20] sm:$0xff] %vm2631_vm2, %v1624_v33  ;;  %v3160_v39 = vpop.f32.mrb[6].mxu0  ;;  %v794_v29 = vadd.f32 %v4618_v2, %v531_v8  ;;  %v796_v33 = vadd.f32 %v4618_v2, %v533_v12  ;;  %v1055_v3 = vmax.f32 %v799_v60, 0.0 }
  0xeb   :  { %2766 = vst.msk [vmem:[%s5911_s4 + $0x430] sm:$0xff] %vm2631_vm2, %v3287_v38  ;;  %v2136_v43 = vpop.f32.mrb[5].mxu1  ;;  %2639 = vst.msk [vmem:[%s5911_s4 + $0x38] sm:$0xff] %vm2631_vm2, %v3160_v39  ;;  %v1627_v44 = vpop.f32.mrb[7].mxu0  ;;  %v922_v39 = vmax.f32 %v666_v16, 0.0 }
  0xec   :  { %2764 = vst.msk [vmem:[%s5911_s4 + $0x420] sm:$0xff] %vm2631_vm2, %v2136_v43  ;;  %v3288_v50 = vpop.f32.mrb[6].mxu1  ;;  %2637 = vst.msk [vmem:[%s5911_s4 + $0x28] sm:$0xff] %vm2631_vm2, %v1627_v44  ;;  %v1050_v43 = vmax.f32 %v794_v29, 0.0  ;;  %v1051_v44 = vmax.f32 %v795_v30, 0.0  ;;  %v1052_v48 = vmax.f32 %v796_v33, 0.0 }
  0xed   :  { %2767 = vst.msk [vmem:[%s5911_s4 + $0x438] sm:$0xff] %vm2631_vm2, %v3288_v50  ;;  %v2139_v56 = vpop.f32.mrb[7].mxu1  ;;  %3266 = vmatmul.mubr.msk.bf16.gmra.mrb[112].mxu0 %vm1185_vm1, %v1113_v35  ;;  %v797_v35 = vadd.f32 %v4618_v2, %v534_v13 }
  0xee   :  { %2765 = vst.msk [vmem:[%s5911_s4 + $0x428] sm:$0xff] %vm2631_vm2, %v2139_v56  ;;  %3269 = vmatprep.mubr.msk.bf16.mxu0 %vm1185_vm1, %v1114_v4  ;;  %v923_v4 = vmax.f32 %v667_v17, 0.0  ;;  %v1181_v58 = vpack.c.bf16 %v1051_v44, %v1050_v43 }
  0xef   :  { %3394 = vmatmul.mubr.msk.bf16.gmra.mrb[112].mxu1 %vm1185_vm1, %v1177_v45  ;;  %v535_v45 = vmul.f32 %v4650_v23, %v272_v36  ;;  %v1053_v49 = vmax.f32 %v797_v35, 0.0 }
  0xf0   :  { %v3163_v10 = vpop.f32.mrb[8].mxu0  ;;  %3397 = vmatprep.mubr.msk.bf16.mxu1 %vm1185_vm1, %v1178_v34  ;;  %v1117_v34 = vpack.c.bf16 %v923_v4, %v922_v39 }
  0xf1   :  { %2642 = vst.msk [vmem:[%s5911_s4 + $0x50] sm:$0xff] %vm2631_vm2, %v3163_v10  ;;  %v1640_v14 = vpop.f32.mrb[9].mxu0  ;;  %v798_v59 = vadd.f32 %v4618_v2, %v535_v45  ;;  %v1182_v62 = vpack.c.bf16 %v1053_v49, %v1052_v48  ;;  %v926_v2 = vmax.f32 %v670_v52, 0.0 }
  0xf2   :  { %v3291_v18 = vpop.f32.mrb[8].mxu1  ;;  %2640 = vst.msk [vmem:[%s5911_s4 + $0x40] sm:$0xff] %vm2631_vm2, %v1640_v14  ;;  %v3164_v19 = vpop.f32.mrb[10].mxu0 }
  0xf3   :  { %2770 = vst.msk [vmem:[%s5911_s4 + $0x450] sm:$0xff] %vm2631_vm2, %v3291_v18  ;;  %v2152_v26 = vpop.f32.mrb[9].mxu1  ;;  %2643 = vst.msk [vmem:[%s5911_s4 + $0x58] sm:$0xff] %vm2631_vm2, %v3164_v19  ;;  %v1643_v27 = vpop.f32.mrb[11].mxu0  ;;  %v1054_v1 = vmax.f32 %v798_v59, 0.0  ;;  %v1119_v8 = vpack.c.bf16 %v927_v0, %v926_v2 }
  0xf4   :  { %2768 = vst.msk [vmem:[%s5911_s4 + $0x440] sm:$0xff] %vm2631_vm2, %v2152_v26  ;;  %v3292_v31 = vpop.f32.mrb[10].mxu1  ;;  %2641 = vst.msk [vmem:[%s5911_s4 + $0x48] sm:$0xff] %vm2631_vm2, %v1643_v27 }
  0xf5   :  { %2771 = vst.msk [vmem:[%s5911_s4 + $0x458] sm:$0xff] %vm2631_vm2, %v3292_v31  ;;  %v2155_v38 = vpop.f32.mrb[11].mxu1  ;;  %3270 = vmatmul.mubr.msk.bf16.gmra.mrb[116].mxu0 %vm1185_vm1, %v1115_v15  ;;  %v1183_v12 = vpack.c.bf16 %v1055_v3, %v1054_v1 }
  0xf6   :  { %2769 = vst.msk [vmem:[%s5911_s4 + $0x448] sm:$0xff] %vm2631_vm2, %v2155_v38  ;;  %3273 = vmatprep.mubr.msk.bf16.mxu0 %vm1185_vm1, %v1116_v20 }
  0xf7   :  { %3398 = vmatmul.mubr.msk.bf16.gmra.mrb[116].mxu1 %vm1185_vm1, %v1179_v28 }
  0xf8   :  { %v3167_v47 = vpop.f32.mrb[12].mxu0  ;;  %3401 = vmatprep.mubr.msk.bf16.mxu1 %vm1185_vm1, %v1180_v32 }
  0xf9   :  { %2646 = vst.msk [vmem:[%s5911_s4 + $0x70] sm:$0xff] %vm2631_vm2, %v3167_v47  ;;  %v1656_v50 = vpop.f32.mrb[13].mxu0 }
  0xfa   :  { %v3295_v54 = vpop.f32.mrb[12].mxu1  ;;  %2644 = vst.msk [vmem:[%s5911_s4 + $0x60] sm:$0xff] %vm2631_vm2, %v1656_v50  ;;  %v3168_v23 = vpop.f32.mrb[14].mxu0 }
  0xfb   :  { %2774 = vst.msk [vmem:[%s5911_s4 + $0x470] sm:$0xff] %vm2631_vm2, %v3295_v54  ;;  %v2168_v56 = vpop.f32.mrb[13].mxu1  ;;  %2647 = vst.msk [vmem:[%s5911_s4 + $0x78] sm:$0xff] %vm2631_vm2, %v3168_v23  ;;  %v1659_v57 = vpop.f32.mrb[15].mxu0 }
  0xfc   :  { %2772 = vst.msk [vmem:[%s5911_s4 + $0x460] sm:$0xff] %vm2631_vm2, %v2168_v56  ;;  %v3296_v61 = vpop.f32.mrb[14].mxu1  ;;  %2645 = vst.msk [vmem:[%s5911_s4 + $0x68] sm:$0xff] %vm2631_vm2, %v1659_v57 }
  0xfd   :  { %2775 = vst.msk [vmem:[%s5911_s4 + $0x478] sm:$0xff] %vm2631_vm2, %v3296_v61  ;;  %v2171_v63 = vpop.f32.mrb[15].mxu1  ;;  %3274 = vmatmul.mubr.msk.bf16.gmra.mrb[120].mxu0 %vm1185_vm1, %v1117_v34 }
  0xfe   :  { %2773 = vst.msk [vmem:[%s5911_s4 + $0x468] sm:$0xff] %vm2631_vm2, %v2171_v63  ;;  %3277 = vmatprep.mubr.msk.bf16.mxu0 %vm1185_vm1, %v1118_v55 }
  0xff   :  { %3402 = vmatmul.mubr.msk.bf16.gmra.mrb[120].mxu1 %vm1185_vm1, %v1181_v58 }
 0x100   :  { %v3171_v6 = vpop.f32.mrb[16].mxu0  ;;  %3405 = vmatprep.mubr.msk.bf16.mxu1 %vm1185_vm1, %v1182_v62 }
 0x101   :  { %2650 = vst.msk [vmem:[%s5911_s4 + $0x90] sm:$0xff] %vm2631_vm2, %v3171_v6  ;;  %v1672_v7 = vpop.f32.mrb[17].mxu0 }
 0x102   :  { %v3299_v9 = vpop.f32.mrb[16].mxu1  ;;  %2648 = vst.msk [vmem:[%s5911_s4 + $0x80] sm:$0xff] %vm2631_vm2, %v1672_v7  ;;  %v3172_v10 = vpop.f32.mrb[18].mxu0 }
 0x103   :  { %2778 = vst.msk [vmem:[%s5911_s4 + $0x490] sm:$0xff] %vm2631_vm2, %v3299_v9  ;;  %v2184_v51 = vpop.f32.mrb[17].mxu1  ;;  %2651 = vst.msk [vmem:[%s5911_s4 + $0x98] sm:$0xff] %vm2631_vm2, %v3172_v10  ;;  %v1675_v11 = vpop.f32.mrb[19].mxu0 }
 0x104   :  { %2776 = vst.msk [vmem:[%s5911_s4 + $0x480] sm:$0xff] %vm2631_vm2, %v2184_v51  ;;  %v3300_v13 = vpop.f32.mrb[18].mxu1  ;;  %2649 = vst.msk [vmem:[%s5911_s4 + $0x88] sm:$0xff] %vm2631_vm2, %v1675_v11 }
 0x105   :  { %2779 = vst.msk [vmem:[%s5911_s4 + $0x498] sm:$0xff] %vm2631_vm2, %v3300_v13  ;;  %v2187_v14 = vpop.f32.mrb[19].mxu1  ;;  %3278 = vmatmul.mubr.msk.bf16.gmra.mrb[124].mxu0 %vm1185_vm1, %v1119_v8 }
 0x106   :  { %2777 = vst.msk [vmem:[%s5911_s4 + $0x488] sm:$0xff] %vm2631_vm2, %v2187_v14 }
 0x107   :  { %3406 = vmatmul.mubr.msk.bf16.gmra.mrb[124].mxu1 %vm1185_vm1, %v1183_v12 }
 0x108   :  { %v3175_v15 = vpop.f32.mrb[20].mxu0 }
 0x109   :  { %2654 = vst.msk [vmem:[%s5911_s4 + $0xb0] sm:$0xff] %vm2631_vm2, %v3175_v15  ;;  %v1688_v16 = vpop.f32.mrb[21].mxu0 }
 0x10a   :  { %v3303_v17 = vpop.f32.mrb[20].mxu1  ;;  %2652 = vst.msk [vmem:[%s5911_s4 + $0xa0] sm:$0xff] %vm2631_vm2, %v1688_v16  ;;  %v3176_v18 = vpop.f32.mrb[22].mxu0 }
 0x10b   :  { %2782 = vst.msk [vmem:[%s5911_s4 + $0x4b0] sm:$0xff] %vm2631_vm2, %v3303_v17  ;;  %v2200_v19 = vpop.f32.mrb[21].mxu1  ;;  %2655 = vst.msk [vmem:[%s5911_s4 + $0xb8] sm:$0xff] %vm2631_vm2, %v3176_v18  ;;  %v1691_v20 = vpop.f32.mrb[23].mxu0 }
 0x10c   :  { %2780 = vst.msk [vmem:[%s5911_s4 + $0x4a0] sm:$0xff] %vm2631_vm2, %v2200_v19  ;;  %v3304_v21 = vpop.f32.mrb[22].mxu1  ;;  %2653 = vst.msk [vmem:[%s5911_s4 + $0xa8] sm:$0xff] %vm2631_vm2, %v1691_v20 }
 0x10d   :  { %2783 = vst.msk [vmem:[%s5911_s4 + $0x4b8] sm:$0xff] %vm2631_vm2, %v3304_v21  ;;  %v2203_v22 = vpop.f32.mrb[23].mxu1 }
 0x10e   :  { %2781 = vst.msk [vmem:[%s5911_s4 + $0x4a8] sm:$0xff] %vm2631_vm2, %v2203_v22 }
 0x110   :  { %v3179_v24 = vpop.f32.mrb[24].mxu0 }
 0x111   :  { %2658 = vst.msk [vmem:[%s5911_s4 + $0xd0] sm:$0xff] %vm2631_vm2, %v3179_v24  ;;  %v1704_v25 = vpop.f32.mrb[25].mxu0 }
 0x112   :  { %v3307_v26 = vpop.f32.mrb[24].mxu1  ;;  %2656 = vst.msk [vmem:[%s5911_s4 + $0xc0] sm:$0xff] %vm2631_vm2, %v1704_v25  ;;  %v3180_v27 = vpop.f32.mrb[26].mxu0 }
 0x113   :  { %2786 = vst.msk [vmem:[%s5911_s4 + $0x4d0] sm:$0xff] %vm2631_vm2, %v3307_v26  ;;  %v2216_v28 = vpop.f32.mrb[25].mxu1  ;;  %2659 = vst.msk [vmem:[%s5911_s4 + $0xd8] sm:$0xff] %vm2631_vm2, %v3180_v27  ;;  %v1707_v29 = vpop.f32.mrb[27].mxu0 }
 0x114   :  { %2784 = vst.msk [vmem:[%s5911_s4 + $0x4c0] sm:$0xff] %vm2631_vm2, %v2216_v28  ;;  %v3308_v30 = vpop.f32.mrb[26].mxu1  ;;  %2657 = vst.msk [vmem:[%s5911_s4 + $0xc8] sm:$0xff] %vm2631_vm2, %v1707_v29 }
 0x115   :  { %2787 = vst.msk [vmem:[%s5911_s4 + $0x4d8] sm:$0xff] %vm2631_vm2, %v3308_v30  ;;  %v2219_v31 = vpop.f32.mrb[27].mxu1 }
 0x116   :  { %2785 = vst.msk [vmem:[%s5911_s4 + $0x4c8] sm:$0xff] %vm2631_vm2, %v2219_v31 }
 0x118   :  { %v3183_v32 = vpop.f32.mrb[28].mxu0 }
 0x119   :  { %2662 = vst.msk [vmem:[%s5911_s4 + $0xf0] sm:$0xff] %vm2631_vm2, %v3183_v32  ;;  %v1720_v33 = vpop.f32.mrb[29].mxu0 }
 0x11a   :  { %v3311_v35 = vpop.f32.mrb[28].mxu1  ;;  %2660 = vst.msk [vmem:[%s5911_s4 + $0xe0] sm:$0xff] %vm2631_vm2, %v1720_v33  ;;  %v3184_v36 = vpop.f32.mrb[30].mxu0 }
 0x11b   :  { %2790 = vst.msk [vmem:[%s5911_s4 + $0x4f0] sm:$0xff] %vm2631_vm2, %v3311_v35  ;;  %v2232_v37 = vpop.f32.mrb[29].mxu1  ;;  %2663 = vst.msk [vmem:[%s5911_s4 + $0xf8] sm:$0xff] %vm2631_vm2, %v3184_v36  ;;  %v1723_v38 = vpop.f32.mrb[31].mxu0 }
 0x11c   :  { %2788 = vst.msk [vmem:[%s5911_s4 + $0x4e0] sm:$0xff] %vm2631_vm2, %v2232_v37  ;;  %v3312_v39 = vpop.f32.mrb[30].mxu1  ;;  %2661 = vst.msk [vmem:[%s5911_s4 + $0xe8] sm:$0xff] %vm2631_vm2, %v1723_v38 }
 0x11d   :  { %2791 = vst.msk [vmem:[%s5911_s4 + $0x4f8] sm:$0xff] %vm2631_vm2, %v3312_v39  ;;  %v2235_v4 = vpop.f32.mrb[31].mxu1 }
 0x11e   :  { %2789 = vst.msk [vmem:[%s5911_s4 + $0x4e8] sm:$0xff] %vm2631_vm2, %v2235_v4 }
 0x120   :  { %v3187_v5 = vpop.f32.mrb[32].mxu0 }
 0x121   :  { %2666 = vst.msk [vmem:[%s5911_s4 + $0x110] sm:$0xff] %vm2631_vm2, %v3187_v5  ;;  %v1736_v40 = vpop.f32.mrb[33].mxu0 }
 0x122   :  { %v3315_v41 = vpop.f32.mrb[32].mxu1  ;;  %2664 = vst.msk [vmem:[%s5911_s4 + $0x100] sm:$0xff] %vm2631_vm2, %v1736_v40  ;;  %v3188_v42 = vpop.f32.mrb[34].mxu0 }
 0x123   :  { %2794 = vst.msk [vmem:[%s5911_s4 + $0x510] sm:$0xff] %vm2631_vm2, %v3315_v41  ;;  %v2248_v43 = vpop.f32.mrb[33].mxu1  ;;  %2667 = vst.msk [vmem:[%s5911_s4 + $0x118] sm:$0xff] %vm2631_vm2, %v3188_v42  ;;  %v1739_v44 = vpop.f32.mrb[35].mxu0 }
 0x124   :  { %2792 = vst.msk [vmem:[%s5911_s4 + $0x500] sm:$0xff] %vm2631_vm2, %v2248_v43  ;;  %v3316_v45 = vpop.f32.mrb[34].mxu1  ;;  %2665 = vst.msk [vmem:[%s5911_s4 + $0x108] sm:$0xff] %vm2631_vm2, %v1739_v44 }
 0x125   :  { %2795 = vst.msk [vmem:[%s5911_s4 + $0x518] sm:$0xff] %vm2631_vm2, %v3316_v45  ;;  %v2251_v46 = vpop.f32.mrb[35].mxu1 }
 0x126   :  { %2793 = vst.msk [vmem:[%s5911_s4 + $0x508] sm:$0xff] %vm2631_vm2, %v2251_v46 }
 0x128   :  { %v3191_v47 = vpop.f32.mrb[36].mxu0 }
 0x129   :  { %2670 = vst.msk [vmem:[%s5911_s4 + $0x130] sm:$0xff] %vm2631_vm2, %v3191_v47  ;;  %v1752_v48 = vpop.f32.mrb[37].mxu0 }
 0x12a   :  { %v3319_v49 = vpop.f32.mrb[36].mxu1  ;;  %2668 = vst.msk [vmem:[%s5911_s4 + $0x120] sm:$0xff] %vm2631_vm2, %v1752_v48  ;;  %v3192_v50 = vpop.f32.mrb[38].mxu0 }
 0x12b   :  { %2798 = vst.msk [vmem:[%s5911_s4 + $0x530] sm:$0xff] %vm2631_vm2, %v3319_v49  ;;  %v2264_v34 = vpop.f32.mrb[37].mxu1  ;;  %2671 = vst.msk [vmem:[%s5911_s4 + $0x138] sm:$0xff] %vm2631_vm2, %v3192_v50  ;;  %v1755_v52 = vpop.f32.mrb[39].mxu0 }
 0x12c   :  { %2796 = vst.msk [vmem:[%s5911_s4 + $0x520] sm:$0xff] %vm2631_vm2, %v2264_v34  ;;  %v3320_v53 = vpop.f32.mrb[38].mxu1  ;;  %2669 = vst.msk [vmem:[%s5911_s4 + $0x128] sm:$0xff] %vm2631_vm2, %v1755_v52 }
 0x12d   :  { %2799 = vst.msk [vmem:[%s5911_s4 + $0x538] sm:$0xff] %vm2631_vm2, %v3320_v53  ;;  %v2267_v54 = vpop.f32.mrb[39].mxu1 }
 0x12e   :  { %2797 = vst.msk [vmem:[%s5911_s4 + $0x528] sm:$0xff] %vm2631_vm2, %v2267_v54 }
 0x130   :  { %v3195_v23 = vpop.f32.mrb[40].mxu0 }
 0x131   :  { %2674 = vst.msk [vmem:[%s5911_s4 + $0x150] sm:$0xff] %vm2631_vm2, %v3195_v23  ;;  %v1768_v55 = vpop.f32.mrb[41].mxu0 }
 0x132   :  { %v3323_v56 = vpop.f32.mrb[40].mxu1  ;;  %2672 = vst.msk [vmem:[%s5911_s4 + $0x140] sm:$0xff] %vm2631_vm2, %v1768_v55  ;;  %v3196_v57 = vpop.f32.mrb[42].mxu0 }
 0x133   :  { %2802 = vst.msk [vmem:[%s5911_s4 + $0x550] sm:$0xff] %vm2631_vm2, %v3323_v56  ;;  %v2280_v58 = vpop.f32.mrb[41].mxu1  ;;  %2675 = vst.msk [vmem:[%s5911_s4 + $0x158] sm:$0xff] %vm2631_vm2, %v3196_v57  ;;  %v1771_v59 = vpop.f32.mrb[43].mxu0 }
 0x134   :  { %2800 = vst.msk [vmem:[%s5911_s4 + $0x540] sm:$0xff] %vm2631_vm2, %v2280_v58  ;;  %v3324_v60 = vpop.f32.mrb[42].mxu1  ;;  %2673 = vst.msk [vmem:[%s5911_s4 + $0x148] sm:$0xff] %vm2631_vm2, %v1771_v59 }
 0x135   :  { %2803 = vst.msk [vmem:[%s5911_s4 + $0x558] sm:$0xff] %vm2631_vm2, %v3324_v60  ;;  %v2283_v61 = vpop.f32.mrb[43].mxu1 }
 0x136   :  { %2801 = vst.msk [vmem:[%s5911_s4 + $0x548] sm:$0xff] %vm2631_vm2, %v2283_v61 }
 0x138   :  { %v3199_v62 = vpop.f32.mrb[44].mxu0 }
 0x139   :  { %2678 = vst.msk [vmem:[%s5911_s4 + $0x170] sm:$0xff] %vm2631_vm2, %v3199_v62  ;;  %v1784_v63 = vpop.f32.mrb[45].mxu0 }
 0x13a   :  { %v3327_v2 = vpop.f32.mrb[44].mxu1  ;;  %2676 = vst.msk [vmem:[%s5911_s4 + $0x160] sm:$0xff] %vm2631_vm2, %v1784_v63  ;;  %v3200_v0 = vpop.f32.mrb[46].mxu0 }
 0x13b   :  { %2806 = vst.msk [vmem:[%s5911_s4 + $0x570] sm:$0xff] %vm2631_vm2, %v3327_v2  ;;  %v2296_v1 = vpop.f32.mrb[45].mxu1  ;;  %2679 = vst.msk [vmem:[%s5911_s4 + $0x178] sm:$0xff] %vm2631_vm2, %v3200_v0  ;;  %v1787_v3 = vpop.f32.mrb[47].mxu0 }
 0x13c   :  { %2804 = vst.msk [vmem:[%s5911_s4 + $0x560] sm:$0xff] %vm2631_vm2, %v2296_v1  ;;  %v3328_v6 = vpop.f32.mrb[46].mxu1  ;;  %2677 = vst.msk [vmem:[%s5911_s4 + $0x168] sm:$0xff] %vm2631_vm2, %v1787_v3 }
 0x13d   :  { %2807 = vst.msk [vmem:[%s5911_s4 + $0x578] sm:$0xff] %vm2631_vm2, %v3328_v6  ;;  %v2299_v7 = vpop.f32.mrb[47].mxu1 }
 0x13e   :  { %2805 = vst.msk [vmem:[%s5911_s4 + $0x568] sm:$0xff] %vm2631_vm2, %v2299_v7 }
 0x140   :  { %v3203_v8 = vpop.f32.mrb[48].mxu0 }
 0x141   :  { %2682 = vst.msk [vmem:[%s5911_s4 + $0x190] sm:$0xff] %vm2631_vm2, %v3203_v8  ;;  %v1800_v9 = vpop.f32.mrb[49].mxu0 }
 0x142   :  { %v3331_v10 = vpop.f32.mrb[48].mxu1  ;;  %2680 = vst.msk [vmem:[%s5911_s4 + $0x180] sm:$0xff] %vm2631_vm2, %v1800_v9  ;;  %v3204_v51 = vpop.f32.mrb[50].mxu0 }
 0x143   :  { %2810 = vst.msk [vmem:[%s5911_s4 + $0x590] sm:$0xff] %vm2631_vm2, %v3331_v10  ;;  %v2312_v11 = vpop.f32.mrb[49].mxu1  ;;  %2683 = vst.msk [vmem:[%s5911_s4 + $0x198] sm:$0xff] %vm2631_vm2, %v3204_v51  ;;  %v1803_v12 = vpop.f32.mrb[51].mxu0 }
 0x144   :  { %2808 = vst.msk [vmem:[%s5911_s4 + $0x580] sm:$0xff] %vm2631_vm2, %v2312_v11  ;;  %v3332_v13 = vpop.f32.mrb[50].mxu1  ;;  %2681 = vst.msk [vmem:[%s5911_s4 + $0x188] sm:$0xff] %vm2631_vm2, %v1803_v12 }
 0x145   :  { %2811 = vst.msk [vmem:[%s5911_s4 + $0x598] sm:$0xff] %vm2631_vm2, %v3332_v13  ;;  %v2315_v14 = vpop.f32.mrb[51].mxu1 }
 0x146   :  { %2809 = vst.msk [vmem:[%s5911_s4 + $0x588] sm:$0xff] %vm2631_vm2, %v2315_v14 }
 0x148   :  { %v3207_v15 = vpop.f32.mrb[52].mxu0 }
 0x149   :  { %2686 = vst.msk [vmem:[%s5911_s4 + $0x1b0] sm:$0xff] %vm2631_vm2, %v3207_v15  ;;  %v1816_v16 = vpop.f32.mrb[53].mxu0 }
 0x14a   :  { %v3335_v17 = vpop.f32.mrb[52].mxu1  ;;  %2684 = vst.msk [vmem:[%s5911_s4 + $0x1a0] sm:$0xff] %vm2631_vm2, %v1816_v16  ;;  %v3208_v18 = vpop.f32.mrb[54].mxu0 }
 0x14b   :  { %2814 = vst.msk [vmem:[%s5911_s4 + $0x5b0] sm:$0xff] %vm2631_vm2, %v3335_v17  ;;  %v2328_v19 = vpop.f32.mrb[53].mxu1  ;;  %2687 = vst.msk [vmem:[%s5911_s4 + $0x1b8] sm:$0xff] %vm2631_vm2, %v3208_v18  ;;  %v1819_v20 = vpop.f32.mrb[55].mxu0 }
 0x14c   :  { %2812 = vst.msk [vmem:[%s5911_s4 + $0x5a0] sm:$0xff] %vm2631_vm2, %v2328_v19  ;;  %v3336_v21 = vpop.f32.mrb[54].mxu1  ;;  %2685 = vst.msk [vmem:[%s5911_s4 + $0x1a8] sm:$0xff] %vm2631_vm2, %v1819_v20 }
 0x14d   :  { %2815 = vst.msk [vmem:[%s5911_s4 + $0x5b8] sm:$0xff] %vm2631_vm2, %v3336_v21  ;;  %v2331_v22 = vpop.f32.mrb[55].mxu1 }
 0x14e   :  { %2813 = vst.msk [vmem:[%s5911_s4 + $0x5a8] sm:$0xff] %vm2631_vm2, %v2331_v22 }
 0x150   :  { %v3211_v24 = vpop.f32.mrb[56].mxu0 }
 0x151   :  { %2690 = vst.msk [vmem:[%s5911_s4 + $0x1d0] sm:$0xff] %vm2631_vm2, %v3211_v24  ;;  %v1832_v25 = vpop.f32.mrb[57].mxu0 }
 0x152   :  { %v3339_v26 = vpop.f32.mrb[56].mxu1  ;;  %2688 = vst.msk [vmem:[%s5911_s4 + $0x1c0] sm:$0xff] %vm2631_vm2, %v1832_v25  ;;  %v3212_v27 = vpop.f32.mrb[58].mxu0 }
 0x153   :  { %2818 = vst.msk [vmem:[%s5911_s4 + $0x5d0] sm:$0xff] %vm2631_vm2, %v3339_v26  ;;  %v2344_v28 = vpop.f32.mrb[57].mxu1  ;;  %2691 = vst.msk [vmem:[%s5911_s4 + $0x1d8] sm:$0xff] %vm2631_vm2, %v3212_v27  ;;  %v1835_v29 = vpop.f32.mrb[59].mxu0 }
 0x154   :  { %2816 = vst.msk [vmem:[%s5911_s4 + $0x5c0] sm:$0xff] %vm2631_vm2, %v2344_v28  ;;  %v3340_v30 = vpop.f32.mrb[58].mxu1  ;;  %2689 = vst.msk [vmem:[%s5911_s4 + $0x1c8] sm:$0xff] %vm2631_vm2, %v1835_v29 }
 0x155   :  { %2819 = vst.msk [vmem:[%s5911_s4 + $0x5d8] sm:$0xff] %vm2631_vm2, %v3340_v30  ;;  %v2347_v31 = vpop.f32.mrb[59].mxu1 }
 0x156   :  { %2817 = vst.msk [vmem:[%s5911_s4 + $0x5c8] sm:$0xff] %vm2631_vm2, %v2347_v31 }
 0x158   :  { %v3215_v32 = vpop.f32.mrb[60].mxu0 }
 0x159   :  { %2694 = vst.msk [vmem:[%s5911_s4 + $0x1f0] sm:$0xff] %vm2631_vm2, %v3215_v32  ;;  %v1848_v33 = vpop.f32.mrb[61].mxu0 }
 0x15a   :  { %v3343_v35 = vpop.f32.mrb[60].mxu1  ;;  %2692 = vst.msk [vmem:[%s5911_s4 + $0x1e0] sm:$0xff] %vm2631_vm2, %v1848_v33  ;;  %v3216_v36 = vpop.f32.mrb[62].mxu0 }
 0x15b   :  { %2822 = vst.msk [vmem:[%s5911_s4 + $0x5f0] sm:$0xff] %vm2631_vm2, %v3343_v35  ;;  %v2360_v37 = vpop.f32.mrb[61].mxu1  ;;  %2695 = vst.msk [vmem:[%s5911_s4 + $0x1f8] sm:$0xff] %vm2631_vm2, %v3216_v36  ;;  %v1851_v38 = vpop.f32.mrb[63].mxu0 }
 0x15c   :  { %2820 = vst.msk [vmem:[%s5911_s4 + $0x5e0] sm:$0xff] %vm2631_vm2, %v2360_v37  ;;  %v3344_v39 = vpop.f32.mrb[62].mxu1  ;;  %2693 = vst.msk [vmem:[%s5911_s4 + $0x1e8] sm:$0xff] %vm2631_vm2, %v1851_v38 }
 0x15d   :  { %2823 = vst.msk [vmem:[%s5911_s4 + $0x5f8] sm:$0xff] %vm2631_vm2, %v3344_v39  ;;  %v2363_v4 = vpop.f32.mrb[63].mxu1 }
 0x15e   :  { %2821 = vst.msk [vmem:[%s5911_s4 + $0x5e8] sm:$0xff] %vm2631_vm2, %v2363_v4 }
 0x160   :  { %v3219_v5 = vpop.f32.mrb[64].mxu0 }
 0x161   :  { %2698 = vst.msk [vmem:[%s5911_s4 + $0x210] sm:$0xff] %vm2631_vm2, %v3219_v5  ;;  %v1864_v40 = vpop.f32.mrb[65].mxu0 }
 0x162   :  { %v3347_v41 = vpop.f32.mrb[64].mxu1  ;;  %2696 = vst.msk [vmem:[%s5911_s4 + $0x200] sm:$0xff] %vm2631_vm2, %v1864_v40  ;;  %v3220_v42 = vpop.f32.mrb[66].mxu0 }
 0x163   :  { %2826 = vst.msk [vmem:[%s5911_s4 + $0x610] sm:$0xff] %vm2631_vm2, %v3347_v41  ;;  %v2376_v43 = vpop.f32.mrb[65].mxu1  ;;  %2699 = vst.msk [vmem:[%s5911_s4 + $0x218] sm:$0xff] %vm2631_vm2, %v3220_v42  ;;  %v1867_v44 = vpop.f32.mrb[67].mxu0 }
 0x164   :  { %2824 = vst.msk [vmem:[%s5911_s4 + $0x600] sm:$0xff] %vm2631_vm2, %v2376_v43  ;;  %v3348_v45 = vpop.f32.mrb[66].mxu1  ;;  %2697 = vst.msk [vmem:[%s5911_s4 + $0x208] sm:$0xff] %vm2631_vm2, %v1867_v44 }
 0x165   :  { %2827 = vst.msk [vmem:[%s5911_s4 + $0x618] sm:$0xff] %vm2631_vm2, %v3348_v45  ;;  %v2379_v46 = vpop.f32.mrb[67].mxu1 }
 0x166   :  { %2825 = vst.msk [vmem:[%s5911_s4 + $0x608] sm:$0xff] %vm2631_vm2, %v2379_v46 }
 0x168   :  { %v3223_v47 = vpop.f32.mrb[68].mxu0 }
 0x169   :  { %2702 = vst.msk [vmem:[%s5911_s4 + $0x230] sm:$0xff] %vm2631_vm2, %v3223_v47  ;;  %v1880_v48 = vpop.f32.mrb[69].mxu0 }
 0x16a   :  { %v3351_v49 = vpop.f32.mrb[68].mxu1  ;;  %2700 = vst.msk [vmem:[%s5911_s4 + $0x220] sm:$0xff] %vm2631_vm2, %v1880_v48  ;;  %v3224_v50 = vpop.f32.mrb[70].mxu0 }
 0x16b   :  { %2830 = vst.msk [vmem:[%s5911_s4 + $0x630] sm:$0xff] %vm2631_vm2, %v3351_v49  ;;  %v2392_v34 = vpop.f32.mrb[69].mxu1  ;;  %2703 = vst.msk [vmem:[%s5911_s4 + $0x238] sm:$0xff] %vm2631_vm2, %v3224_v50  ;;  %v1883_v52 = vpop.f32.mrb[71].mxu0 }
 0x16c   :  { %2828 = vst.msk [vmem:[%s5911_s4 + $0x620] sm:$0xff] %vm2631_vm2, %v2392_v34  ;;  %v3352_v53 = vpop.f32.mrb[70].mxu1  ;;  %2701 = vst.msk [vmem:[%s5911_s4 + $0x228] sm:$0xff] %vm2631_vm2, %v1883_v52 }
 0x16d   :  { %2831 = vst.msk [vmem:[%s5911_s4 + $0x638] sm:$0xff] %vm2631_vm2, %v3352_v53  ;;  %v2395_v54 = vpop.f32.mrb[71].mxu1 }
 0x16e   :  { %2829 = vst.msk [vmem:[%s5911_s4 + $0x628] sm:$0xff] %vm2631_vm2, %v2395_v54 }
 0x170   :  { %v3227_v23 = vpop.f32.mrb[72].mxu0 }
 0x171   :  { %2706 = vst.msk [vmem:[%s5911_s4 + $0x250] sm:$0xff] %vm2631_vm2, %v3227_v23  ;;  %v1896_v55 = vpop.f32.mrb[73].mxu0 }
 0x172   :  { %v3355_v56 = vpop.f32.mrb[72].mxu1  ;;  %2704 = vst.msk [vmem:[%s5911_s4 + $0x240] sm:$0xff] %vm2631_vm2, %v1896_v55  ;;  %v3228_v57 = vpop.f32.mrb[74].mxu0 }
 0x173   :  { %2834 = vst.msk [vmem:[%s5911_s4 + $0x650] sm:$0xff] %vm2631_vm2, %v3355_v56  ;;  %v2408_v58 = vpop.f32.mrb[73].mxu1  ;;  %2707 = vst.msk [vmem:[%s5911_s4 + $0x258] sm:$0xff] %vm2631_vm2, %v3228_v57  ;;  %v1899_v59 = vpop.f32.mrb[75].mxu0 }
 0x174   :  { %2832 = vst.msk [vmem:[%s5911_s4 + $0x640] sm:$0xff] %vm2631_vm2, %v2408_v58  ;;  %v3356_v60 = vpop.f32.mrb[74].mxu1  ;;  %2705 = vst.msk [vmem:[%s5911_s4 + $0x248] sm:$0xff] %vm2631_vm2, %v1899_v59 }
 0x175   :  { %2835 = vst.msk [vmem:[%s5911_s4 + $0x658] sm:$0xff] %vm2631_vm2, %v3356_v60  ;;  %v2411_v61 = vpop.f32.mrb[75].mxu1 }
 0x176   :  { %2833 = vst.msk [vmem:[%s5911_s4 + $0x648] sm:$0xff] %vm2631_vm2, %v2411_v61 }
 0x178   :  { %v3231_v62 = vpop.f32.mrb[76].mxu0 }
 0x179   :  { %2710 = vst.msk [vmem:[%s5911_s4 + $0x270] sm:$0xff] %vm2631_vm2, %v3231_v62  ;;  %v1912_v63 = vpop.f32.mrb[77].mxu0 }
 0x17a   :  { %v3359_v2 = vpop.f32.mrb[76].mxu1  ;;  %2708 = vst.msk [vmem:[%s5911_s4 + $0x260] sm:$0xff] %vm2631_vm2, %v1912_v63  ;;  %v3232_v0 = vpop.f32.mrb[78].mxu0 }
 0x17b   :  { %2838 = vst.msk [vmem:[%s5911_s4 + $0x670] sm:$0xff] %vm2631_vm2, %v3359_v2  ;;  %v2424_v1 = vpop.f32.mrb[77].mxu1  ;;  %2711 = vst.msk [vmem:[%s5911_s4 + $0x278] sm:$0xff] %vm2631_vm2, %v3232_v0  ;;  %v1915_v3 = vpop.f32.mrb[79].mxu0 }
 0x17c   :  { %2836 = vst.msk [vmem:[%s5911_s4 + $0x660] sm:$0xff] %vm2631_vm2, %v2424_v1  ;;  %v3360_v6 = vpop.f32.mrb[78].mxu1  ;;  %2709 = vst.msk [vmem:[%s5911_s4 + $0x268] sm:$0xff] %vm2631_vm2, %v1915_v3 }
 0x17d   :  { %2839 = vst.msk [vmem:[%s5911_s4 + $0x678] sm:$0xff] %vm2631_vm2, %v3360_v6  ;;  %v2427_v7 = vpop.f32.mrb[79].mxu1 }
 0x17e   :  { %2837 = vst.msk [vmem:[%s5911_s4 + $0x668] sm:$0xff] %vm2631_vm2, %v2427_v7 }
 0x180   :  { %v3235_v8 = vpop.f32.mrb[80].mxu0 }
 0x181   :  { %2714 = vst.msk [vmem:[%s5911_s4 + $0x290] sm:$0xff] %vm2631_vm2, %v3235_v8  ;;  %v1928_v9 = vpop.f32.mrb[81].mxu0 }
 0x182   :  { %v3363_v10 = vpop.f32.mrb[80].mxu1  ;;  %2712 = vst.msk [vmem:[%s5911_s4 + $0x280] sm:$0xff] %vm2631_vm2, %v1928_v9  ;;  %v3236_v51 = vpop.f32.mrb[82].mxu0 }
 0x183   :  { %2842 = vst.msk [vmem:[%s5911_s4 + $0x690] sm:$0xff] %vm2631_vm2, %v3363_v10  ;;  %v2440_v11 = vpop.f32.mrb[81].mxu1  ;;  %2715 = vst.msk [vmem:[%s5911_s4 + $0x298] sm:$0xff] %vm2631_vm2, %v3236_v51  ;;  %v1931_v12 = vpop.f32.mrb[83].mxu0 }
 0x184   :  { %2840 = vst.msk [vmem:[%s5911_s4 + $0x680] sm:$0xff] %vm2631_vm2, %v2440_v11  ;;  %v3364_v13 = vpop.f32.mrb[82].mxu1  ;;  %2713 = vst.msk [vmem:[%s5911_s4 + $0x288] sm:$0xff] %vm2631_vm2, %v1931_v12 }
 0x185   :  { %2843 = vst.msk [vmem:[%s5911_s4 + $0x698] sm:$0xff] %vm2631_vm2, %v3364_v13  ;;  %v2443_v14 = vpop.f32.mrb[83].mxu1 }
 0x186   :  { %2841 = vst.msk [vmem:[%s5911_s4 + $0x688] sm:$0xff] %vm2631_vm2, %v2443_v14 }
 0x188   :  { %v3239_v15 = vpop.f32.mrb[84].mxu0 }
 0x189   :  { %2718 = vst.msk [vmem:[%s5911_s4 + $0x2b0] sm:$0xff] %vm2631_vm2, %v3239_v15  ;;  %v1944_v16 = vpop.f32.mrb[85].mxu0 }
 0x18a   :  { %v3367_v17 = vpop.f32.mrb[84].mxu1  ;;  %2716 = vst.msk [vmem:[%s5911_s4 + $0x2a0] sm:$0xff] %vm2631_vm2, %v1944_v16  ;;  %v3240_v18 = vpop.f32.mrb[86].mxu0 }
 0x18b   :  { %2846 = vst.msk [vmem:[%s5911_s4 + $0x6b0] sm:$0xff] %vm2631_vm2, %v3367_v17  ;;  %v2456_v19 = vpop.f32.mrb[85].mxu1  ;;  %2719 = vst.msk [vmem:[%s5911_s4 + $0x2b8] sm:$0xff] %vm2631_vm2, %v3240_v18  ;;  %v1947_v20 = vpop.f32.mrb[87].mxu0 }
 0x18c   :  { %2844 = vst.msk [vmem:[%s5911_s4 + $0x6a0] sm:$0xff] %vm2631_vm2, %v2456_v19  ;;  %v3368_v21 = vpop.f32.mrb[86].mxu1  ;;  %2717 = vst.msk [vmem:[%s5911_s4 + $0x2a8] sm:$0xff] %vm2631_vm2, %v1947_v20 }
 0x18d   :  { %2847 = vst.msk [vmem:[%s5911_s4 + $0x6b8] sm:$0xff] %vm2631_vm2, %v3368_v21  ;;  %v2459_v22 = vpop.f32.mrb[87].mxu1 }
 0x18e   :  { %2845 = vst.msk [vmem:[%s5911_s4 + $0x6a8] sm:$0xff] %vm2631_vm2, %v2459_v22 }
 0x190   :  { %v3243_v24 = vpop.f32.mrb[88].mxu0 }
 0x191   :  { %2722 = vst.msk [vmem:[%s5911_s4 + $0x2d0] sm:$0xff] %vm2631_vm2, %v3243_v24  ;;  %v1960_v25 = vpop.f32.mrb[89].mxu0 }
 0x192   :  { %v3371_v26 = vpop.f32.mrb[88].mxu1  ;;  %2720 = vst.msk [vmem:[%s5911_s4 + $0x2c0] sm:$0xff] %vm2631_vm2, %v1960_v25  ;;  %v3244_v27 = vpop.f32.mrb[90].mxu0 }
 0x193   :  { %2850 = vst.msk [vmem:[%s5911_s4 + $0x6d0] sm:$0xff] %vm2631_vm2, %v3371_v26  ;;  %v2472_v28 = vpop.f32.mrb[89].mxu1  ;;  %2723 = vst.msk [vmem:[%s5911_s4 + $0x2d8] sm:$0xff] %vm2631_vm2, %v3244_v27  ;;  %v1963_v29 = vpop.f32.mrb[91].mxu0 }
 0x194   :  { %2848 = vst.msk [vmem:[%s5911_s4 + $0x6c0] sm:$0xff] %vm2631_vm2, %v2472_v28  ;;  %v3372_v30 = vpop.f32.mrb[90].mxu1  ;;  %2721 = vst.msk [vmem:[%s5911_s4 + $0x2c8] sm:$0xff] %vm2631_vm2, %v1963_v29 }
 0x195   :  { %2851 = vst.msk [vmem:[%s5911_s4 + $0x6d8] sm:$0xff] %vm2631_vm2, %v3372_v30  ;;  %v2475_v31 = vpop.f32.mrb[91].mxu1 }
 0x196   :  { %2849 = vst.msk [vmem:[%s5911_s4 + $0x6c8] sm:$0xff] %vm2631_vm2, %v2475_v31 }
 0x198   :  { %v3247_v32 = vpop.f32.mrb[92].mxu0 }
 0x199   :  { %2726 = vst.msk [vmem:[%s5911_s4 + $0x2f0] sm:$0xff] %vm2631_vm2, %v3247_v32  ;;  %v1976_v33 = vpop.f32.mrb[93].mxu0 }
 0x19a   :  { %v3375_v35 = vpop.f32.mrb[92].mxu1  ;;  %2724 = vst.msk [vmem:[%s5911_s4 + $0x2e0] sm:$0xff] %vm2631_vm2, %v1976_v33  ;;  %v3248_v36 = vpop.f32.mrb[94].mxu0 }
 0x19b   :  { %2854 = vst.msk [vmem:[%s5911_s4 + $0x6f0] sm:$0xff] %vm2631_vm2, %v3375_v35  ;;  %v2488_v37 = vpop.f32.mrb[93].mxu1  ;;  %2727 = vst.msk [vmem:[%s5911_s4 + $0x2f8] sm:$0xff] %vm2631_vm2, %v3248_v36  ;;  %v1979_v38 = vpop.f32.mrb[95].mxu0 }
 0x19c   :  { %2852 = vst.msk [vmem:[%s5911_s4 + $0x6e0] sm:$0xff] %vm2631_vm2, %v2488_v37  ;;  %v3376_v39 = vpop.f32.mrb[94].mxu1  ;;  %2725 = vst.msk [vmem:[%s5911_s4 + $0x2e8] sm:$0xff] %vm2631_vm2, %v1979_v38 }
 0x19d   :  { %2855 = vst.msk [vmem:[%s5911_s4 + $0x6f8] sm:$0xff] %vm2631_vm2, %v3376_v39  ;;  %v2491_v4 = vpop.f32.mrb[95].mxu1 }
 0x19e   :  { %2853 = vst.msk [vmem:[%s5911_s4 + $0x6e8] sm:$0xff] %vm2631_vm2, %v2491_v4 }
 0x1a0   :  { %v3251_v5 = vpop.f32.mrb[96].mxu0 }
 0x1a1   :  { %2730 = vst.msk [vmem:[%s5911_s4 + $0x310] sm:$0xff] %vm2631_vm2, %v3251_v5  ;;  %v1992_v40 = vpop.f32.mrb[97].mxu0 }
 0x1a2   :  { %v3379_v41 = vpop.f32.mrb[96].mxu1  ;;  %2728 = vst.msk [vmem:[%s5911_s4 + $0x300] sm:$0xff] %vm2631_vm2, %v1992_v40  ;;  %v3252_v42 = vpop.f32.mrb[98].mxu0 }
 0x1a3   :  { %2858 = vst.msk [vmem:[%s5911_s4 + $0x710] sm:$0xff] %vm2631_vm2, %v3379_v41  ;;  %v2504_v43 = vpop.f32.mrb[97].mxu1  ;;  %2731 = vst.msk [vmem:[%s5911_s4 + $0x318] sm:$0xff] %vm2631_vm2, %v3252_v42  ;;  %v1995_v44 = vpop.f32.mrb[99].mxu0 }
 0x1a4   :  { %2856 = vst.msk [vmem:[%s5911_s4 + $0x700] sm:$0xff] %vm2631_vm2, %v2504_v43  ;;  %v3380_v45 = vpop.f32.mrb[98].mxu1  ;;  %2729 = vst.msk [vmem:[%s5911_s4 + $0x308] sm:$0xff] %vm2631_vm2, %v1995_v44 }
 0x1a5   :  { %2859 = vst.msk [vmem:[%s5911_s4 + $0x718] sm:$0xff] %vm2631_vm2, %v3380_v45  ;;  %v2507_v46 = vpop.f32.mrb[99].mxu1 }
 0x1a6   :  { %2857 = vst.msk [vmem:[%s5911_s4 + $0x708] sm:$0xff] %vm2631_vm2, %v2507_v46 }
 0x1a8   :  { %v3255_v47 = vpop.f32.mrb[100].mxu0 }
 0x1a9   :  { %2734 = vst.msk [vmem:[%s5911_s4 + $0x330] sm:$0xff] %vm2631_vm2, %v3255_v47  ;;  %v2008_v48 = vpop.f32.mrb[101].mxu0 }
 0x1aa   :  { %v3383_v49 = vpop.f32.mrb[100].mxu1  ;;  %2732 = vst.msk [vmem:[%s5911_s4 + $0x320] sm:$0xff] %vm2631_vm2, %v2008_v48  ;;  %v3256_v50 = vpop.f32.mrb[102].mxu0 }
 0x1ab   :  { %2862 = vst.msk [vmem:[%s5911_s4 + $0x730] sm:$0xff] %vm2631_vm2, %v3383_v49  ;;  %v2520_v34 = vpop.f32.mrb[101].mxu1  ;;  %2735 = vst.msk [vmem:[%s5911_s4 + $0x338] sm:$0xff] %vm2631_vm2, %v3256_v50  ;;  %v2011_v52 = vpop.f32.mrb[103].mxu0 }
 0x1ac   :  { %2860 = vst.msk [vmem:[%s5911_s4 + $0x720] sm:$0xff] %vm2631_vm2, %v2520_v34  ;;  %v3384_v53 = vpop.f32.mrb[102].mxu1  ;;  %2733 = vst.msk [vmem:[%s5911_s4 + $0x328] sm:$0xff] %vm2631_vm2, %v2011_v52 }
 0x1ad   :  { %2863 = vst.msk [vmem:[%s5911_s4 + $0x738] sm:$0xff] %vm2631_vm2, %v3384_v53  ;;  %v2523_v54 = vpop.f32.mrb[103].mxu1 }
 0x1ae   :  { %2861 = vst.msk [vmem:[%s5911_s4 + $0x728] sm:$0xff] %vm2631_vm2, %v2523_v54 }
 0x1b0   :  { %v3259_v23 = vpop.f32.mrb[104].mxu0 }
 0x1b1   :  { %2738 = vst.msk [vmem:[%s5911_s4 + $0x350] sm:$0xff] %vm2631_vm2, %v3259_v23  ;;  %v2024_v55 = vpop.f32.mrb[105].mxu0 }
 0x1b2   :  { %v3387_v56 = vpop.f32.mrb[104].mxu1  ;;  %2736 = vst.msk [vmem:[%s5911_s4 + $0x340] sm:$0xff] %vm2631_vm2, %v2024_v55  ;;  %v3260_v57 = vpop.f32.mrb[106].mxu0 }
 0x1b3   :  { %2866 = vst.msk [vmem:[%s5911_s4 + $0x750] sm:$0xff] %vm2631_vm2, %v3387_v56  ;;  %v2536_v58 = vpop.f32.mrb[105].mxu1  ;;  %2739 = vst.msk [vmem:[%s5911_s4 + $0x358] sm:$0xff] %vm2631_vm2, %v3260_v57  ;;  %v2027_v59 = vpop.f32.mrb[107].mxu0 }
 0x1b4   :  { %2864 = vst.msk [vmem:[%s5911_s4 + $0x740] sm:$0xff] %vm2631_vm2, %v2536_v58  ;;  %v3388_v60 = vpop.f32.mrb[106].mxu1  ;;  %2737 = vst.msk [vmem:[%s5911_s4 + $0x348] sm:$0xff] %vm2631_vm2, %v2027_v59 }
 0x1b5   :  { %2867 = vst.msk [vmem:[%s5911_s4 + $0x758] sm:$0xff] %vm2631_vm2, %v3388_v60  ;;  %v2539_v61 = vpop.f32.mrb[107].mxu1 }
 0x1b6   :  { %2865 = vst.msk [vmem:[%s5911_s4 + $0x748] sm:$0xff] %vm2631_vm2, %v2539_v61 }
 0x1b8   :  { %v3263_v62 = vpop.f32.mrb[108].mxu0 }
 0x1b9   :  { %2742 = vst.msk [vmem:[%s5911_s4 + $0x370] sm:$0xff] %vm2631_vm2, %v3263_v62  ;;  %v2040_v63 = vpop.f32.mrb[109].mxu0 }
 0x1ba   :  { %v3391_v2 = vpop.f32.mrb[108].mxu1  ;;  %2740 = vst.msk [vmem:[%s5911_s4 + $0x360] sm:$0xff] %vm2631_vm2, %v2040_v63  ;;  %v3264_v0 = vpop.f32.mrb[110].mxu0 }
 0x1bb   :  { %2870 = vst.msk [vmem:[%s5911_s4 + $0x770] sm:$0xff] %vm2631_vm2, %v3391_v2  ;;  %v2552_v1 = vpop.f32.mrb[109].mxu1  ;;  %2743 = vst.msk [vmem:[%s5911_s4 + $0x378] sm:$0xff] %vm2631_vm2, %v3264_v0  ;;  %v2043_v3 = vpop.f32.mrb[111].mxu0 }
 0x1bc   :  { %2868 = vst.msk [vmem:[%s5911_s4 + $0x760] sm:$0xff] %vm2631_vm2, %v2552_v1  ;;  %v3392_v6 = vpop.f32.mrb[110].mxu1  ;;  %2741 = vst.msk [vmem:[%s5911_s4 + $0x368] sm:$0xff] %vm2631_vm2, %v2043_v3 }
 0x1bd   :  { %2871 = vst.msk [vmem:[%s5911_s4 + $0x778] sm:$0xff] %vm2631_vm2, %v3392_v6  ;;  %v2555_v7 = vpop.f32.mrb[111].mxu1 }
 0x1be   :  { %2869 = vst.msk [vmem:[%s5911_s4 + $0x768] sm:$0xff] %vm2631_vm2, %v2555_v7 }
 0x1c0   :  { %v3267_v8 = vpop.f32.mrb[112].mxu0 }
 0x1c1   :  { %2746 = vst.msk [vmem:[%s5911_s4 + $0x390] sm:$0xff] %vm2631_vm2, %v3267_v8  ;;  %v2056_v9 = vpop.f32.mrb[113].mxu0 }
 0x1c2   :  { %v3395_v10 = vpop.f32.mrb[112].mxu1  ;;  %2744 = vst.msk [vmem:[%s5911_s4 + $0x380] sm:$0xff] %vm2631_vm2, %v2056_v9  ;;  %v3268_v51 = vpop.f32.mrb[114].mxu0 }
 0x1c3   :  { %2874 = vst.msk [vmem:[%s5911_s4 + $0x790] sm:$0xff] %vm2631_vm2, %v3395_v10  ;;  %v2568_v11 = vpop.f32.mrb[113].mxu1  ;;  %2747 = vst.msk [vmem:[%s5911_s4 + $0x398] sm:$0xff] %vm2631_vm2, %v3268_v51  ;;  %v2059_v12 = vpop.f32.mrb[115].mxu0 }
 0x1c4   :  { %2872 = vst.msk [vmem:[%s5911_s4 + $0x780] sm:$0xff] %vm2631_vm2, %v2568_v11  ;;  %v3396_v13 = vpop.f32.mrb[114].mxu1  ;;  %2745 = vst.msk [vmem:[%s5911_s4 + $0x388] sm:$0xff] %vm2631_vm2, %v2059_v12 }
 0x1c5   :  { %2875 = vst.msk [vmem:[%s5911_s4 + $0x798] sm:$0xff] %vm2631_vm2, %v3396_v13  ;;  %v2571_v14 = vpop.f32.mrb[115].mxu1 }
 0x1c6   :  { %2873 = vst.msk [vmem:[%s5911_s4 + $0x788] sm:$0xff] %vm2631_vm2, %v2571_v14 }
 0x1c8   :  { %v3271_v15 = vpop.f32.mrb[116].mxu0 }
 0x1c9   :  { %2750 = vst.msk [vmem:[%s5911_s4 + $0x3b0] sm:$0xff] %vm2631_vm2, %v3271_v15  ;;  %v2072_v16 = vpop.f32.mrb[117].mxu0 }
 0x1ca   :  { %v3399_v17 = vpop.f32.mrb[116].mxu1  ;;  %2748 = vst.msk [vmem:[%s5911_s4 + $0x3a0] sm:$0xff] %vm2631_vm2, %v2072_v16  ;;  %v3272_v18 = vpop.f32.mrb[118].mxu0 }
 0x1cb   :  { %2878 = vst.msk [vmem:[%s5911_s4 + $0x7b0] sm:$0xff] %vm2631_vm2, %v3399_v17  ;;  %v2584_v19 = vpop.f32.mrb[117].mxu1  ;;  %2751 = vst.msk [vmem:[%s5911_s4 + $0x3b8] sm:$0xff] %vm2631_vm2, %v3272_v18  ;;  %v2075_v20 = vpop.f32.mrb[119].mxu0 }
 0x1cc   :  { %2876 = vst.msk [vmem:[%s5911_s4 + $0x7a0] sm:$0xff] %vm2631_vm2, %v2584_v19  ;;  %v3400_v21 = vpop.f32.mrb[118].mxu1  ;;  %2749 = vst.msk [vmem:[%s5911_s4 + $0x3a8] sm:$0xff] %vm2631_vm2, %v2075_v20 }
 0x1cd   :  { %2879 = vst.msk [vmem:[%s5911_s4 + $0x7b8] sm:$0xff] %vm2631_vm2, %v3400_v21  ;;  %v2587_v22 = vpop.f32.mrb[119].mxu1 }
 0x1ce   :  { %2877 = vst.msk [vmem:[%s5911_s4 + $0x7a8] sm:$0xff] %vm2631_vm2, %v2587_v22 }
 0x1d0   :  { %v3275_v24 = vpop.f32.mrb[120].mxu0 }
 0x1d1   :  { %2754 = vst.msk [vmem:[%s5911_s4 + $0x3d0] sm:$0xff] %vm2631_vm2, %v3275_v24  ;;  %v2088_v25 = vpop.f32.mrb[121].mxu0 }
 0x1d2   :  { %v3403_v26 = vpop.f32.mrb[120].mxu1  ;;  %2752 = vst.msk [vmem:[%s5911_s4 + $0x3c0] sm:$0xff] %vm2631_vm2, %v2088_v25  ;;  %v3276_v27 = vpop.f32.mrb[122].mxu0 }
 0x1d3   :  { %2882 = vst.msk [vmem:[%s5911_s4 + $0x7d0] sm:$0xff] %vm2631_vm2, %v3403_v26  ;;  %v2600_v28 = vpop.f32.mrb[121].mxu1  ;;  %2755 = vst.msk [vmem:[%s5911_s4 + $0x3d8] sm:$0xff] %vm2631_vm2, %v3276_v27  ;;  %v2091_v29 = vpop.f32.mrb[123].mxu0 }
 0x1d4   :  { %2880 = vst.msk [vmem:[%s5911_s4 + $0x7c0] sm:$0xff] %vm2631_vm2, %v2600_v28  ;;  %v3404_v30 = vpop.f32.mrb[122].mxu1  ;;  %2753 = vst.msk [vmem:[%s5911_s4 + $0x3c8] sm:$0xff] %vm2631_vm2, %v2091_v29 }
 0x1d5   :  { %2883 = vst.msk [vmem:[%s5911_s4 + $0x7d8] sm:$0xff] %vm2631_vm2, %v3404_v30  ;;  %v2603_v31 = vpop.f32.mrb[123].mxu1 }
 0x1d6   :  { %2881 = vst.msk [vmem:[%s5911_s4 + $0x7c8] sm:$0xff] %vm2631_vm2, %v2603_v31 }
 0x1d8   :  { %v3279_v32 = vpop.f32.mrb[124].mxu0 }
 0x1d9   :  { %2758 = vst.msk [vmem:[%s5911_s4 + $0x3f0] sm:$0xff] %vm2631_vm2, %v3279_v32  ;;  %v2104_v33 = vpop.f32.mrb[125].mxu0 }
 0x1da   :  { %v3407_v35 = vpop.f32.mrb[124].mxu1  ;;  %2756 = vst.msk [vmem:[%s5911_s4 + $0x3e0] sm:$0xff] %vm2631_vm2, %v2104_v33  ;;  %v3280_v36 = vpop.f32.mrb[126].mxu0 }
 0x1db   :  { %2886 = vst.msk [vmem:[%s5911_s4 + $0x7f0] sm:$0xff] %vm2631_vm2, %v3407_v35  ;;  %v2616_v37 = vpop.f32.mrb[125].mxu1  ;;  %2759 = vst.msk [vmem:[%s5911_s4 + $0x3f8] sm:$0xff] %vm2631_vm2, %v3280_v36  ;;  %v2107_v38 = vpop.f32.mrb[127].mxu0 }
 0x1dc   :  { %2884 = vst.msk [vmem:[%s5911_s4 + $0x7e0] sm:$0xff] %vm2631_vm2, %v2616_v37  ;;  %v3408_v39 = vpop.f32.mrb[126].mxu1  ;;  %2757 = vst.msk [vmem:[%s5911_s4 + $0x3e8] sm:$0xff] %vm2631_vm2, %v2107_v38 }
 0x1dd   :  { %2887 = vst.msk [vmem:[%s5911_s4 + $0x7f8] sm:$0xff] %vm2631_vm2, %v3408_v39  ;;  %v2619_v4 = vpop.f32.mrb[127].mxu1 }
 0x1de   :  { %2885 = vst.msk [vmem:[%s5911_s4 + $0x7e8] sm:$0xff] %vm2631_vm2, %v2619_v4 }

// kernel: generator_forward.19
= control target key start
LH: loop header
LB: loop body
LE: loop exit
PB: predicated region body
PF: predicated region fallthrough
CT: control target
= control target key end

     0   :  { %s286_s0 = inlined_call_operand.vmem [shape: f32[192,128], index: 0, kind: input, shape index: {}]   ;;  %s287_s1 = inlined_call_operand.vmem [shape: f32[192,128], index: 1, kind: output, shape index: {}]  }
   0x1   :  { %v8_v0 = vld [vmem:[%s286_s0] sm:$0xff]  ;;  %v9_v1 = vld [vmem:[%s286_s0 + $0x8] sm:$0xff]  ;;  %v10_v2 = vld [vmem:[%s286_s0 + $0x10] sm:$0xff] }
   0x2   :  { %84 = vtanh.f32 %v8_v0  ;;  %v11_v3 = vld [vmem:[%s286_s0 + $0x18] sm:$0xff]  ;;  %v12_v4 = vld [vmem:[%s286_s0 + $0x20] sm:$0xff]  ;;  %v13_v5 = vld [vmem:[%s286_s0 + $0x28] sm:$0xff] }
   0x3   :  { %86 = vtanh.f32 %v9_v1  ;;  %v14_v6 = vld [vmem:[%s286_s0 + $0x30] sm:$0xff]  ;;  %v15_v7 = vld [vmem:[%s286_s0 + $0x38] sm:$0xff]  ;;  %v16_v8 = vld [vmem:[%s286_s0 + $0x40] sm:$0xff] }
   0x4   :  { %88 = vtanh.f32 %v10_v2  ;;  %v17_v9 = vld [vmem:[%s286_s0 + $0x48] sm:$0xff]  ;;  %v18_v10 = vld [vmem:[%s286_s0 + $0x50] sm:$0xff]  ;;  %v19_v11 = vld [vmem:[%s286_s0 + $0x58] sm:$0xff] }
   0x5   :  { %90 = vtanh.f32 %v11_v3  ;;  %v20_v12 = vld [vmem:[%s286_s0 + $0x60] sm:$0xff]  ;;  %v21_v14 = vld [vmem:[%s286_s0 + $0x68] sm:$0xff]  ;;  %v22_v16 = vld [vmem:[%s286_s0 + $0x70] sm:$0xff] }
   0x6   :  { %92 = vtanh.f32 %v12_v4  ;;  %v23_v18 = vld [vmem:[%s286_s0 + $0x78] sm:$0xff]  ;;  %v24_v20 = vld [vmem:[%s286_s0 + $0x80] sm:$0xff]  ;;  %v25_v22 = vld [vmem:[%s286_s0 + $0x88] sm:$0xff] }
   0x7   :  { %94 = vtanh.f32 %v13_v5  ;;  %v26_v24 = vld [vmem:[%s286_s0 + $0x90] sm:$0xff]  ;;  %v27_v26 = vld [vmem:[%s286_s0 + $0x98] sm:$0xff]  ;;  %v28_v28 = vld [vmem:[%s286_s0 + $0xa0] sm:$0xff] }
   0x8   :  { %96 = vtanh.f32 %v14_v6  ;;  %v29_v30 = vld [vmem:[%s286_s0 + $0xa8] sm:$0xff]  ;;  %v30_v32 = vld [vmem:[%s286_s0 + $0xb0] sm:$0xff]  ;;  %v31_v34 = vld [vmem:[%s286_s0 + $0xb8] sm:$0xff] }
   0x9   :  { %98 = vtanh.f32 %v15_v7 }
   0xa   :  { %100 = vtanh.f32 %v16_v8 }
   0xb   :  { %102 = vtanh.f32 %v17_v9 }
   0xc   :  { %v85_v13 = vpop.eup %84  ;;  %104 = vtanh.f32 %v18_v10 }
   0xd   :  { %v87_v15 = vpop.eup %86  ;;  %56 = vst [vmem:[%s287_s1] sm:$0xff] %v85_v13  ;;  %106 = vtanh.f32 %v19_v11 }
   0xe   :  { %v89_v17 = vpop.eup %88  ;;  %57 = vst [vmem:[%s287_s1 + $0x8] sm:$0xff] %v87_v15  ;;  %108 = vtanh.f32 %v20_v12 }
   0xf   :  { %v91_v19 = vpop.eup %90  ;;  %58 = vst [vmem:[%s287_s1 + $0x10] sm:$0xff] %v89_v17  ;;  %110 = vtanh.f32 %v21_v14 }
  0x10   :  { %v93_v21 = vpop.eup %92  ;;  %59 = vst [vmem:[%s287_s1 + $0x18] sm:$0xff] %v91_v19  ;;  %112 = vtanh.f32 %v22_v16 }
  0x11   :  { %v95_v23 = vpop.eup %94  ;;  %60 = vst [vmem:[%s287_s1 + $0x20] sm:$0xff] %v93_v21  ;;  %114 = vtanh.f32 %v23_v18 }
  0x12   :  { %v97_v25 = vpop.eup %96  ;;  %61 = vst [vmem:[%s287_s1 + $0x28] sm:$0xff] %v95_v23  ;;  %116 = vtanh.f32 %v24_v20 }
  0x13   :  { %v99_v27 = vpop.eup %98  ;;  %62 = vst [vmem:[%s287_s1 + $0x30] sm:$0xff] %v97_v25  ;;  %118 = vtanh.f32 %v25_v22 }
  0x14   :  { %v101_v29 = vpop.eup %100  ;;  %63 = vst [vmem:[%s287_s1 + $0x38] sm:$0xff] %v99_v27  ;;  %120 = vtanh.f32 %v26_v24 }
  0x15   :  { %v103_v31 = vpop.eup %102  ;;  %64 = vst [vmem:[%s287_s1 + $0x40] sm:$0xff] %v101_v29  ;;  %122 = vtanh.f32 %v27_v26 }
  0x16   :  { %v105_v33 = vpop.eup %104  ;;  %65 = vst [vmem:[%s287_s1 + $0x48] sm:$0xff] %v103_v31  ;;  %124 = vtanh.f32 %v28_v28 }
  0x17   :  { %v107_v35 = vpop.eup %106  ;;  %66 = vst [vmem:[%s287_s1 + $0x50] sm:$0xff] %v105_v33  ;;  %126 = vtanh.f32 %v29_v30 }
  0x18   :  { %v109_v36 = vpop.eup %108  ;;  %67 = vst [vmem:[%s287_s1 + $0x58] sm:$0xff] %v107_v35  ;;  %128 = vtanh.f32 %v30_v32 }
  0x19   :  { %v111_v37 = vpop.eup %110  ;;  %68 = vst [vmem:[%s287_s1 + $0x60] sm:$0xff] %v109_v36  ;;  %130 = vtanh.f32 %v31_v34 }
  0x1a   :  { %v113_v38 = vpop.eup %112  ;;  %69 = vst [vmem:[%s287_s1 + $0x68] sm:$0xff] %v111_v37 }
  0x1b   :  { %v115_v39 = vpop.eup %114  ;;  %70 = vst [vmem:[%s287_s1 + $0x70] sm:$0xff] %v113_v38 }
  0x1c   :  { %v117_v40 = vpop.eup %116  ;;  %71 = vst [vmem:[%s287_s1 + $0x78] sm:$0xff] %v115_v39 }
  0x1d   :  { %v119_v41 = vpop.eup %118  ;;  %72 = vst [vmem:[%s287_s1 + $0x80] sm:$0xff] %v117_v40 }
  0x1e   :  { %v121_v42 = vpop.eup %120  ;;  %73 = vst [vmem:[%s287_s1 + $0x88] sm:$0xff] %v119_v41 }
  0x1f   :  { %v123_v43 = vpop.eup %122  ;;  %74 = vst [vmem:[%s287_s1 + $0x90] sm:$0xff] %v121_v42 }
  0x20   :  { %v125_v44 = vpop.eup %124  ;;  %75 = vst [vmem:[%s287_s1 + $0x98] sm:$0xff] %v123_v43 }
  0x21   :  { %v127_v45 = vpop.eup %126  ;;  %76 = vst [vmem:[%s287_s1 + $0xa0] sm:$0xff] %v125_v44 }
  0x22   :  { %v129_v46 = vpop.eup %128  ;;  %77 = vst [vmem:[%s287_s1 + $0xa8] sm:$0xff] %v127_v45 }
  0x23   :  { %v131_v47 = vpop.eup %130  ;;  %78 = vst [vmem:[%s287_s1 + $0xb0] sm:$0xff] %v129_v46 }
  0x24   :  { %79 = vst [vmem:[%s287_s1 + $0xb8] sm:$0xff] %v131_v47 }

</bundles_post_ra>
